<compile_context>
chip_gen: v6e
topology: v6e:2x2x1
jax: 0.10.0
libtpu: 0.0.40
codegen_flags: <defaults>
</compile_context>

<pallas_src>
import math

import jax
import jax.numpy as jnp
from jax.experimental import pallas as pl
from jax.experimental.pallas import tpu as pltpu

BLIP_DIM = 2048                      # self.blip_dim
VIT_DIM = 768                        # self.vit_dim
HIST_DIM = 81                        # hist_dim default
NUM_HEADS = 8                        # cross_attn_heads default
HEAD_DIM = BLIP_DIM // NUM_HEADS     # 256
STATE_DIM = BLIP_DIM + VIT_DIM + HIST_DIM  # 2897


# ----------------------------------------------------------------------------
# Fused Pallas kernel: whole forward in one call
# ----------------------------------------------------------------------------
def _dqn_fused_kernel(state_ref, w_ref, scale_ref, b_ref, o_ref):
    """state: [TM, 2897]   w: [768, 2048] (bf16 or int8)   scale/b: [1, 2048]
       o:     [TM, 2897]

    o[:, :2048] = (vit @ W) * scale + b   (== out_proj(v_proj(kv_proj(vit))))
    o[:, 2048:] = state[:, 2048:]         (vit and history pass through)
    """
    vit = state_ref[:, BLIP_DIM:BLIP_DIM + VIT_DIM]            # [TM, 768] f32
    # int8 weights are dequantized to bf16 in VMEM (VPU slack); bf16 weights
    # pass through the cast unchanged.  f32 accumulation on the MXU.
    acc = jnp.dot(
        vit.astype(jnp.bfloat16),
        w_ref[...].astype(jnp.bfloat16),
        preferred_element_type=jnp.float32,
    )
    # Per-output-column scale folded into the bias-add epilogue (VPU).
    o_ref[:, :BLIP_DIM] = (acc * scale_ref[...] + b_ref[...]).astype(o_ref.dtype)
    # Pass-through region is 849 lanes -> last vst per row is masked; fine.
    o_ref[:, BLIP_DIM:] = state_ref[:, BLIP_DIM:]


def _pick_tile_m(batch):
    """Generation-aware M-tile cap.

    v7x (64 MiB VMEM) / unknown: TM<=256 fits the default scoped limit.
    v5e/v6e (128 MiB VMEM):      TM<=512 with the scoped limit raised.
    """
    big_vmem = False
    try:
        big_vmem = pltpu.get_tpu_info().vmem_capacity_bytes >= 128 * 1024 * 1024
    except Exception:
        pass
    cap = 512 if big_vmem else 256
    tm = min(batch, cap)
    vmem_limit = 64 * 1024 * 1024 if (big_vmem and tm > 256) else None
    return tm, vmem_limit


def dqn_forward(state, params, *, weight_format="int8", tile_m=None):
    """state: [B, 2897] -> new_state: [B, 2897], single pallas_call."""
    B = state.shape[0]
    assert state.shape[1] == STATE_DIM, state.shape

    if weight_format == "int8":
        w, scale = params["w_eff_i8"], params["w_scale"]
    elif weight_format == "bf16":
        w, scale = params["w_eff_bf16"], params["ones_scale"]
    else:
        raise ValueError(f"unknown weight_format: {weight_format}")
    b = params["b_eff"]                                         # [1, 2048] f32

    if tile_m is None:
        tm, vmem_limit = _pick_tile_m(B)
    else:
        tm, vmem_limit = min(tile_m, B), None
    grid_m = pl.cdiv(B, tm)

    cost = pl.CostEstimate(
        flops=2 * B * VIT_DIM * BLIP_DIM,
        transcendentals=0,
        bytes_accessed=int(w.nbytes + scale.nbytes + b.nbytes
                           + 2 * B * STATE_DIM * 4),
    )
    cp_kwargs = dict(dimension_semantics=("parallel",))
    if vmem_limit is not None:
        cp_kwargs["vmem_limit_bytes"] = vmem_limit

    return pl.pallas_call(
        _dqn_fused_kernel,
        out_shape=jax.ShapeDtypeStruct((B, STATE_DIM), jnp.float32),
        grid_spec=pltpu.PrefetchScalarGridSpec(
            num_scalar_prefetch=0,
            grid=(grid_m,),
            in_specs=[
                pl.BlockSpec((tm, STATE_DIM), lambda i: (i, 0)),      # state
                pl.BlockSpec((VIT_DIM, BLIP_DIM), lambda i: (0, 0)),  # W_eff
                pl.BlockSpec((1, BLIP_DIM), lambda i: (0, 0)),        # scale
                pl.BlockSpec((1, BLIP_DIM), lambda i: (0, 0)),        # b_eff
            ],
            out_specs=pl.BlockSpec((tm, STATE_DIM), lambda i: (i, 0)),
        ),
        compiler_params=pltpu.CompilerParams(**cp_kwargs),
        input_output_aliases={0: 0},   # donate `state`: in-place column rewrite
        cost_estimate=cost,
    )(state, w, scale, b)


# ----------------------------------------------------------------------------
# Parameter init (PyTorch-style layers) + offline algebraic fold + quant
# ----------------------------------------------------------------------------
def _quantize_per_column_int8(w):
    amax = jnp.max(jnp.abs(w), axis=0, keepdims=True)          # [1, N]
    scale = jnp.maximum(amax, 1e-30) / 127.0
    w_q = jnp.clip(jnp.round(w / scale), -127.0, 127.0).astype(jnp.int8)
    return w_q, scale.astype(jnp.float32)


def init_params(key):
    ks = jax.random.split(key, 6)
    s = 0.02
    # kv_proj: Linear(768 -> 2048)   (torch weight layout: [out, in])
    w_kv = jax.random.normal(ks[0], (BLIP_DIM, VIT_DIM), jnp.float32) * s
    b_kv = jax.random.normal(ks[1], (BLIP_DIM,), jnp.float32) * s
    # MultiheadAttention in_proj_weight [3E, E], in_proj_bias [3E]
    in_w = jax.random.normal(ks[2], (3 * BLIP_DIM, BLIP_DIM), jnp.float32) * s
    in_b = jax.random.normal(ks[3], (3 * BLIP_DIM,), jnp.float32) * s
    # out_proj: Linear(2048 -> 2048)
    w_o = jax.random.normal(ks[4], (BLIP_DIM, BLIP_DIM), jnp.float32) * s
    b_o = jax.random.normal(ks[5], (BLIP_DIM,), jnp.float32) * s

    w_q, w_k, w_v = in_w[:BLIP_DIM], in_w[BLIP_DIM:2 * BLIP_DIM], in_w[2 * BLIP_DIM:]
    b_q, b_k, b_v = in_b[:BLIP_DIM], in_b[BLIP_DIM:2 * BLIP_DIM], in_b[2 * BLIP_DIM:]

    wkv_t, wv_t, wo_t = w_kv.T, w_v.T, w_o.T
    # Offline fold (f32): out = ((vit@Wkv_t + b_kv)@Wv_t + b_v)@Wo_t + b_o
    # (valid only because q_len == kv_len == 1 -> softmax == 1)
    w_eff = (wkv_t @ wv_t) @ wo_t                         # [768, 2048]
    b_eff = (b_kv @ wv_t + b_v) @ wo_t + b_o              # [2048]

    w_i8, w_scale = _quantize_per_column_int8(w_eff)

    return {
        # what the kernel actually consumes
        "w_eff_bf16": w_eff.astype(jnp.bfloat16),          # [768, 2048] bf16
        "w_eff_i8": w_i8,                                  # [768, 2048] int8
        "w_scale": w_scale,                                # [1, 2048]   f32
        "ones_scale": jnp.ones((1, BLIP_DIM), jnp.float32),
        "b_eff": b_eff.reshape(1, BLIP_DIM),               # [1, 2048]   f32
        # raw per-layer params, kept only for the pure-JAX reference check
        "w_kv_t": wkv_t, "b_kv": b_kv,
        "w_q_t": w_q.T, "b_q": b_q,
        "w_k_t": w_k.T, "b_k": b_k,
        "w_v_t": wv_t, "b_v": b_v,
        "w_o_t": wo_t, "b_o": b_o,
    }


def reference_forward(state, params):
    """Pure-JAX reference mirroring the torch semantics (no folding)."""
    blip = state[:, :BLIP_DIM]
    vit = state[:, BLIP_DIM:BLIP_DIM + VIT_DIM]
    history = state[:, BLIP_DIM + VIT_DIM:]
    kv = vit @ params["w_kv_t"] + params["b_kv"]
    q = blip @ params["w_q_t"] + params["b_q"]
    k = kv @ params["w_k_t"] + params["b_k"]
    v = kv @ params["w_v_t"] + params["b_v"]
    B = state.shape[0]
    qh = q.reshape(B, NUM_HEADS, HEAD_DIM)
    kh = k.reshape(B, NUM_HEADS, HEAD_DIM)
    vh = v.reshape(B, NUM_HEADS, HEAD_DIM)
    scores = jnp.sum(qh * kh, axis=-1) / math.sqrt(HEAD_DIM)   # [B, H]
    w = jax.nn.softmax(scores[..., None], axis=-1)             # 1 key -> 1.0
    attn = (w * vh).reshape(B, BLIP_DIM)
    attn_rep = attn @ params["w_o_t"] + params["b_o"]
    return jnp.concatenate([attn_rep, vit, history], axis=1)


if __name__ == "__main__":
    key = jax.random.PRNGKey(0)
    k_param, k_s1, k_s2 = jax.random.split(key, 3)
    params = init_params(k_param)

    checks = []

    # Online / inference-sized batch: single full-batch block, both formats.
    B1 = 2
    state1 = jax.random.normal(k_s1, (B1, STATE_DIM), jnp.float32)
    ref1 = reference_forward(state1, params)
    out_bf16 = jax.block_until_ready(dqn_forward(state1, params, weight_format="bf16"))
    out_i8 = jax.block_until_ready(dqn_forward(state1, params, weight_format="int8"))
    assert out_bf16.shape == (B1, STATE_DIM)
    checks += [("bf16", out_bf16, ref1), ("int8", out_i8, ref1)]

    # Replay-buffer-sized batch: exercises the M-tiled grid, a VMEM-resident
    # weight slab across tiles, and a ragged last tile (300 % 256 != 0).
    B2 = 300
    state2 = jax.random.normal(k_s2, (B2, STATE_DIM), jnp.float32)
    ref2 = reference_forward(state2, params)
    out_tiled = jax.block_until_ready(dqn_forward(state2, params, weight_format="int8"))
    assert out_tiled.shape == (B2, STATE_DIM)
    checks.append(("int8-tiled", out_tiled, ref2))

    # bf16 / int8 weights with f32 accumulate: observed error O(1e-3) here.
    for tag, out, ref in checks:
        max_err = float(jnp.max(jnp.abs(out - ref)))
        if max_err > 2e-2:
            raise AssertionError(f"{tag}: mismatch vs reference, max abs err {max_err}")

    print("KERNEL_OK")
</pallas_src>

<mosaic_0001>
module attributes {stable_mosaic.version = 11 : i64} {
  func.func @_dqn_fused_kernel(%arg0: i32, %arg1: memref<2x2897xf32, #tpu.memory_space<vmem>>, %arg2: memref<768x2048xbf16, #tpu.memory_space<vmem>>, %arg3: memref<1x2048xf32, #tpu.memory_space<vmem>>, %arg4: memref<1x2048xf32, #tpu.memory_space<vmem>>, %arg5: memref<2x2897xf32, #tpu.memory_space<vmem>>) attributes {dimension_semantics = [#tpu.dimension_semantics<parallel>], iteration_bounds = array<i64: 1>, scalar_prefetch = 0 : i64, scratch_operands = 0 : i64, tpu.core_type = #tpu.core_type<tc>, window_params = [{transform_indices = @transform_0, window_bounds = array<i64: 2, 2897>}, {pipeline_mode = #tpu.pipeline_mode<synchronous>, transform_indices = @transform_1, window_bounds = array<i64: 768, 2048>}, {pipeline_mode = #tpu.pipeline_mode<synchronous>, transform_indices = @transform_2, window_bounds = array<i64: 1, 2048>}, {pipeline_mode = #tpu.pipeline_mode<synchronous>, transform_indices = @transform_3, window_bounds = array<i64: 1, 2048>}, {transform_indices = @transform_4, window_bounds = array<i64: 2, 2897>}]} {
    %c0 = arith.constant 0 : index
    %c2048 = arith.constant 2048 : index
    %0 = vector.load %arg1[%c0, %c2048] : memref<2x2897xf32, #tpu.memory_space<vmem>>, vector<2x768xf32>
    %1 = arith.truncf %0 : vector<2x768xf32> to vector<2x768xbf16>
    %c0_0 = arith.constant 0 : index
    %c0_1 = arith.constant 0 : index
    %2 = vector.load %arg2[%c0_0, %c0_1] : memref<768x2048xbf16, #tpu.memory_space<vmem>>, vector<768x2048xbf16>
    %cst = arith.constant dense<0.000000e+00> : vector<2x2048xf32>
    %3 = tpu.matmul %1, %2, %cst {dimension_numbers = #tpu.dot_dimension_numbers<[1], [0], [0], [1], [0, 0, 1, 1], [], []>} : vector<2x768xbf16>, vector<768x2048xbf16>, vector<2x2048xf32> -> vector<2x2048xf32>
    %c0_2 = arith.constant 0 : index
    %c0_3 = arith.constant 0 : index
    %4 = vector.load %arg3[%c0_2, %c0_3] : memref<1x2048xf32, #tpu.memory_space<vmem>>, vector<1x2048xf32>
    %5 = vector.broadcast %4 : vector<1x2048xf32> to vector<2x2048xf32>
    %6 = arith.mulf %3, %5 : vector<2x2048xf32>
    %c0_4 = arith.constant 0 : index
    %c0_5 = arith.constant 0 : index
    %7 = vector.load %arg4[%c0_4, %c0_5] : memref<1x2048xf32, #tpu.memory_space<vmem>>, vector<1x2048xf32>
    %8 = vector.broadcast %7 : vector<1x2048xf32> to vector<2x2048xf32>
    %9 = arith.addf %6, %8 : vector<2x2048xf32>
    %c0_6 = arith.constant 0 : index
    %c0_7 = arith.constant 0 : index
    %10 = vector.load %arg5[%c0_6, %c0_7] : memref<2x2897xf32, #tpu.memory_space<vmem>>, vector<2x2048xf32>
    tpu.vector_store %arg5[%c0_6, %c0_7], %9 {strides = array<i32>} : memref<2x2897xf32, #tpu.memory_space<vmem>>, vector<2x2048xf32>,
    %c0_8 = arith.constant 0 : index
    %c2048_9 = arith.constant 2048 : index
    %11 = vector.load %arg1[%c0_8, %c2048_9] : memref<2x2897xf32, #tpu.memory_space<vmem>>, vector<2x849xf32>
    %c0_10 = arith.constant 0 : index
    %c2048_11 = arith.constant 2048 : index
    %12 = vector.load %arg5[%c0_10, %c2048_11] : memref<2x2897xf32, #tpu.memory_space<vmem>>, vector<2x849xf32>
    tpu.vector_store %arg5[%c0_10, %c2048_11], %11 {strides = array<i32>} : memref<2x2897xf32, #tpu.memory_space<vmem>>, vector<2x849xf32>,
    return
  }
  func.func @transform_0(%arg0: i32) -> (i32, i32) {
    %c0_i32 = arith.constant 0 : i32
    %c0_i32_0 = arith.constant 0 : i32
    return %arg0, %c0_i32 : i32, i32
  }
  func.func @transform_1(%arg0: i32) -> (i32, i32) {
    %c0_i32 = arith.constant 0 : i32
    %c0_i32_0 = arith.constant 0 : i32
    %c0_i32_1 = arith.constant 0 : i32
    return %c0_i32, %c0_i32_0 : i32, i32
  }
  func.func @transform_2(%arg0: i32) -> (i32, i32) {
    %c0_i32 = arith.constant 0 : i32
    %c0_i32_0 = arith.constant 0 : i32
    %c0_i32_1 = arith.constant 0 : i32
    return %c0_i32, %c0_i32_0 : i32, i32
  }
  func.func @transform_3(%arg0: i32) -> (i32, i32) {
    %c0_i32 = arith.constant 0 : i32
    %c0_i32_0 = arith.constant 0 : i32
    %c0_i32_1 = arith.constant 0 : i32
    return %c0_i32, %c0_i32_0 : i32, i32
  }
  func.func @transform_4(%arg0: i32) -> (i32, i32) {
    %c0_i32 = arith.constant 0 : i32
    %c0_i32_0 = arith.constant 0 : i32
    return %arg0, %c0_i32 : i32, i32
  }
}

</mosaic_0001>

<bundles_post_ra>
// kernel: tpu_custom_call.1
= control target key start
LH: loop header
LB: loop body
LE: loop exit
PB: predicated region body
PF: predicated region fallthrough
CT: control target
= control target key end

     0   :  { %9 = vsyncpa [#allocation3], 0  ;;  %s7210_s0 = inlined_call_operand.hbm [shape: f32[2,2897], index: 0, kind: input, shape index: {}, may-alias: {0,4}]   ;;  %s7211_s1 = inlined_call_operand.hbm [shape: bf16[768,2048], index: 1, kind: input, shape index: {}]   ;;  %s7212_s2 = inlined_call_operand.hbm [shape: f32[1,2048], index: 2, kind: input, shape index: {}]   ;;  %s7213_s3 = inlined_call_operand.hbm [shape: f32[1,2048], index: 3, kind: input, shape index: {}]   ;;  %s7214_s4 = inlined_call_operand.hbm [shape: f32[2,2897], index: 4, kind: output, shape index: {}, may-alias: {0,4}]  }
   0x1   :  { %10 = vsyncpa [#allocation6], 0 }
   0x2   :  { %11 = vsyncpa [#allocation9], 0 }
   0x3   :  { %12 = vsyncpa [#allocation4], 0  ;;  %s6906_s15 = smov [#allocation5]  }
   0x4   :  { %s28_s16 = sshll.u32 %s6906_s15, 4  ;;  %s29_s16 = int_to_ptr.vmem [resolvable:$true] %s28_s16 }
   0x5   :  { %s6806_s17 = scalar_lea.vmem %s29_s16, 98304  ;;  %p6811_p1 = scmp.lt.s32.totalorder %s29_s16, %s29_s16 }
   0x6   :  { %p6807_p0 = scmp.ne.s32.totalorder %s29_s16, %s6806_s17  ;;  %p6812_p2 = scmp.lt.s32.totalorder %s6806_s17, %s6806_s17 }
   0x8   :  { %p6813_p3 = por %p6812_p2, %p6811_p1 }
   0xa   :  { %p6814_p4 = pnand %p6813_p3, %p6807_p0 }
   0xc   :  { %6817 = shalt.err (!%p6814_p4)
}
   0xd   :  { %s6907_s18 = smov 1024   ;;  %s6908_s19 = smov 64  }
   0xe   :  { %34 = dma.hbm_to_vmem [thread:$0]  %s7211_s1, 98304, %s29_s16, [#allocation6], %s6907_s18, %s6907_s18, %s6908_s19  }
   0xf   :  { %s6909_s22 = smov [#allocation2]   ;;  %s6910_s24 = smov [#allocation7]  }
  0x10   :  { %s19_s23 = sshll.u32 %s6909_s22, 4  ;;  %s41_s25 = sshll.u32 %s6910_s24, 4  ;;  %s20_s23 = int_to_ptr.vmem [resolvable:$true] %s19_s23  ;;  %s42_s25 = int_to_ptr.vmem [resolvable:$true] %s41_s25 }
  0x11   :  { %s6826_s26 = scalar_lea.vmem %s20_s23, 736  ;;  %p6831_p6 = scmp.lt.s32.totalorder %s20_s23, %s20_s23 }
  0x12   :  { %p6827_p5 = scmp.ne.s32.totalorder %s20_s23, %s6826_s26  ;;  %p6832_p7 = scmp.lt.s32.totalorder %s6826_s26, %s6826_s26 }
  0x14   :  { %p6833_p8 = por %p6832_p7, %p6831_p6 }
  0x16   :  { %p6834_p9 = pnand %p6833_p8, %p6827_p5 }
  0x18   :  { %6837 = shalt.err (!%p6834_p9)
}
  0x19   :  { %22 = dma.hbm_to_vmem [thread:$0]  %s7210_s0, 736, %s20_s23, [#allocation3]  }
  0x1a   :  { %s6846_s29 = scalar_lea.vmem %s42_s25, 256  ;;  %p6851_p11 = scmp.lt.s32.totalorder %s42_s25, %s42_s25 }
  0x1b   :  { %p6847_p10 = scmp.ne.s32.totalorder %s42_s25, %s6846_s29  ;;  %p6852_p12 = scmp.lt.s32.totalorder %s6846_s29, %s6846_s29 }
  0x1d   :  { %p6853_p13 = por %p6852_p12, %p6851_p11 }
  0x1f   :  { %p6854_p0 = pnand %p6853_p13, %p6847_p10 }
  0x21   :  { %6857 = shalt.err (!%p6854_p0)
}
  0x22   :  { %44 = dma.hbm_to_vmem [thread:$0]  %s7212_s2, 256, %s42_s25, [#allocation6]  }
  0x23   :  { %s6911_s5 = smov [#allocation8]  }
  0x24   :  { %s51_s6 = sshll.u32 %s6911_s5, 4  ;;  %s52_s6 = int_to_ptr.vmem [resolvable:$true] %s51_s6 }
  0x25   :  { %s6866_s7 = scalar_lea.vmem %s52_s6, 256  ;;  %p6871_p2 = scmp.lt.s32.totalorder %s52_s6, %s52_s6 }
  0x26   :  { %p6867_p1 = scmp.ne.s32.totalorder %s52_s6, %s6866_s7  ;;  %p6872_p3 = scmp.lt.s32.totalorder %s6866_s7, %s6866_s7 }
  0x28   :  { %p6873_p4 = por %p6872_p3, %p6871_p2 }
  0x2a   :  { %p6874_p5 = pnand %p6873_p4, %p6867_p1 }
  0x2c   :  { %6877 = shalt.err (!%p6874_p5)
}
  0x2d   :  { %54 = dma.hbm_to_vmem [thread:$0]  %s7213_s3, 256, %s52_s6, [#allocation9]  }
  0x2e   :  { %6898 = dma.done.wait [#allocation3], 736  }
  0x2f   :  { %6899 = vsyncadd [#allocation3], 4294966560 }
  0x30   :  { %6900 = dma.done.wait [#allocation6], 98560  }
  0x31   :  { %6901 = vsyncadd [#allocation6], 4294868736 }
  0x32   :  { %6902 = dma.done.wait [#allocation9], 256  }
  0x33   :  { %6903 = vsyncadd [#allocation9], 4294967040  ;;  %v220_v0 = vld [vmem:[#allocation5 + $0x380] sm:$0xff]  ;;  %v6912_v32 = vmov 1983009808   ;;  %v75_v34 = vlaneseq  ;;  %v67_v59 = vld [vmem:[#allocation2 + $0x20] sm:$0xff] }
  0x34   :  { %v228_v1 = vld [vmem:[#allocation5 + $0x3c0] sm:$0xff]  ;;  %v73_v33 = vunpack.c.l.s4 %v6912_v32  ;;  %vm5995_vm0 = vcmask 1041408   ;;  %vm5996_vm1 = vcmask 1043458   ;;  %vm5998_vm3 = vcmask 660484   ;;  %s6913_s2 = smov [#allocation10]  }
  0x35   :  { %v476_v2 = vld [vmem:[#allocation5 + $0xb80] sm:$0xff]  ;;  %v6132_v3 = vcombine.high %v220_v0, %v228_v1  ;;  %v6131_v5 = vcombine.low %v220_v0, %v228_v1  ;;  %v6951_v44 = vshrl.u32 %v75_v34, 7  ;;  %v71_v0 = vcombine.high %v67_v59, %v67_v59  ;;  %vm5997_vm2 = vmor %vm5996_vm1, %vm5995_vm0  ;;  %s6007_s3 = sshll.u32 %s6913_s2, 4  ;;  %s6008_s3 = int_to_ptr.vmem [resolvable:$true] %s6007_s3 }
  0x36   :  { %v484_v4 = vld [vmem:[#allocation5 + $0xbc0] sm:$0xff]  ;;  %v74_v43 = vunpack.c.0.s8 %v73_v33  ;;  %vm5999_vm4 = vmor %vm5998_vm3, %vm5997_vm2  ;;  %s6878_s9 = scalar_lea.vmem %s6008_s3, 736  ;;  %p6883_p7 = scmp.lt.s32.totalorder %s6008_s3, %s6008_s3 }
  0x37   :  { %v204_v6 = vld [vmem:[#allocation5 + $0x300] sm:$0xff]  ;;  %v6388_v8 = vcombine.high %v476_v2, %v484_v4  ;;  %v6387_v9 = vcombine.low %v476_v2, %v484_v4  ;;  %4716 = vmatprep.subr.bf16.mxu0 %v6132_v3  ;;  %p6879_p6 = scmp.ne.s32.totalorder %s6008_s3, %s6878_s9  ;;  %p6884_p8 = scmp.lt.s32.totalorder %s6878_s9, %s6878_s9 }
  0x38   :  { %v212_v7 = vld [vmem:[#allocation5 + $0x340] sm:$0xff]  ;;  %4717 = vmatpush1.bf16.msra.mxu0 %v6131_v5  ;;  %v6954_v53 = vsub.s32 %v74_v43, %v6951_v44 }
  0x39   :  { %v6116_v10 = vcombine.high %v204_v6, %v212_v7  ;;  %v460_v11 = vld [vmem:[#allocation5 + $0xb00] sm:$0xff]  ;;  %4757 = vmatprep.subr.bf16.mxu1 %v6388_v8  ;;  %v6115_v18 = vcombine.low %v204_v6, %v212_v7  ;;  %p6885_p9 = por %p6884_p8, %p6883_p7 }
  0x3a   :  { %v468_v12 = vld [vmem:[#allocation5 + $0xb40] sm:$0xff]  ;;  %4758 = vmatpush1.bf16.msra.mxu1 %v6387_v9  ;;  %v6957_v63 = vrot.slane %v67_v59, %v6954_v53  ;;  %v6962_v5 = vrot.slane %v71_v0, %v6954_v53 }
  0x3b   :  { %v188_v13 = vld [vmem:[#allocation5 + $0x280] sm:$0xff]  ;;  %v6372_v14 = vcombine.high %v460_v11, %v468_v12  ;;  %4718 = vmatprep.subr.bf16.mxu0 %v6116_v10  ;;  %v6371_v19 = vcombine.low %v460_v11, %v468_v12  ;;  %p6886_p10 = pnand %p6885_p9, %p6879_p6 }
  0x3c   :  { %v196_v15 = vld [vmem:[#allocation5 + $0x2c0] sm:$0xff]  ;;  %4719 = vmatpush1.bf16.msra.mxu0 %v6115_v18  ;;  %v86_v4 = vcombine.high %v6957_v63, %v6957_v63  ;;  %v87_v12 = vcombine.high %v6962_v5, %v6962_v5 }
  0x3d   :  { %v444_v16 = vld [vmem:[#allocation5 + $0xa80] sm:$0xff]  ;;  %v6100_v20 = vcombine.high %v188_v13, %v196_v15  ;;  %4759 = vmatprep.subr.bf16.mxu1 %v6372_v14  ;;  %v6099_v26 = vcombine.low %v188_v13, %v196_v15 }
  0x3e   :  { %v452_v17 = vld [vmem:[#allocation5 + $0xac0] sm:$0xff]  ;;  %4760 = vmatpush1.bf16.msra.mxu1 %v6371_v19  ;;  %v6964_v11 = vpack.c.bf16 %v86_v4, %v86_v4 }
  0x3f   :  { %v6356_v21 = vcombine.high %v444_v16, %v452_v17  ;;  %v172_v22 = vld [vmem:[#allocation5 + $0x200] sm:$0xff]  ;;  %4720 = vmatprep.subr.bf16.mxu0 %v6100_v20  ;;  %v6355_v27 = vcombine.low %v444_v16, %v452_v17  ;;  %v6969_v16 = vpack.c.bf16 %v87_v12, %v87_v12 }
  0x40   :  { %v180_v23 = vld [vmem:[#allocation5 + $0x240] sm:$0xff]  ;;  %4721 = vmatpush1.bf16.msra.mxu0 %v6099_v26  ;;  %4748 = vmatprep.mubr.bf16.mxu0 %v6964_v11 }
  0x41   :  { %v428_v24 = vld [vmem:[#allocation5 + $0xa00] sm:$0xff]  ;;  %v6084_v28 = vcombine.high %v172_v22, %v180_v23  ;;  %4761 = vmatprep.subr.bf16.mxu1 %v6356_v21  ;;  %v6083_v37 = vcombine.low %v172_v22, %v180_v23  ;;  %4789 = vmatprep.mubr.bf16.mxu1 %v6969_v16 }
  0x42   :  { %v436_v25 = vld [vmem:[#allocation5 + $0xa40] sm:$0xff]  ;;  %4762 = vmatpush1.bf16.msra.mxu1 %v6355_v27 }
  0x43   :  { %v6340_v29 = vcombine.high %v428_v24, %v436_v25  ;;  %v156_v30 = vld [vmem:[#allocation5 + $0x180] sm:$0xff]  ;;  %4722 = vmatprep.subr.bf16.mxu0 %v6084_v28  ;;  %v6339_v38 = vcombine.low %v428_v24, %v436_v25 }
  0x44   :  { %v164_v31 = vld [vmem:[#allocation5 + $0x1c0] sm:$0xff]  ;;  %4723 = vmatpush1.bf16.msra.mxu0 %v6083_v37 }
  0x45   :  { %v412_v35 = vld [vmem:[#allocation5 + $0x980] sm:$0xff]  ;;  %v6068_v39 = vcombine.high %v156_v30, %v164_v31  ;;  %4763 = vmatprep.subr.bf16.mxu1 %v6340_v29  ;;  %v6067_v47 = vcombine.low %v156_v30, %v164_v31 }
  0x46   :  { %v420_v36 = vld [vmem:[#allocation5 + $0x9c0] sm:$0xff]  ;;  %4764 = vmatpush1.bf16.msra.mxu1 %v6339_v38 }
  0x47   :  { %v6324_v40 = vcombine.high %v412_v35, %v420_v36  ;;  %v140_v41 = vld [vmem:[#allocation5 + $0x100] sm:$0xff]  ;;  %4724 = vmatprep.subr.bf16.mxu0 %v6068_v39  ;;  %v6323_v48 = vcombine.low %v412_v35, %v420_v36 }
  0x48   :  { %v148_v42 = vld [vmem:[#allocation5 + $0x140] sm:$0xff]  ;;  %4725 = vmatpush1.bf16.msra.mxu0 %v6067_v47 }
  0x49   :  { %v396_v45 = vld [vmem:[#allocation5 + $0x900] sm:$0xff]  ;;  %v6052_v49 = vcombine.high %v140_v41, %v148_v42  ;;  %4765 = vmatprep.subr.bf16.mxu1 %v6324_v40  ;;  %v6051_v56 = vcombine.low %v140_v41, %v148_v42 }
  0x4a   :  { %v404_v46 = vld [vmem:[#allocation5 + $0x940] sm:$0xff]  ;;  %4766 = vmatpush1.bf16.msra.mxu1 %v6323_v48 }
  0x4b   :  { %v6308_v50 = vcombine.high %v396_v45, %v404_v46  ;;  %v124_v51 = vld [vmem:[#allocation5 + $0x80] sm:$0xff]  ;;  %4726 = vmatprep.subr.bf16.mxu0 %v6052_v49  ;;  %v6307_v57 = vcombine.low %v396_v45, %v404_v46 }
  0x4c   :  { %v132_v52 = vld [vmem:[#allocation5 + $0xc0] sm:$0xff]  ;;  %4727 = vmatpush1.bf16.msra.mxu0 %v6051_v56 }
  0x4d   :  { %v380_v54 = vld [vmem:[#allocation5 + $0x880] sm:$0xff]  ;;  %v6036_v58 = vcombine.high %v124_v51, %v132_v52  ;;  %4767 = vmatprep.subr.bf16.mxu1 %v6308_v50  ;;  %v6035_v3 = vcombine.low %v124_v51, %v132_v52 }
  0x4e   :  { %v388_v55 = vld [vmem:[#allocation5 + $0x8c0] sm:$0xff]  ;;  %4768 = vmatpush1.bf16.msra.mxu1 %v6307_v57 }
  0x4f   :  { %v6292_v60 = vcombine.high %v380_v54, %v388_v55  ;;  %v108_v61 = vld [vmem:[#allocation5] sm:$0xff]  ;;  %4728 = vmatprep.subr.bf16.mxu0 %v6036_v58  ;;  %v6291_v6 = vcombine.low %v380_v54, %v388_v55 }
  0x50   :  { %v116_v62 = vld [vmem:[#allocation5 + $0x40] sm:$0xff]  ;;  %4729 = vmatpush1.bf16.msra.mxu0 %v6035_v3 }
  0x51   :  { %v364_v1 = vld [vmem:[#allocation5 + $0x800] sm:$0xff]  ;;  %v6020_v7 = vcombine.high %v108_v61, %v116_v62  ;;  %4769 = vmatprep.subr.bf16.mxu1 %v6292_v60  ;;  %v6019_v15 = vcombine.low %v108_v61, %v116_v62 }
  0x52   :  { %v372_v2 = vld [vmem:[#allocation5 + $0x840] sm:$0xff]  ;;  %4770 = vmatpush1.bf16.msra.mxu1 %v6291_v6 }
  0x53   :  { %v6276_v8 = vcombine.high %v364_v1, %v372_v2  ;;  %v348_v9 = vld [vmem:[#allocation5 + $0x780] sm:$0xff]  ;;  %4730 = vmatprep.subr.bf16.mxu0 %v6020_v7  ;;  %v6275_v17 = vcombine.low %v364_v1, %v372_v2 }
  0x54   :  { %v356_v10 = vld [vmem:[#allocation5 + $0x7c0] sm:$0xff]  ;;  %4731 = vmatpush1.bf16.msra.mxu0 %v6019_v15 }
  0x55   :  { %v604_v13 = vld [vmem:[#allocation5 + $0xf80] sm:$0xff]  ;;  %v6260_v18 = vcombine.high %v348_v9, %v356_v10  ;;  %4771 = vmatprep.subr.bf16.mxu1 %v6276_v8  ;;  %v6259_v24 = vcombine.low %v348_v9, %v356_v10 }
  0x56   :  { %v612_v14 = vld [vmem:[#allocation5 + $0xfc0] sm:$0xff]  ;;  %4772 = vmatpush1.bf16.msra.mxu1 %v6275_v17 }
  0x57   :  { %v6516_v19 = vcombine.high %v604_v13, %v612_v14  ;;  %v332_v20 = vld [vmem:[#allocation5 + $0x700] sm:$0xff]  ;;  %4732 = vmatprep.subr.bf16.mxu0 %v6260_v18  ;;  %v6515_v25 = vcombine.low %v604_v13, %v612_v14 }
  0x58   :  { %v340_v21 = vld [vmem:[#allocation5 + $0x740] sm:$0xff]  ;;  %4733 = vmatpush2.bf16.msra.mxu0 %v6259_v24 }
  0x59   :  { %v588_v22 = vld [vmem:[#allocation5 + $0xf00] sm:$0xff]  ;;  %v6244_v26 = vcombine.high %v332_v20, %v340_v21  ;;  %4773 = vmatprep.subr.bf16.mxu1 %v6516_v19  ;;  %v6243_v32 = vcombine.low %v332_v20, %v340_v21  ;;  %v221_v20 = vld [vmem:[#allocation5 + $0x388] sm:$0xff] }
  0x5a   :  { %v596_v23 = vld [vmem:[#allocation5 + $0xf40] sm:$0xff]  ;;  %4774 = vmatpush2.bf16.msra.mxu1 %v6515_v25  ;;  %v229_v21 = vld [vmem:[#allocation5 + $0x3c8] sm:$0xff] }
  0x5b   :  { %v6500_v27 = vcombine.high %v588_v22, %v596_v23  ;;  %v316_v28 = vld [vmem:[#allocation5 + $0x680] sm:$0xff]  ;;  %4734 = vmatprep.subr.bf16.mxu0 %v6244_v26  ;;  %v6499_v33 = vcombine.low %v588_v22, %v596_v23  ;;  %v6972_v22 = vld.sshfl [vmem:[#allocation2 + $0x28] sm:$0x33 pattern:$0x76325410]  ;;  %v6134_v26 = vcombine.high %v221_v20, %v229_v21 }
  0x5c   :  { %v324_v29 = vld [vmem:[#allocation5 + $0x6c0] sm:$0xff]  ;;  %4735 = vmatpush2.bf16.msra.mxu0 %v6243_v32  ;;  %v213_v32 = vld [vmem:[#allocation5 + $0x348] sm:$0xff] }
  0x5d   :  { %v572_v30 = vld [vmem:[#allocation5 + $0xe80] sm:$0xff]  ;;  %v6228_v34 = vcombine.high %v316_v28, %v324_v29  ;;  %4775 = vmatprep.subr.bf16.mxu1 %v6500_v27  ;;  %v6227_v40 = vcombine.low %v316_v28, %v324_v29  ;;  %v95_v29 = vcombine.high %v6972_v22, %v6972_v22 }
  0x5e   :  { %v580_v31 = vld [vmem:[#allocation5 + $0xec0] sm:$0xff]  ;;  %4776 = vmatpush2.bf16.msra.mxu1 %v6499_v33  ;;  %v6982_v33 = vpack.c.bf16 %v6962_v5, %v6962_v5 }
  0x5f   :  { %v6484_v35 = vcombine.high %v572_v30, %v580_v31  ;;  %v300_v36 = vld [vmem:[#allocation5 + $0x600] sm:$0xff]  ;;  %4736 = vmatprep.subr.bf16.mxu0 %v6228_v34  ;;  %v6483_v41 = vcombine.low %v572_v30, %v580_v31  ;;  %v6978_v30 = vpack.c.bf16 %v6957_v63, %v6957_v63  ;;  %v205_v31 = vld [vmem:[#allocation5 + $0x308] sm:$0xff] }
  0x60   :  { %v308_v37 = vld [vmem:[#allocation5 + $0x640] sm:$0xff]  ;;  %4737 = vmatpush2.bf16.msra.mxu0 %v6227_v40  ;;  %v6984_v40 = vpack.c.bf16 %v95_v29, %v95_v29  ;;  %v189_v63 = vld [vmem:[#allocation5 + $0x288] sm:$0xff] }
  0x61   :  { %v556_v38 = vld [vmem:[#allocation5 + $0xe00] sm:$0xff]  ;;  %v6212_v42 = vcombine.high %v300_v36, %v308_v37  ;;  %4777 = vmatprep.subr.bf16.mxu1 %v6484_v35  ;;  %v6211_v49 = vcombine.low %v300_v36, %v308_v37  ;;  %v6133_v35 = vcombine.low %v221_v20, %v229_v21  ;;  %v6118_v37 = vcombine.high %v205_v31, %v213_v32  ;;  %v109_v21 = vld [vmem:[#allocation5 + $0x8] sm:$0xff] }
  0x62   :  { %v564_v39 = vld [vmem:[#allocation5 + $0xe40] sm:$0xff]  ;;  %4778 = vmatpush2.bf16.msra.mxu1 %v6483_v41  ;;  %v197_v41 = vld [vmem:[#allocation5 + $0x2c8] sm:$0xff] }
  0x63   :  { %v6468_v43 = vcombine.high %v556_v38, %v564_v39  ;;  %v284_v45 = vld [vmem:[#allocation5 + $0x580] sm:$0xff]  ;;  %4738 = vmatprep.subr.bf16.mxu0 %v6212_v42  ;;  %v6467_v50 = vcombine.low %v556_v38, %v564_v39  ;;  %v6117_v42 = vcombine.low %v205_v31, %v213_v32  ;;  %v349_v31 = vld [vmem:[#allocation5 + $0x788] sm:$0xff] }
  0x64   :  { %v292_v46 = vld [vmem:[#allocation5 + $0x5c0] sm:$0xff]  ;;  %4739 = vmatpush2.bf16.msra.mxu0 %v6211_v49  ;;  %v181_v49 = vld [vmem:[#allocation5 + $0x248] sm:$0xff] }
  0x65   :  { %v540_v47 = vld [vmem:[#allocation5 + $0xd80] sm:$0xff]  ;;  %v6196_v51 = vcombine.high %v284_v45, %v292_v46  ;;  %4779 = vmatprep.subr.bf16.mxu1 %v6468_v43  ;;  %v6195_v58 = vcombine.low %v284_v45, %v292_v46  ;;  %v6102_v45 = vcombine.high %v189_v63, %v197_v41  ;;  %v357_v32 = vld [vmem:[#allocation5 + $0x7c8] sm:$0xff] }
  0x66   :  { %v548_v48 = vld [vmem:[#allocation5 + $0xdc0] sm:$0xff]  ;;  %4780 = vmatpush2.bf16.msra.mxu1 %v6467_v50 }
  0x67   :  { %v6452_v52 = vcombine.high %v540_v47, %v548_v48  ;;  %v268_v54 = vld [vmem:[#allocation5 + $0x500] sm:$0xff]  ;;  %4740 = vmatprep.subr.bf16.mxu0 %v6196_v51  ;;  %v6451_v59 = vcombine.low %v540_v47, %v548_v48  ;;  %v173_v48 = vld [vmem:[#allocation5 + $0x208] sm:$0xff]  ;;  %v6101_v51 = vcombine.low %v189_v63, %v197_v41 }
  0x68   :  { %v276_v55 = vld [vmem:[#allocation5 + $0x540] sm:$0xff]  ;;  %4741 = vmatpush2.bf16.msra.mxu0 %v6195_v58  ;;  %v165_v58 = vld [vmem:[#allocation5 + $0x1c8] sm:$0xff] }
  0x69   :  { %v524_v56 = vld [vmem:[#allocation5 + $0xd00] sm:$0xff]  ;;  %v6180_v60 = vcombine.high %v268_v54, %v276_v55  ;;  %4781 = vmatprep.subr.bf16.mxu1 %v6452_v52  ;;  %v6179_v3 = vcombine.low %v268_v54, %v276_v55  ;;  %v6086_v54 = vcombine.high %v173_v48, %v181_v49  ;;  %v333_v63 = vld [vmem:[#allocation5 + $0x708] sm:$0xff] }
  0x6a   :  { %v532_v57 = vld [vmem:[#allocation5 + $0xd40] sm:$0xff]  ;;  %4782 = vmatpush2.bf16.msra.mxu1 %v6451_v59  ;;  %v341_v41 = vld [vmem:[#allocation5 + $0x748] sm:$0xff] }
  0x6b   :  { %v6436_v61 = vcombine.high %v524_v56, %v532_v57  ;;  %v252_v62 = vld [vmem:[#allocation5 + $0x480] sm:$0xff]  ;;  %4742 = vmatprep.subr.bf16.mxu0 %v6180_v60  ;;  %v6435_v4 = vcombine.low %v524_v56, %v532_v57  ;;  %v157_v57 = vld [vmem:[#allocation5 + $0x188] sm:$0xff]  ;;  %v6085_v60 = vcombine.low %v173_v48, %v181_v49 }
  0x6c   :  { %v260_v0 = vld [vmem:[#allocation5 + $0x4c0] sm:$0xff]  ;;  %4743 = vmatpush2.bf16.msra.mxu0 %v6179_v3  ;;  %v149_v3 = vld [vmem:[#allocation5 + $0x148] sm:$0xff] }
  0x6d   :  { %v508_v1 = vld [vmem:[#allocation5 + $0xc80] sm:$0xff]  ;;  %v6164_v6 = vcombine.high %v252_v62, %v260_v0  ;;  %4783 = vmatprep.subr.bf16.mxu1 %v6436_v61  ;;  %v6163_v13 = vcombine.low %v252_v62, %v260_v0  ;;  %v6070_v62 = vcombine.high %v157_v57, %v165_v58  ;;  %v317_v48 = vld [vmem:[#allocation5 + $0x688] sm:$0xff] }
  0x6e   :  { %v516_v2 = vld [vmem:[#allocation5 + $0xcc0] sm:$0xff]  ;;  %4784 = vmatpush2.bf16.msra.mxu1 %v6435_v4  ;;  %v325_v49 = vld [vmem:[#allocation5 + $0x6c8] sm:$0xff] }
  0x6f   :  { %v6420_v7 = vcombine.high %v508_v1, %v516_v2  ;;  %v236_v8 = vld [vmem:[#allocation5 + $0x400] sm:$0xff]  ;;  %4744 = vmatprep.subr.bf16.mxu0 %v6164_v6  ;;  %v6419_v14 = vcombine.low %v508_v1, %v516_v2  ;;  %v141_v2 = vld [vmem:[#allocation5 + $0x108] sm:$0xff]  ;;  %v6069_v6 = vcombine.low %v157_v57, %v165_v58 }
  0x70   :  { %v244_v9 = vld [vmem:[#allocation5 + $0x440] sm:$0xff]  ;;  %4745 = vmatpush2.bf16.msra.mxu0 %v6163_v13  ;;  %v133_v13 = vld [vmem:[#allocation5 + $0xc8] sm:$0xff] }
  0x71   :  { %v492_v10 = vld [vmem:[#allocation5 + $0xc00] sm:$0xff]  ;;  %v6148_v15 = vcombine.high %v236_v8, %v244_v9  ;;  %4785 = vmatprep.subr.bf16.mxu1 %v6420_v7  ;;  %v6147_v23 = vcombine.low %v236_v8, %v244_v9  ;;  %v6054_v8 = vcombine.high %v141_v2, %v149_v3  ;;  %v301_v57 = vld [vmem:[#allocation5 + $0x608] sm:$0xff] }
  0x72   :  { %v500_v12 = vld [vmem:[#allocation5 + $0xc40] sm:$0xff]  ;;  %4786 = vmatpush2.bf16.msra.mxu1 %v6419_v14  ;;  %v309_v58 = vld [vmem:[#allocation5 + $0x648] sm:$0xff] }
  0x73   :  { %v6404_v17 = vcombine.high %v492_v10, %v500_v12  ;;  %v732_v18 = vld [vmem:[#allocation5 + $0x1380] sm:$0xff]  ;;  %4746 = vmatprep.subr.bf16.mxu0 %v6148_v15  ;;  %v6403_v24 = vcombine.low %v492_v10, %v500_v12  ;;  %v125_v12 = vld [vmem:[#allocation5 + $0x88] sm:$0xff]  ;;  %v6053_v15 = vcombine.low %v141_v2, %v149_v3 }
  0x74   :  { %v740_v19 = vld [vmem:[#allocation5 + $0x13c0] sm:$0xff]  ;;  %4747 = vmatpush2.bf16.msra.mxu0 %v6147_v23  ;;  %v117_v23 = vld [vmem:[#allocation5 + $0x48] sm:$0xff] }
  0x75   :  { %v6644_v25 = vcombine.high %v732_v18, %v740_v19  ;;  %4787 = vmatprep.subr.bf16.mxu1 %v6404_v17  ;;  %v716_v27 = vld [vmem:[#allocation5 + $0x1300] sm:$0xff]  ;;  %v6643_v34 = vcombine.low %v732_v18, %v740_v19  ;;  %v6038_v18 = vcombine.high %v125_v12, %v133_v13  ;;  %v285_v2 = vld [vmem:[#allocation5 + $0x588] sm:$0xff] }
  0x76   :  { %v724_v28 = vld [vmem:[#allocation5 + $0x1340] sm:$0xff]  ;;  %4788 = vmatpush2.bf16.msra.mxu1 %v6403_v24  ;;  %v293_v3 = vld [vmem:[#allocation5 + $0x5c8] sm:$0xff] }
  0x77   :  { %4798 = vmatprep.subr.bf16.mxu0 %v6644_v25  ;;  %v6628_v36 = vcombine.high %v716_v27, %v724_v28  ;;  %4839 = vmatprep.subr.bf16.mxu1 %v6134_v26  ;;  %v700_v38 = vld [vmem:[#allocation5 + $0x1280] sm:$0xff]  ;;  %v6627_v5 = vcombine.low %v716_v27, %v724_v28  ;;  %v6037_v25 = vcombine.low %v125_v12, %v133_v13  ;;  %v269_v12 = vld [vmem:[#allocation5 + $0x508] sm:$0xff] }
  0x78   :  { %v708_v39 = vld [vmem:[#allocation5 + $0x12c0] sm:$0xff]  ;;  %4749 = vmatmul.mubr.bf16.vlgmr.msra.gmra.mxu0 %v6978_v30  ;;  %v6022_v27 = vcombine.high %v109_v21, %v117_v23  ;;  %v277_v13 = vld [vmem:[#allocation5 + $0x548] sm:$0xff] }
  0x79   :  { %4790 = vmatmul.mubr.bf16.vlgmr.msra.gmra.mxu1 %v6982_v33  ;;  %4799 = vmatpush1.bf16.msra.mxu0 %v6643_v34  ;;  %v6612_v43 = vcombine.high %v700_v38, %v708_v39  ;;  %v684_v46 = vld [vmem:[#allocation5 + $0x1200] sm:$0xff]  ;;  %v6611_v50 = vcombine.low %v700_v38, %v708_v39 }
  0x7a   :  { %4840 = vmatpush1.bf16.msra.mxu1 %v6133_v35  ;;  %4800 = vmatprep.subr.bf16.mxu0 %v6628_v36  ;;  %v692_v47 = vld [vmem:[#allocation5 + $0x1240] sm:$0xff]  ;;  %v6021_v35 = vcombine.low %v109_v21, %v117_v23  ;;  %v253_v21 = vld [vmem:[#allocation5 + $0x488] sm:$0xff] }
  0x7b   :  { %4841 = vmatprep.subr.bf16.mxu1 %v6118_v37  ;;  %4830 = vmatprep.mubr.bf16.mxu0 %v6984_v40  ;;  %v6596_v52 = vcombine.high %v684_v46, %v692_v47  ;;  %v668_v55 = vld [vmem:[#allocation5 + $0x1180] sm:$0xff]  ;;  %v6595_v59 = vcombine.low %v684_v46, %v692_v47  ;;  %v6262_v37 = vcombine.high %v349_v31, %v357_v32  ;;  %v261_v23 = vld [vmem:[#allocation5 + $0x4c8] sm:$0xff] }
  0x7c   :  { %4871 = vmatprep.mubr.bf16.mxu1 %v6964_v11  ;;  %v676_v56 = vld [vmem:[#allocation5 + $0x11c0] sm:$0xff] }
  0x7d   :  { %4801 = vmatpush1.bf16.msra.mxu0 %v6627_v5  ;;  %v6580_v61 = vcombine.high %v668_v55, %v676_v56  ;;  %v652_v0 = vld [vmem:[#allocation5 + $0x1100] sm:$0xff]  ;;  %v6579_v4 = vcombine.low %v668_v55, %v676_v56 }
  0x7e   :  { %4842 = vmatpush1.bf16.msra.mxu1 %v6117_v42  ;;  %4802 = vmatprep.subr.bf16.mxu0 %v6612_v43  ;;  %v660_v1 = vld [vmem:[#allocation5 + $0x1140] sm:$0xff]  ;;  %v6261_v42 = vcombine.low %v349_v31, %v357_v32  ;;  %v237_v31 = vld [vmem:[#allocation5 + $0x408] sm:$0xff] }
  0x7f   :  { %4843 = vmatprep.subr.bf16.mxu1 %v6102_v45  ;;  %v6564_v7 = vcombine.high %v652_v0, %v660_v1  ;;  %v636_v9 = vld [vmem:[#allocation5 + $0x1080] sm:$0xff]  ;;  %v6563_v14 = vcombine.low %v652_v0, %v660_v1  ;;  %v6246_v45 = vcombine.high %v333_v63, %v341_v41  ;;  %v245_v32 = vld [vmem:[#allocation5 + $0x448] sm:$0xff] }
  0x80   :  { %v644_v10 = vld [vmem:[#allocation5 + $0x10c0] sm:$0xff] }
  0x81   :  { %4803 = vmatpush1.bf16.msra.mxu0 %v6611_v50  ;;  %v6548_v17 = vcombine.high %v636_v9, %v644_v10  ;;  %v620_v19 = vld [vmem:[#allocation5 + $0x1000] sm:$0xff]  ;;  %v6547_v24 = vcombine.low %v636_v9, %v644_v10 }
  0x82   :  { %4844 = vmatpush1.bf16.msra.mxu1 %v6101_v51  ;;  %4804 = vmatprep.subr.bf16.mxu0 %v6596_v52  ;;  %v628_v20 = vld [vmem:[#allocation5 + $0x1040] sm:$0xff]  ;;  %v6245_v51 = vcombine.low %v333_v63, %v341_v41  ;;  %v733_v63 = vld [vmem:[#allocation5 + $0x1388] sm:$0xff] }
  0x83   :  { %4845 = vmatprep.subr.bf16.mxu1 %v6086_v54  ;;  %v6532_v26 = vcombine.high %v620_v19, %v628_v20  ;;  %v860_v28 = vld [vmem:[#allocation5 + $0x1780] sm:$0xff]  ;;  %v6531_v34 = vcombine.low %v620_v19, %v628_v20  ;;  %v6230_v54 = vcombine.high %v317_v48, %v325_v49  ;;  %v741_v41 = vld [vmem:[#allocation5 + $0x13c8] sm:$0xff] }
  0x84   :  { %v868_v29 = vld [vmem:[#allocation5 + $0x17c0] sm:$0xff] }
  0x85   :  { %4805 = vmatpush1.bf16.msra.mxu0 %v6595_v59  ;;  %v6772_v36 = vcombine.high %v860_v28, %v868_v29  ;;  %v844_v38 = vld [vmem:[#allocation5 + $0x1700] sm:$0xff]  ;;  %v6771_v5 = vcombine.low %v860_v28, %v868_v29 }
  0x86   :  { %4846 = vmatpush1.bf16.msra.mxu1 %v6085_v60  ;;  %4806 = vmatprep.subr.bf16.mxu0 %v6580_v61  ;;  %v852_v39 = vld [vmem:[#allocation5 + $0x1740] sm:$0xff]  ;;  %v6229_v60 = vcombine.low %v317_v48, %v325_v49  ;;  %v6992_v48 = vpack.c.bf16 %v6972_v22, %v6972_v22  ;;  %v717_v49 = vld [vmem:[#allocation5 + $0x1308] sm:$0xff] }
  0x87   :  { %4847 = vmatprep.subr.bf16.mxu1 %v6070_v62  ;;  %v6756_v43 = vcombine.high %v844_v38, %v852_v39  ;;  %v828_v46 = vld [vmem:[#allocation5 + $0x1680] sm:$0xff]  ;;  %v6755_v50 = vcombine.low %v844_v38, %v852_v39  ;;  %v6214_v62 = vcombine.high %v301_v57, %v309_v58  ;;  %v477_v38 = vld [vmem:[#allocation5 + $0xb88] sm:$0xff] }
  0x88   :  { %v836_v47 = vld [vmem:[#allocation5 + $0x16c0] sm:$0xff]  ;;  %v485_v39 = vld [vmem:[#allocation5 + $0xbc8] sm:$0xff] }
  0x89   :  { %4807 = vmatpush1.bf16.msra.mxu0 %v6579_v4  ;;  %v6740_v52 = vcombine.high %v828_v46, %v836_v47  ;;  %v812_v55 = vld [vmem:[#allocation5 + $0x1600] sm:$0xff]  ;;  %v6739_v59 = vcombine.low %v828_v46, %v836_v47  ;;  %v461_v46 = vld [vmem:[#allocation5 + $0xb08] sm:$0xff] }
  0x8a   :  { %4848 = vmatpush1.bf16.msra.mxu1 %v6069_v6  ;;  %4808 = vmatprep.subr.bf16.mxu0 %v6564_v7  ;;  %v820_v56 = vld [vmem:[#allocation5 + $0x1640] sm:$0xff]  ;;  %v6213_v6 = vcombine.low %v301_v57, %v309_v58  ;;  %v469_v47 = vld [vmem:[#allocation5 + $0xb48] sm:$0xff] }
  0x8b   :  { %4849 = vmatprep.subr.bf16.mxu1 %v6054_v8  ;;  %v6724_v61 = vcombine.high %v812_v55, %v820_v56  ;;  %v796_v0 = vld [vmem:[#allocation5 + $0x1580] sm:$0xff]  ;;  %v6723_v4 = vcombine.low %v812_v55, %v820_v56  ;;  %v6198_v8 = vcombine.high %v285_v2, %v293_v3  ;;  %v445_v56 = vld [vmem:[#allocation5 + $0xa88] sm:$0xff]  ;;  %v6373_v22 = vcombine.low %v461_v46, %v469_v47 }
  0x8c   :  { %v804_v1 = vld [vmem:[#allocation5 + $0x15c0] sm:$0xff]  ;;  %v453_v57 = vld [vmem:[#allocation5 + $0xac8] sm:$0xff] }
  0x8d   :  { %4809 = vmatpush1.bf16.msra.mxu0 %v6563_v14  ;;  %v6708_v7 = vcombine.high %v796_v0, %v804_v1  ;;  %v780_v9 = vld [vmem:[#allocation5 + $0x1500] sm:$0xff]  ;;  %v6707_v14 = vcombine.low %v796_v0, %v804_v1  ;;  %v701_v58 = vld [vmem:[#allocation5 + $0x1288] sm:$0xff] }
  0x8e   :  { %4850 = vmatpush1.bf16.msra.mxu1 %v6053_v15  ;;  %4810 = vmatprep.subr.bf16.mxu0 %v6548_v17  ;;  %v788_v10 = vld [vmem:[#allocation5 + $0x1540] sm:$0xff]  ;;  %v6197_v15 = vcombine.low %v285_v2, %v293_v3  ;;  %v429_v0 = vld [vmem:[#allocation5 + $0xa08] sm:$0xff] }
  0x8f   :  { %4851 = vmatprep.subr.bf16.mxu1 %v6038_v18  ;;  %v6692_v17 = vcombine.high %v780_v9, %v788_v10  ;;  %v6182_v18 = vcombine.high %v269_v12, %v277_v13  ;;  %v764_v19 = vld [vmem:[#allocation5 + $0x1480] sm:$0xff]  ;;  %v437_v1 = vld [vmem:[#allocation5 + $0xa48] sm:$0xff] }
  0x90   :  { %v772_v20 = vld [vmem:[#allocation5 + $0x14c0] sm:$0xff]  ;;  %v685_v2 = vld [vmem:[#allocation5 + $0x1208] sm:$0xff] }
  0x91   :  { %4811 = vmatpush1.bf16.msra.mxu0 %v6547_v24  ;;  %v6691_v24 = vcombine.low %v780_v9, %v788_v10  ;;  %v748_v28 = vld [vmem:[#allocation5 + $0x1400] sm:$0xff]  ;;  %v693_v3 = vld [vmem:[#allocation5 + $0x1248] sm:$0xff] }
  0x92   :  { %4852 = vmatpush1.bf16.msra.mxu1 %v6037_v25  ;;  %4812 = vmatprep.subr.bf16.mxu0 %v6532_v26  ;;  %v6181_v25 = vcombine.low %v269_v12, %v277_v13  ;;  %v6676_v26 = vcombine.high %v764_v19, %v772_v20  ;;  %v756_v29 = vld [vmem:[#allocation5 + $0x1440] sm:$0xff]  ;;  %v413_v9 = vld [vmem:[#allocation5 + $0x988] sm:$0xff] }
  0x93   :  { %4853 = vmatprep.subr.bf16.mxu1 %v6022_v27  ;;  %v6166_v27 = vcombine.high %v253_v21, %v261_v23  ;;  %v421_v10 = vld [vmem:[#allocation5 + $0x9c8] sm:$0xff] }
  0x94   :  { %v669_v12 = vld [vmem:[#allocation5 + $0x1188] sm:$0xff] }
  0x95   :  { %4813 = vmatpush1.bf16.msra.mxu0 %v6531_v34  ;;  %v6675_v34 = vcombine.low %v764_v19, %v772_v20  ;;  %v677_v13 = vld [vmem:[#allocation5 + $0x11c8] sm:$0xff] }
  0x96   :  { %4854 = vmatpush1.bf16.msra.mxu1 %v6021_v35  ;;  %4814 = vmatprep.subr.bf16.mxu0 %v6772_v36  ;;  %v6165_v35 = vcombine.low %v253_v21, %v261_v23  ;;  %v6660_v36 = vcombine.high %v748_v28, %v756_v29  ;;  %v397_v19 = vld [vmem:[#allocation5 + $0x908] sm:$0xff] }
  0x97   :  { %4855 = vmatprep.subr.bf16.mxu1 %v6262_v37  ;;  %v6150_v37 = vcombine.high %v237_v31, %v245_v32  ;;  %v405_v20 = vld [vmem:[#allocation5 + $0x948] sm:$0xff] }
  0x98   :  { %v653_v21 = vld [vmem:[#allocation5 + $0x1108] sm:$0xff] }
  0x99   :  { %4815 = vmatpush2.bf16.msra.mxu0 %v6771_v5  ;;  %v6659_v5 = vcombine.low %v748_v28, %v756_v29  ;;  %v661_v23 = vld [vmem:[#allocation5 + $0x1148] sm:$0xff] }
  0x9a   :  { %4856 = vmatpush2.bf16.msra.mxu1 %v6261_v42  ;;  %4816 = vmatprep.subr.bf16.mxu0 %v6756_v43  ;;  %v6149_v42 = vcombine.low %v237_v31, %v245_v32  ;;  %v6390_v43 = vcombine.high %v477_v38, %v485_v39  ;;  %v381_v28 = vld [vmem:[#allocation5 + $0x888] sm:$0xff] }
  0x9b   :  { %4857 = vmatprep.subr.bf16.mxu1 %v6246_v45  ;;  %v6646_v45 = vcombine.high %v733_v63, %v741_v41  ;;  %v389_v29 = vld [vmem:[#allocation5 + $0x8c8] sm:$0xff] }
  0x9c   :  { %v637_v31 = vld [vmem:[#allocation5 + $0x1088] sm:$0xff] }
  0x9d   :  { %4817 = vmatpush2.bf16.msra.mxu0 %v6755_v50  ;;  %v725_v50 = vld [vmem:[#allocation5 + $0x1348] sm:$0xff] }
  0x9e   :  { %4858 = vmatpush2.bf16.msra.mxu1 %v6245_v51  ;;  %4818 = vmatprep.subr.bf16.mxu0 %v6740_v52  ;;  %v6389_v51 = vcombine.low %v477_v38, %v485_v39  ;;  %v6645_v52 = vcombine.low %v733_v63, %v741_v41  ;;  %v6630_v55 = vcombine.high %v717_v49, %v725_v50  ;;  %v645_v32 = vld [vmem:[#allocation5 + $0x10c8] sm:$0xff] }
  0x9f   :  { %4859 = vmatprep.subr.bf16.mxu1 %v6230_v54  ;;  %v6374_v54 = vcombine.high %v461_v46, %v469_v47  ;;  %v365_v38 = vld [vmem:[#allocation5 + $0x808] sm:$0xff] }
  0xa0   :  { %v373_v39 = vld [vmem:[#allocation5 + $0x848] sm:$0xff] }
  0xa1   :  { %4819 = vmatpush2.bf16.msra.mxu0 %v6739_v59  ;;  %v709_v59 = vld [vmem:[#allocation5 + $0x12c8] sm:$0xff] }
  0xa2   :  { %4860 = vmatpush2.bf16.msra.mxu1 %v6229_v60  ;;  %4820 = vmatprep.subr.bf16.mxu0 %v6724_v61  ;;  %v6629_v60 = vcombine.low %v717_v49, %v725_v50  ;;  %v6358_v61 = vcombine.high %v445_v56, %v453_v57  ;;  %v621_v63 = vld [vmem:[#allocation5 + $0x1008] sm:$0xff] }
  0xa3   :  { %4861 = vmatprep.subr.bf16.mxu1 %v6214_v62  ;;  %v6614_v62 = vcombine.high %v701_v58, %v709_v59  ;;  %v629_v41 = vld [vmem:[#allocation5 + $0x1048] sm:$0xff] }
  0xa4   :  { %v605_v46 = vld [vmem:[#allocation5 + $0xf88] sm:$0xff] }
  0xa5   :  { %4821 = vmatpush2.bf16.msra.mxu0 %v6723_v4  ;;  %v6357_v4 = vcombine.low %v445_v56, %v453_v57  ;;  %v613_v47 = vld [vmem:[#allocation5 + $0xfc8] sm:$0xff] }
  0xa6   :  { %4862 = vmatpush2.bf16.msra.mxu1 %v6213_v6  ;;  %4822 = vmatprep.subr.bf16.mxu0 %v6708_v7  ;;  %v6613_v6 = vcombine.low %v701_v58, %v709_v59  ;;  %v6342_v7 = vcombine.high %v429_v0, %v437_v1  ;;  %v861_v49 = vld [vmem:[#allocation5 + $0x1788] sm:$0xff] }
  0xa7   :  { %4863 = vmatprep.subr.bf16.mxu1 %v6198_v8  ;;  %v6598_v8 = vcombine.high %v685_v2, %v693_v3  ;;  %v869_v50 = vld [vmem:[#allocation5 + $0x17c8] sm:$0xff] }
  0xa8   :  { %v589_v56 = vld [vmem:[#allocation5 + $0xf08] sm:$0xff] }
  0xa9   :  { %4823 = vmatpush2.bf16.msra.mxu0 %v6707_v14  ;;  %v6341_v14 = vcombine.low %v429_v0, %v437_v1  ;;  %v597_v57 = vld [vmem:[#allocation5 + $0xf48] sm:$0xff] }
  0xaa   :  { %4864 = vmatpush2.bf16.msra.mxu1 %v6197_v15  ;;  %4824 = vmatprep.subr.bf16.mxu0 %v6692_v17  ;;  %v6597_v15 = vcombine.low %v685_v2, %v693_v3  ;;  %v6326_v17 = vcombine.high %v413_v9, %v421_v10  ;;  %v845_v58 = vld [vmem:[#allocation5 + $0x1708] sm:$0xff] }
  0xab   :  { %4865 = vmatprep.subr.bf16.mxu1 %v6182_v18  ;;  %v6582_v18 = vcombine.high %v669_v12, %v677_v13  ;;  %v853_v59 = vld [vmem:[#allocation5 + $0x1748] sm:$0xff] }
  0xac   :  { %v573_v0 = vld [vmem:[#allocation5 + $0xe88] sm:$0xff] }
  0xad   :  { %4825 = vmatpush2.bf16.msra.mxu0 %v6691_v24  ;;  %v6325_v24 = vcombine.low %v413_v9, %v421_v10  ;;  %v581_v1 = vld [vmem:[#allocation5 + $0xec8] sm:$0xff] }
  0xae   :  { %4866 = vmatpush2.bf16.msra.mxu1 %v6181_v25  ;;  %4826 = vmatprep.subr.bf16.mxu0 %v6676_v26  ;;  %v6581_v25 = vcombine.low %v669_v12, %v677_v13  ;;  %v6310_v26 = vcombine.high %v397_v19, %v405_v20  ;;  %v829_v2 = vld [vmem:[#allocation5 + $0x1688] sm:$0xff] }
  0xaf   :  { %4867 = vmatprep.subr.bf16.mxu1 %v6166_v27  ;;  %v6566_v27 = vcombine.high %v653_v21, %v661_v23  ;;  %v837_v3 = vld [vmem:[#allocation5 + $0x16c8] sm:$0xff] }
  0xb0   :  { %v557_v9 = vld [vmem:[#allocation5 + $0xe08] sm:$0xff] }
  0xb1   :  { %4827 = vmatpush2.bf16.msra.mxu0 %v6675_v34  ;;  %v6309_v34 = vcombine.low %v397_v19, %v405_v20  ;;  %v565_v10 = vld [vmem:[#allocation5 + $0xe48] sm:$0xff] }
  0xb2   :  { %4868 = vmatpush2.bf16.msra.mxu1 %v6165_v35  ;;  %4828 = vmatprep.subr.bf16.mxu0 %v6660_v36  ;;  %v6565_v35 = vcombine.low %v653_v21, %v661_v23  ;;  %v6294_v36 = vcombine.high %v381_v28, %v389_v29  ;;  %v813_v12 = vld [vmem:[#allocation5 + $0x1608] sm:$0xff] }
  0xb3   :  { %4869 = vmatprep.subr.bf16.mxu1 %v6150_v37  ;;  %v6550_v37 = vcombine.high %v637_v31, %v645_v32  ;;  %v821_v13 = vld [vmem:[#allocation5 + $0x1648] sm:$0xff] }
  0xb4   :  { %v541_v19 = vld [vmem:[#allocation5 + $0xd88] sm:$0xff] }
  0xb5   :  { %4829 = vmatpush2.bf16.msra.mxu0 %v6659_v5  ;;  %v6293_v5 = vcombine.low %v381_v28, %v389_v29  ;;  %v549_v20 = vld [vmem:[#allocation5 + $0xdc8] sm:$0xff] }
  0xb6   :  { %4870 = vmatpush2.bf16.msra.mxu1 %v6149_v42  ;;  %4880 = vmatprep.subr.bf16.mxu0 %v6390_v43  ;;  %v6549_v42 = vcombine.low %v637_v31, %v645_v32  ;;  %v6278_v43 = vcombine.high %v365_v38, %v373_v39  ;;  %v797_v21 = vld [vmem:[#allocation5 + $0x1588] sm:$0xff] }
  0xb7   :  { %4921 = vmatprep.subr.bf16.mxu1 %v6646_v45  ;;  %v6534_v45 = vcombine.high %v621_v63, %v629_v41  ;;  %v805_v23 = vld [vmem:[#allocation5 + $0x15c8] sm:$0xff] }
  0xb8   :  { %4831 = vmatmul.mubr.bf16.vlgmr.msra.gmra.mxu0 %v6992_v48  ;;  %v525_v28 = vld [vmem:[#allocation5 + $0xd08] sm:$0xff] }
  0xb9   :  { %4872 = vmatmul.mubr.bf16.vlgmr.msra.gmra.mxu1 %v6978_v30  ;;  %4881 = vmatpush1.bf16.msra.mxu0 %v6389_v51  ;;  %v6277_v51 = vcombine.low %v365_v38, %v373_v39  ;;  %v533_v29 = vld [vmem:[#allocation5 + $0xd48] sm:$0xff] }
  0xba   :  { %4922 = vmatpush1.bf16.msra.mxu1 %v6645_v52  ;;  %4882 = vmatprep.subr.bf16.mxu0 %v6374_v54  ;;  %v6533_v52 = vcombine.low %v621_v63, %v629_v41  ;;  %v6518_v54 = vcombine.high %v605_v46, %v613_v47  ;;  %v781_v31 = vld [vmem:[#allocation5 + $0x1508] sm:$0xff] }
  0xbb   :  { %4923 = vmatprep.subr.bf16.mxu1 %v6630_v55  ;;  %4912 = vmatprep.mubr.bf16.mxu0 %v6969_v16  ;;  %v6774_v55 = vcombine.high %v861_v49, %v869_v50  ;;  %v789_v32 = vld [vmem:[#allocation5 + $0x1548] sm:$0xff] }
  0xbc   :  { %4953 = vmatprep.mubr.bf16.mxu1 %v6984_v40  ;;  %v509_v38 = vld [vmem:[#allocation5 + $0xc88] sm:$0xff] }
  0xbd   :  { %4883 = vmatpush1.bf16.msra.mxu0 %v6373_v22  ;;  %v6517_v22 = vcombine.low %v605_v46, %v613_v47  ;;  %v517_v39 = vld [vmem:[#allocation5 + $0xcc8] sm:$0xff] }
  0xbe   :  { %4924 = vmatpush1.bf16.msra.mxu1 %v6629_v60  ;;  %4884 = vmatprep.subr.bf16.mxu0 %v6358_v61  ;;  %v6773_v60 = vcombine.low %v861_v49, %v869_v50  ;;  %v6502_v61 = vcombine.high %v589_v56, %v597_v57  ;;  %v765_v63 = vld [vmem:[#allocation5 + $0x1488] sm:$0xff] }
  0xbf   :  { %4925 = vmatprep.subr.bf16.mxu1 %v6614_v62  ;;  %v6758_v62 = vcombine.high %v845_v58, %v853_v59  ;;  %v773_v41 = vld [vmem:[#allocation5 + $0x14c8] sm:$0xff] }
  0xc0   :  { %v493_v46 = vld [vmem:[#allocation5 + $0xc08] sm:$0xff] }
  0xc1   :  { %4885 = vmatpush1.bf16.msra.mxu0 %v6357_v4  ;;  %v6501_v4 = vcombine.low %v589_v56, %v597_v57  ;;  %v501_v47 = vld [vmem:[#allocation5 + $0xc48] sm:$0xff]  ;;  %v222_v56 = vld [vmem:[#allocation5 + $0x390] sm:$0xff] }
  0xc2   :  { %4926 = vmatpush1.bf16.msra.mxu1 %v6613_v6  ;;  %4886 = vmatprep.subr.bf16.mxu0 %v6342_v7  ;;  %v6757_v6 = vcombine.low %v845_v58, %v853_v59  ;;  %v6486_v7 = vcombine.high %v573_v0, %v581_v1  ;;  %v749_v49 = vld [vmem:[#allocation5 + $0x1408] sm:$0xff]  ;;  %v230_v57 = vld [vmem:[#allocation5 + $0x3d0] sm:$0xff] }
  0xc3   :  { %4927 = vmatprep.subr.bf16.mxu1 %v6598_v8  ;;  %v6742_v8 = vcombine.high %v829_v2, %v837_v3  ;;  %v757_v50 = vld [vmem:[#allocation5 + $0x1448] sm:$0xff]  ;;  %v478_v58 = vld [vmem:[#allocation5 + $0xb90] sm:$0xff] }
  0xc4   :  { %v486_v59 = vld [vmem:[#allocation5 + $0xbd0] sm:$0xff] }
  0xc5   :  { %4887 = vmatpush1.bf16.msra.mxu0 %v6341_v14  ;;  %v6485_v14 = vcombine.low %v573_v0, %v581_v1  ;;  %v206_v0 = vld [vmem:[#allocation5 + $0x310] sm:$0xff] }
  0xc6   :  { %4928 = vmatpush1.bf16.msra.mxu1 %v6597_v15  ;;  %4888 = vmatprep.subr.bf16.mxu0 %v6326_v17  ;;  %v6741_v15 = vcombine.low %v829_v2, %v837_v3  ;;  %v6470_v17 = vcombine.high %v557_v9, %v565_v10  ;;  %v214_v1 = vld [vmem:[#allocation5 + $0x350] sm:$0xff] }
  0xc7   :  { %4929 = vmatprep.subr.bf16.mxu1 %v6582_v18  ;;  %v6726_v18 = vcombine.high %v813_v12, %v821_v13  ;;  %v462_v2 = vld [vmem:[#allocation5 + $0xb10] sm:$0xff] }
  0xc8   :  { %v470_v3 = vld [vmem:[#allocation5 + $0xb50] sm:$0xff] }
  0xc9   :  { %4889 = vmatpush1.bf16.msra.mxu0 %v6325_v24  ;;  %v6469_v24 = vcombine.low %v557_v9, %v565_v10  ;;  %v190_v9 = vld [vmem:[#allocation5 + $0x290] sm:$0xff] }
  0xca   :  { %4930 = vmatpush1.bf16.msra.mxu1 %v6581_v25  ;;  %4890 = vmatprep.subr.bf16.mxu0 %v6310_v26  ;;  %v6725_v25 = vcombine.low %v813_v12, %v821_v13  ;;  %v6454_v26 = vcombine.high %v541_v19, %v549_v20  ;;  %v198_v10 = vld [vmem:[#allocation5 + $0x2d0] sm:$0xff] }
  0xcb   :  { %4931 = vmatprep.subr.bf16.mxu1 %v6566_v27  ;;  %v6710_v27 = vcombine.high %v797_v21, %v805_v23  ;;  %v446_v12 = vld [vmem:[#allocation5 + $0xa90] sm:$0xff] }
  0xcc   :  { %v454_v13 = vld [vmem:[#allocation5 + $0xad0] sm:$0xff] }
  0xcd   :  { %4891 = vmatpush1.bf16.msra.mxu0 %v6309_v34  ;;  %v6453_v34 = vcombine.low %v541_v19, %v549_v20  ;;  %v174_v19 = vld [vmem:[#allocation5 + $0x210] sm:$0xff] }
  0xce   :  { %4932 = vmatpush1.bf16.msra.mxu1 %v6565_v35  ;;  %4892 = vmatprep.subr.bf16.mxu0 %v6294_v36  ;;  %v6709_v35 = vcombine.low %v797_v21, %v805_v23  ;;  %v6438_v36 = vcombine.high %v525_v28, %v533_v29  ;;  %v182_v20 = vld [vmem:[#allocation5 + $0x250] sm:$0xff] }
  0xcf   :  { %4933 = vmatprep.subr.bf16.mxu1 %v6550_v37  ;;  %v6694_v37 = vcombine.high %v781_v31, %v789_v32  ;;  %v430_v21 = vld [vmem:[#allocation5 + $0xa10] sm:$0xff] }
  0xd0   :  { %v438_v23 = vld [vmem:[#allocation5 + $0xa50] sm:$0xff] }
  0xd1   :  { %4893 = vmatpush1.bf16.msra.mxu0 %v6293_v5  ;;  %v6437_v5 = vcombine.low %v525_v28, %v533_v29  ;;  %v158_v28 = vld [vmem:[#allocation5 + $0x190] sm:$0xff] }
  0xd2   :  { %4934 = vmatpush1.bf16.msra.mxu1 %v6549_v42  ;;  %4894 = vmatprep.subr.bf16.mxu0 %v6278_v43  ;;  %v6693_v42 = vcombine.low %v781_v31, %v789_v32  ;;  %v6422_v43 = vcombine.high %v509_v38, %v517_v39  ;;  %v166_v29 = vld [vmem:[#allocation5 + $0x1d0] sm:$0xff] }
  0xd3   :  { %4935 = vmatprep.subr.bf16.mxu1 %v6534_v45  ;;  %v6678_v45 = vcombine.high %v765_v63, %v773_v41  ;;  %v414_v31 = vld [vmem:[#allocation5 + $0x990] sm:$0xff] }
  0xd4   :  { %v422_v32 = vld [vmem:[#allocation5 + $0x9d0] sm:$0xff] }
  0xd5   :  { %4895 = vmatpush1.bf16.msra.mxu0 %v6277_v51  ;;  %v6421_v51 = vcombine.low %v509_v38, %v517_v39  ;;  %v142_v38 = vld [vmem:[#allocation5 + $0x110] sm:$0xff] }
  0xd6   :  { %4936 = vmatpush1.bf16.msra.mxu1 %v6533_v52  ;;  %4896 = vmatprep.subr.bf16.mxu0 %v6518_v54  ;;  %v6677_v52 = vcombine.low %v765_v63, %v773_v41  ;;  %v6406_v54 = vcombine.high %v493_v46, %v501_v47  ;;  %v150_v39 = vld [vmem:[#allocation5 + $0x150] sm:$0xff] }
  0xd7   :  { %4937 = vmatprep.subr.bf16.mxu1 %v6774_v55  ;;  %v6662_v55 = vcombine.high %v749_v49, %v757_v50  ;;  %v398_v63 = vld [vmem:[#allocation5 + $0x910] sm:$0xff] }
  0xd8   :  { %v406_v41 = vld [vmem:[#allocation5 + $0x950] sm:$0xff] }
  0xd9   :  { %4897 = vmatpush2.bf16.msra.mxu0 %v6517_v22  ;;  %v6405_v22 = vcombine.low %v493_v46, %v501_v47  ;;  %v126_v46 = vld [vmem:[#allocation5 + $0x90] sm:$0xff] }
  0xda   :  { %4938 = vmatpush2.bf16.msra.mxu1 %v6773_v60  ;;  %4898 = vmatprep.subr.bf16.mxu0 %v6502_v61  ;;  %v6661_v60 = vcombine.low %v749_v49, %v757_v50  ;;  %v6136_v61 = vcombine.high %v222_v56, %v230_v57  ;;  %v134_v47 = vld [vmem:[#allocation5 + $0xd0] sm:$0xff] }
  0xdb   :  { %4939 = vmatprep.subr.bf16.mxu1 %v6758_v62  ;;  %v6392_v62 = vcombine.high %v478_v58, %v486_v59  ;;  %v382_v49 = vld [vmem:[#allocation5 + $0x890] sm:$0xff] }
  0xdc   :  { %v390_v50 = vld [vmem:[#allocation5 + $0x8d0] sm:$0xff] }
  0xdd   :  { %4899 = vmatpush2.bf16.msra.mxu0 %v6501_v4  ;;  %v6135_v4 = vcombine.low %v222_v56, %v230_v57  ;;  %v110_v56 = vld [vmem:[#allocation5 + $0x10] sm:$0xff] }
  0xde   :  { %4940 = vmatpush2.bf16.msra.mxu1 %v6757_v6  ;;  %4900 = vmatprep.subr.bf16.mxu0 %v6486_v7  ;;  %v6391_v6 = vcombine.low %v478_v58, %v486_v59  ;;  %v6120_v7 = vcombine.high %v206_v0, %v214_v1  ;;  %v118_v57 = vld [vmem:[#allocation5 + $0x50] sm:$0xff] }
  0xdf   :  { %4941 = vmatprep.subr.bf16.mxu1 %v6742_v8  ;;  %v6376_v8 = vcombine.high %v462_v2, %v470_v3  ;;  %v366_v58 = vld [vmem:[#allocation5 + $0x810] sm:$0xff] }
  0xe0   :  { %v374_v59 = vld [vmem:[#allocation5 + $0x850] sm:$0xff] }
  0xe1   :  { %4901 = vmatpush2.bf16.msra.mxu0 %v6485_v14  ;;  %v6119_v14 = vcombine.low %v206_v0, %v214_v1  ;;  %v350_v0 = vld [vmem:[#allocation5 + $0x790] sm:$0xff] }
  0xe2   :  { %4942 = vmatpush2.bf16.msra.mxu1 %v6741_v15  ;;  %4902 = vmatprep.subr.bf16.mxu0 %v6470_v17  ;;  %v6375_v15 = vcombine.low %v462_v2, %v470_v3  ;;  %v6104_v17 = vcombine.high %v190_v9, %v198_v10  ;;  %v358_v1 = vld [vmem:[#allocation5 + $0x7d0] sm:$0xff] }
  0xe3   :  { %4943 = vmatprep.subr.bf16.mxu1 %v6726_v18  ;;  %v6360_v18 = vcombine.high %v446_v12, %v454_v13  ;;  %v606_v2 = vld [vmem:[#allocation5 + $0xf90] sm:$0xff] }
  0xe4   :  { %v614_v3 = vld [vmem:[#allocation5 + $0xfd0] sm:$0xff] }
  0xe5   :  { %4903 = vmatpush2.bf16.msra.mxu0 %v6469_v24  ;;  %v6103_v24 = vcombine.low %v190_v9, %v198_v10  ;;  %v334_v9 = vld [vmem:[#allocation5 + $0x710] sm:$0xff] }
  0xe6   :  { %4944 = vmatpush2.bf16.msra.mxu1 %v6725_v25  ;;  %4904 = vmatprep.subr.bf16.mxu0 %v6454_v26  ;;  %v6359_v25 = vcombine.low %v446_v12, %v454_v13  ;;  %v6088_v26 = vcombine.high %v174_v19, %v182_v20  ;;  %v342_v10 = vld [vmem:[#allocation5 + $0x750] sm:$0xff] }
  0xe7   :  { %4945 = vmatprep.subr.bf16.mxu1 %v6710_v27  ;;  %v6344_v27 = vcombine.high %v430_v21, %v438_v23  ;;  %v590_v12 = vld [vmem:[#allocation5 + $0xf10] sm:$0xff] }
  0xe8   :  { %v598_v13 = vld [vmem:[#allocation5 + $0xf50] sm:$0xff] }
  0xe9   :  { %4905 = vmatpush2.bf16.msra.mxu0 %v6453_v34  ;;  %v6087_v34 = vcombine.low %v174_v19, %v182_v20  ;;  %v318_v19 = vld [vmem:[#allocation5 + $0x690] sm:$0xff] }
  0xea   :  { %4946 = vmatpush2.bf16.msra.mxu1 %v6709_v35  ;;  %4906 = vmatprep.subr.bf16.mxu0 %v6438_v36  ;;  %v6343_v35 = vcombine.low %v430_v21, %v438_v23  ;;  %v6072_v36 = vcombine.high %v158_v28, %v166_v29  ;;  %v326_v20 = vld [vmem:[#allocation5 + $0x6d0] sm:$0xff] }
  0xeb   :  { %4947 = vmatprep.subr.bf16.mxu1 %v6694_v37  ;;  %v6328_v37 = vcombine.high %v414_v31, %v422_v32  ;;  %v574_v21 = vld [vmem:[#allocation5 + $0xe90] sm:$0xff] }
  0xec   :  { %v582_v23 = vld [vmem:[#allocation5 + $0xed0] sm:$0xff] }
  0xed   :  { %4907 = vmatpush2.bf16.msra.mxu0 %v6437_v5  ;;  %v6071_v5 = vcombine.low %v158_v28, %v166_v29  ;;  %v302_v28 = vld [vmem:[#allocation5 + $0x610] sm:$0xff] }
  0xee   :  { %4948 = vmatpush2.bf16.msra.mxu1 %v6693_v42  ;;  %4908 = vmatprep.subr.bf16.mxu0 %v6422_v43  ;;  %v6327_v42 = vcombine.low %v414_v31, %v422_v32  ;;  %v6056_v43 = vcombine.high %v142_v38, %v150_v39  ;;  %v310_v29 = vld [vmem:[#allocation5 + $0x650] sm:$0xff] }
  0xef   :  { %4949 = vmatprep.subr.bf16.mxu1 %v6678_v45  ;;  %v6312_v45 = vcombine.high %v398_v63, %v406_v41  ;;  %v558_v31 = vld [vmem:[#allocation5 + $0xe10] sm:$0xff] }
  0xf0   :  { %v566_v32 = vld [vmem:[#allocation5 + $0xe50] sm:$0xff] }
  0xf1   :  { %4909 = vmatpush2.bf16.msra.mxu0 %v6421_v51  ;;  %v6055_v51 = vcombine.low %v142_v38, %v150_v39  ;;  %v286_v38 = vld [vmem:[#allocation5 + $0x590] sm:$0xff] }
  0xf2   :  { %4950 = vmatpush2.bf16.msra.mxu1 %v6677_v52  ;;  %4910 = vmatprep.subr.bf16.mxu0 %v6406_v54  ;;  %v6311_v52 = vcombine.low %v398_v63, %v406_v41  ;;  %v6040_v54 = vcombine.high %v126_v46, %v134_v47  ;;  %v294_v39 = vld [vmem:[#allocation5 + $0x5d0] sm:$0xff] }
  0xf3   :  { %4951 = vmatprep.subr.bf16.mxu1 %v6662_v55  ;;  %v6296_v55 = vcombine.high %v382_v49, %v390_v50  ;;  %v542_v63 = vld [vmem:[#allocation5 + $0xd90] sm:$0xff] }
  0xf4   :  { %v550_v41 = vld [vmem:[#allocation5 + $0xdd0] sm:$0xff] }
  0xf5   :  { %4911 = vmatpush2.bf16.msra.mxu0 %v6405_v22  ;;  %v6039_v22 = vcombine.low %v126_v46, %v134_v47  ;;  %v270_v46 = vld [vmem:[#allocation5 + $0x510] sm:$0xff] }
  0xf6   :  { %4952 = vmatpush2.bf16.msra.mxu1 %v6661_v60  ;;  %4962 = vmatprep.subr.bf16.mxu0 %v6136_v61  ;;  %v6295_v60 = vcombine.low %v382_v49, %v390_v50  ;;  %v6024_v61 = vcombine.high %v110_v56, %v118_v57  ;;  %v278_v47 = vld [vmem:[#allocation5 + $0x550] sm:$0xff] }
  0xf7   :  { %5003 = vmatprep.subr.bf16.mxu1 %v6392_v62  ;;  %v6280_v62 = vcombine.high %v366_v58, %v374_v59  ;;  %v526_v49 = vld [vmem:[#allocation5 + $0xd10] sm:$0xff] }
  0xf8   :  { %4913 = vmatmul.mubr.bf16.vlgmr.msra.gmra.mxu0 %v6982_v33  ;;  %v534_v50 = vld [vmem:[#allocation5 + $0xd50] sm:$0xff] }
  0xf9   :  { %4954 = vmatmul.mubr.bf16.vlgmr.msra.gmra.mxu1 %v6992_v48  ;;  %4963 = vmatpush1.bf16.msra.mxu0 %v6135_v4  ;;  %v6023_v4 = vcombine.low %v110_v56, %v118_v57  ;;  %v254_v56 = vld [vmem:[#allocation5 + $0x490] sm:$0xff] }
  0xfa   :  { %5004 = vmatpush1.bf16.msra.mxu1 %v6391_v6  ;;  %4964 = vmatprep.subr.bf16.mxu0 %v6120_v7  ;;  %v6279_v6 = vcombine.low %v366_v58, %v374_v59  ;;  %v6264_v7 = vcombine.high %v350_v0, %v358_v1  ;;  %v262_v57 = vld [vmem:[#allocation5 + $0x4d0] sm:$0xff] }
  0xfb   :  { %5005 = vmatprep.subr.bf16.mxu1 %v6376_v8  ;;  %4994 = vmatprep.mubr.bf16.mxu0 %v6964_v11  ;;  %v6520_v8 = vcombine.high %v606_v2, %v614_v3  ;;  %v510_v58 = vld [vmem:[#allocation5 + $0xc90] sm:$0xff] }
  0xfc   :  { %5035 = vmatprep.mubr.bf16.mxu1 %v6969_v16  ;;  %v518_v59 = vld [vmem:[#allocation5 + $0xcd0] sm:$0xff] }
  0xfd   :  { %4965 = vmatpush1.bf16.msra.mxu0 %v6119_v14  ;;  %v6263_v14 = vcombine.low %v350_v0, %v358_v1  ;;  %v238_v0 = vld [vmem:[#allocation5 + $0x410] sm:$0xff] }
  0xfe   :  { %5006 = vmatpush1.bf16.msra.mxu1 %v6375_v15  ;;  %4966 = vmatprep.subr.bf16.mxu0 %v6104_v17  ;;  %v6519_v15 = vcombine.low %v606_v2, %v614_v3  ;;  %v6248_v17 = vcombine.high %v334_v9, %v342_v10  ;;  %v246_v1 = vld [vmem:[#allocation5 + $0x450] sm:$0xff] }
  0xff   :  { %5007 = vmatprep.subr.bf16.mxu1 %v6360_v18  ;;  %v6504_v18 = vcombine.high %v590_v12, %v598_v13  ;;  %v494_v2 = vld [vmem:[#allocation5 + $0xc10] sm:$0xff] }
 0x100   :  { %v502_v3 = vld [vmem:[#allocation5 + $0xc50] sm:$0xff] }
 0x101   :  { %4967 = vmatpush1.bf16.msra.mxu0 %v6103_v24  ;;  %v6247_v24 = vcombine.low %v334_v9, %v342_v10  ;;  %v734_v9 = vld [vmem:[#allocation5 + $0x1390] sm:$0xff] }
 0x102   :  { %5008 = vmatpush1.bf16.msra.mxu1 %v6359_v25  ;;  %4968 = vmatprep.subr.bf16.mxu0 %v6088_v26  ;;  %v6503_v25 = vcombine.low %v590_v12, %v598_v13  ;;  %v6232_v26 = vcombine.high %v318_v19, %v326_v20  ;;  %v742_v10 = vld [vmem:[#allocation5 + $0x13d0] sm:$0xff]  ;;  %v223_v12 = vld [vmem:[#allocation5 + $0x398] sm:$0xff] }
 0x103   :  { %5009 = vmatprep.subr.bf16.mxu1 %v6344_v27  ;;  %v6488_v27 = vcombine.high %v574_v21, %v582_v23  ;;  %v231_v13 = vld [vmem:[#allocation5 + $0x3d8] sm:$0xff] }
 0x105   :  { %4969 = vmatpush1.bf16.msra.mxu0 %v6087_v34  ;;  %v6231_v34 = vcombine.low %v318_v19, %v326_v20  ;;  %v718_v19 = vld [vmem:[#allocation5 + $0x1310] sm:$0xff] }
 0x106   :  { %5010 = vmatpush1.bf16.msra.mxu1 %v6343_v35  ;;  %4970 = vmatprep.subr.bf16.mxu0 %v6072_v36  ;;  %v6487_v35 = vcombine.low %v574_v21, %v582_v23  ;;  %v6216_v36 = vcombine.high %v302_v28, %v310_v29  ;;  %v726_v20 = vld [vmem:[#allocation5 + $0x1350] sm:$0xff]  ;;  %v207_v21 = vld [vmem:[#allocation5 + $0x318] sm:$0xff] }
 0x107   :  { %5011 = vmatprep.subr.bf16.mxu1 %v6328_v37  ;;  %v6472_v37 = vcombine.high %v558_v31, %v566_v32  ;;  %v215_v23 = vld [vmem:[#allocation5 + $0x358] sm:$0xff] }
 0x109   :  { %4971 = vmatpush1.bf16.msra.mxu0 %v6071_v5  ;;  %v6215_v5 = vcombine.low %v302_v28, %v310_v29  ;;  %v702_v28 = vld [vmem:[#allocation5 + $0x1290] sm:$0xff] }
 0x10a   :  { %5012 = vmatpush1.bf16.msra.mxu1 %v6327_v42  ;;  %4972 = vmatprep.subr.bf16.mxu0 %v6056_v43  ;;  %v6471_v42 = vcombine.low %v558_v31, %v566_v32  ;;  %v6200_v43 = vcombine.high %v286_v38, %v294_v39  ;;  %v710_v29 = vld [vmem:[#allocation5 + $0x12d0] sm:$0xff]  ;;  %v191_v32 = vld [vmem:[#allocation5 + $0x298] sm:$0xff] }
 0x10b   :  { %5013 = vmatprep.subr.bf16.mxu1 %v6312_v45  ;;  %v6456_v45 = vcombine.high %v542_v63, %v550_v41 }
 0x10d   :  { %4973 = vmatpush1.bf16.msra.mxu0 %v6055_v51  ;;  %v6199_v51 = vcombine.low %v286_v38, %v294_v39  ;;  %v6121_v39 = vcombine.low %v207_v21, %v215_v23 }
 0x10e   :  { %5014 = vmatpush1.bf16.msra.mxu1 %v6311_v52  ;;  %4974 = vmatprep.subr.bf16.mxu0 %v6040_v54  ;;  %v6455_v52 = vcombine.low %v542_v63, %v550_v41  ;;  %v6184_v54 = vcombine.high %v270_v46, %v278_v47  ;;  %v6616_v63 = vcombine.high %v702_v28, %v710_v29 }
 0x10f   :  { %5015 = vmatprep.subr.bf16.mxu1 %v6296_v55  ;;  %v6440_v55 = vcombine.high %v526_v49, %v534_v50 }
 0x111   :  { %4975 = vmatpush1.bf16.msra.mxu0 %v6039_v22  ;;  %v6183_v22 = vcombine.low %v270_v46, %v278_v47  ;;  %v175_v47 = vld [vmem:[#allocation5 + $0x218] sm:$0xff] }
 0x112   :  { %5016 = vmatpush1.bf16.msra.mxu1 %v6295_v60  ;;  %4976 = vmatprep.subr.bf16.mxu0 %v6024_v61  ;;  %v6439_v60 = vcombine.low %v526_v49, %v534_v50  ;;  %v6168_v61 = vcombine.high %v254_v56, %v262_v57  ;;  %v183_v49 = vld [vmem:[#allocation5 + $0x258] sm:$0xff] }
 0x113   :  { %5017 = vmatprep.subr.bf16.mxu1 %v6280_v62  ;;  %v6424_v62 = vcombine.high %v510_v58, %v518_v59 }
 0x115   :  { %4977 = vmatpush1.bf16.msra.mxu0 %v6023_v4  ;;  %v6167_v4 = vcombine.low %v254_v56, %v262_v57  ;;  %v6090_v57 = vcombine.high %v175_v47, %v183_v49 }
 0x116   :  { %5018 = vmatpush1.bf16.msra.mxu1 %v6279_v6  ;;  %4978 = vmatprep.subr.bf16.mxu0 %v6264_v7  ;;  %v6423_v6 = vcombine.low %v510_v58, %v518_v59  ;;  %v6152_v7 = vcombine.high %v238_v0, %v246_v1  ;;  %v670_v58 = vld [vmem:[#allocation5 + $0x1190] sm:$0xff] }
 0x117   :  { %5019 = vmatprep.subr.bf16.mxu1 %v6520_v8  ;;  %v6408_v8 = vcombine.high %v494_v2, %v502_v3  ;;  %v678_v59 = vld [vmem:[#allocation5 + $0x11d0] sm:$0xff] }
 0x119   :  { %4979 = vmatpush2.bf16.msra.mxu0 %v6263_v14  ;;  %v6151_v14 = vcombine.low %v238_v0, %v246_v1  ;;  %v6584_v0 = vcombine.high %v670_v58, %v678_v59 }
 0x11a   :  { %5020 = vmatpush2.bf16.msra.mxu1 %v6519_v15  ;;  %4980 = vmatprep.subr.bf16.mxu0 %v6248_v17  ;;  %v6407_v15 = vcombine.low %v494_v2, %v502_v3  ;;  %v6648_v17 = vcombine.high %v734_v9, %v742_v10  ;;  %v654_v2 = vld [vmem:[#allocation5 + $0x1110] sm:$0xff] }
 0x11b   :  { %5021 = vmatprep.subr.bf16.mxu1 %v6504_v18  ;;  %v6138_v18 = vcombine.high %v223_v12, %v231_v13  ;;  %v662_v3 = vld [vmem:[#allocation5 + $0x1150] sm:$0xff] }
 0x11d   :  { %4981 = vmatpush2.bf16.msra.mxu0 %v6247_v24  ;;  %v6647_v24 = vcombine.low %v734_v9, %v742_v10  ;;  %v6568_v9 = vcombine.high %v654_v2, %v662_v3 }
 0x11e   :  { %5022 = vmatpush2.bf16.msra.mxu1 %v6503_v25  ;;  %4982 = vmatprep.subr.bf16.mxu0 %v6232_v26  ;;  %v6137_v25 = vcombine.low %v223_v12, %v231_v13  ;;  %v6632_v26 = vcombine.high %v718_v19, %v726_v20  ;;  %v638_v12 = vld [vmem:[#allocation5 + $0x1090] sm:$0xff] }
 0x11f   :  { %5023 = vmatprep.subr.bf16.mxu1 %v6488_v27  ;;  %v6122_v27 = vcombine.high %v207_v21, %v215_v23  ;;  %v646_v13 = vld [vmem:[#allocation5 + $0x10d0] sm:$0xff] }
 0x120   :  { %v622_v21 = vld [vmem:[#allocation5 + $0x1010] sm:$0xff] }
 0x121   :  { %4983 = vmatpush2.bf16.msra.mxu0 %v6231_v34  ;;  %v199_v34 = vld [vmem:[#allocation5 + $0x2d8] sm:$0xff]  ;;  %v630_v23 = vld [vmem:[#allocation5 + $0x1050] sm:$0xff] }
 0x122   :  { %5024 = vmatpush2.bf16.msra.mxu1 %v6487_v35  ;;  %4984 = vmatprep.subr.bf16.mxu0 %v6216_v36  ;;  %v6631_v36 = vcombine.low %v718_v19, %v726_v20  ;;  %v6552_v19 = vcombine.high %v638_v12, %v646_v13 }
 0x123   :  { %5025 = vmatprep.subr.bf16.mxu1 %v6472_v37 }
 0x125   :  { %4985 = vmatpush2.bf16.msra.mxu0 %v6215_v5  ;;  %v6106_v5 = vcombine.high %v191_v32, %v199_v34 }
 0x126   :  { %5026 = vmatpush2.bf16.msra.mxu1 %v6471_v42  ;;  %4986 = vmatprep.subr.bf16.mxu0 %v6200_v43  ;;  %v686_v42 = vld [vmem:[#allocation5 + $0x1210] sm:$0xff] }
 0x127   :  { %5027 = vmatprep.subr.bf16.mxu1 %v6456_v45  ;;  %v694_v43 = vld [vmem:[#allocation5 + $0x1250] sm:$0xff] }
 0x129   :  { %4987 = vmatpush2.bf16.msra.mxu0 %v6199_v51  ;;  %v6615_v51 = vcombine.low %v702_v28, %v710_v29  ;;  %v6536_v28 = vcombine.high %v622_v21, %v630_v23 }
 0x12a   :  { %5028 = vmatpush2.bf16.msra.mxu1 %v6455_v52  ;;  %4988 = vmatprep.subr.bf16.mxu0 %v6184_v54  ;;  %v6105_v54 = vcombine.low %v191_v32, %v199_v34  ;;  %v870_v32 = vld [vmem:[#allocation5 + $0x17d0] sm:$0xff]  ;;  %v351_v34 = vld [vmem:[#allocation5 + $0x798] sm:$0xff] }
 0x12b   :  { %5029 = vmatprep.subr.bf16.mxu1 %v6440_v55  ;;  %v6600_v55 = vcombine.high %v686_v42, %v694_v43 }
 0x12d   :  { %4989 = vmatpush2.bf16.msra.mxu0 %v6183_v22  ;;  %v159_v22 = vld [vmem:[#allocation5 + $0x198] sm:$0xff] }
 0x12e   :  { %5030 = vmatpush2.bf16.msra.mxu1 %v6439_v60  ;;  %4990 = vmatprep.subr.bf16.mxu0 %v6168_v61  ;;  %v167_v60 = vld [vmem:[#allocation5 + $0x1d8] sm:$0xff]  ;;  %v6599_v61 = vcombine.low %v686_v42, %v694_v43 }
 0x12f   :  { %5031 = vmatprep.subr.bf16.mxu1 %v6424_v62  ;;  %v6089_v62 = vcombine.low %v175_v47, %v183_v49  ;;  %v6074_v1 = vcombine.high %v159_v22, %v167_v60  ;;  %v335_v42 = vld [vmem:[#allocation5 + $0x718] sm:$0xff] }
 0x130   :  { %v343_v43 = vld [vmem:[#allocation5 + $0x758] sm:$0xff] }
 0x131   :  { %4991 = vmatpush2.bf16.msra.mxu0 %v6167_v4  ;;  %v143_v4 = vld [vmem:[#allocation5 + $0x118] sm:$0xff] }
 0x132   :  { %5032 = vmatpush2.bf16.msra.mxu1 %v6423_v6  ;;  %4992 = vmatprep.subr.bf16.mxu0 %v6152_v7  ;;  %v151_v6 = vld [vmem:[#allocation5 + $0x158] sm:$0xff]  ;;  %v6583_v7 = vcombine.low %v670_v58, %v678_v59 }
 0x133   :  { %5033 = vmatprep.subr.bf16.mxu1 %v6408_v8  ;;  %v6073_v8 = vcombine.low %v159_v22, %v167_v60  ;;  %v6058_v10 = vcombine.high %v143_v4, %v151_v6  ;;  %v814_v22 = vld [vmem:[#allocation5 + $0x1610] sm:$0xff] }
 0x134   :  { %v822_v60 = vld [vmem:[#allocation5 + $0x1650] sm:$0xff] }
 0x135   :  { %4993 = vmatpush2.bf16.msra.mxu0 %v6151_v14  ;;  %v127_v14 = vld [vmem:[#allocation5 + $0x98] sm:$0xff] }
 0x136   :  { %5034 = vmatpush2.bf16.msra.mxu1 %v6407_v15  ;;  %5044 = vmatprep.subr.bf16.mxu0 %v6648_v17  ;;  %v135_v15 = vld [vmem:[#allocation5 + $0xd8] sm:$0xff]  ;;  %v6567_v17 = vcombine.low %v654_v2, %v662_v3  ;;  %v6728_v2 = vcombine.high %v814_v22, %v822_v60 }
 0x137   :  { %5085 = vmatprep.subr.bf16.mxu1 %v6138_v18  ;;  %v6057_v18 = vcombine.low %v143_v4, %v151_v6  ;;  %v6042_v20 = vcombine.high %v127_v14, %v135_v15  ;;  %v798_v4 = vld [vmem:[#allocation5 + $0x1590] sm:$0xff] }
 0x138   :  { %v4750_v31 = vpop.f32.mrf.mxu0  ;;  %4995 = vmatmul.mubr.bf16.vlgmr.msra.gmra.mxu0 %v6978_v30  ;;  %v806_v6 = vld [vmem:[#allocation5 + $0x15d0] sm:$0xff] }
 0x139   :  { %v4791_v35 = vpop.f32.mrf.mxu1  ;;  %5036 = vmatmul.mubr.bf16.vlgmr.msra.gmra.mxu1 %v6982_v33  ;;  %5045 = vmatpush1.bf16.msra.mxu0 %v6647_v24  ;;  %v111_v24 = vld [vmem:[#allocation5 + $0x18] sm:$0xff] }
 0x13a   :  { %v7004_v37 = vadd.f32 %v4791_v35, %v4750_v31  ;;  %5086 = vmatpush1.bf16.msra.mxu1 %v6137_v25  ;;  %v4752_v38 = vpop.f32.mrf.mxu0  ;;  %5046 = vmatprep.subr.bf16.mxu0 %v6632_v26  ;;  %v119_v25 = vld [vmem:[#allocation5 + $0x58] sm:$0xff]  ;;  %v6551_v26 = vcombine.low %v638_v12, %v646_v13  ;;  %v862_v31 = vld [vmem:[#allocation5 + $0x1790] sm:$0xff]  ;;  %v6712_v12 = vcombine.high %v798_v4, %v806_v6 }
 0x13b   :  { %v4793_v41 = vpop.f32.mrf.mxu1  ;;  %5087 = vmatprep.subr.bf16.mxu1 %v6122_v27  ;;  %5076 = vmatprep.mubr.bf16.mxu0 %v6984_v40  ;;  %v6041_v27 = vcombine.low %v127_v14, %v135_v15  ;;  %v6026_v29 = vcombine.high %v111_v24, %v119_v25  ;;  %v359_v35 = vld [vmem:[#allocation5 + $0x7d8] sm:$0xff]  ;;  %v782_v14 = vld [vmem:[#allocation5 + $0x1510] sm:$0xff] }
 0x13c   :  { %v7007_v45 = vadd.f32 %v4793_v41, %v4752_v38  ;;  %v4754_v46 = vpop.f32.mrf.mxu0  ;;  %5117 = vmatprep.mubr.bf16.mxu1 %v6964_v11  ;;  %v6025_v38 = vcombine.low %v111_v24, %v119_v25  ;;  %v846_v41 = vld [vmem:[#allocation5 + $0x1710] sm:$0xff]  ;;  %v6265_v47 = vcombine.low %v351_v34, %v359_v35 }
 0x13d   :  { %v4795_v50 = vpop.f32.mrf.mxu1  ;;  %5047 = vmatpush1.bf16.msra.mxu0 %v6631_v36  ;;  %v6535_v36 = vcombine.low %v622_v21, %v630_v23  ;;  %v6775_v46 = vcombine.low %v862_v31, %v870_v32  ;;  %v790_v15 = vld [vmem:[#allocation5 + $0x1550] sm:$0xff] }
 0x13e   :  { %5088 = vmatpush1.bf16.msra.mxu1 %v6121_v39  ;;  %v4755_v52 = vpop.f32.mrf.mxu0  ;;  %5048 = vmatprep.subr.bf16.mxu0 %v6616_v63  ;;  %v6776_v39 = vcombine.high %v862_v31, %v870_v32  ;;  %v6266_v63 = vcombine.high %v351_v34, %v359_v35  ;;  %v6250_v50 = vcombine.high %v335_v42, %v343_v43  ;;  %v766_v24 = vld [vmem:[#allocation5 + $0x1490] sm:$0xff] }
 0x13f   :  { %v4796_v56 = vpop.f32.mrf.mxu1  ;;  %5089 = vmatprep.subr.bf16.mxu1 %v6106_v5  ;;  %v854_v5 = vld [vmem:[#allocation5 + $0x1750] sm:$0xff]  ;;  %v6696_v21 = vcombine.high %v782_v14, %v790_v15 }
 0x140   :  { %v6760_v49 = vcombine.high %v846_v41, %v854_v5  ;;  %v838_v52 = vld [vmem:[#allocation5 + $0x16d0] sm:$0xff]  ;;  %v6759_v56 = vcombine.low %v846_v41, %v854_v5 }
 0x141   :  { %5049 = vmatpush1.bf16.msra.mxu0 %v6615_v51  ;;  %v830_v51 = vld [vmem:[#allocation5 + $0x1690] sm:$0xff] }
 0x142   :  { %5090 = vmatpush1.bf16.msra.mxu1 %v6105_v54  ;;  %5050 = vmatprep.subr.bf16.mxu0 %v6600_v55  ;;  %v319_v54 = vld [vmem:[#allocation5 + $0x698] sm:$0xff]  ;;  %v6744_v58 = vcombine.high %v830_v51, %v838_v52  ;;  %v774_v25 = vld [vmem:[#allocation5 + $0x14d0] sm:$0xff] }
 0x143   :  { %5091 = vmatprep.subr.bf16.mxu1 %v6090_v57  ;;  %v327_v55 = vld [vmem:[#allocation5 + $0x6d8] sm:$0xff]  ;;  %v6249_v57 = vcombine.low %v335_v42, %v343_v43  ;;  %v6680_v31 = vcombine.high %v766_v24, %v774_v25  ;;  %v750_v34 = vld [vmem:[#allocation5 + $0x1410] sm:$0xff] }
 0x144   :  { %v6234_v59 = vcombine.high %v319_v54, %v327_v55  ;;  %v758_v35 = vld [vmem:[#allocation5 + $0x1450] sm:$0xff]  ;;  %v479_v42 = vld [vmem:[#allocation5 + $0xb98] sm:$0xff] }
 0x145   :  { %5051 = vmatpush1.bf16.msra.mxu0 %v6599_v61  ;;  %v303_v61 = vld [vmem:[#allocation5 + $0x618] sm:$0xff]  ;;  %v6664_v41 = vcombine.high %v750_v34, %v758_v35 }
 0x146   :  { %5092 = vmatpush1.bf16.msra.mxu1 %v6089_v62  ;;  %5052 = vmatprep.subr.bf16.mxu0 %v6584_v0  ;;  %v311_v62 = vld [vmem:[#allocation5 + $0x658] sm:$0xff]  ;;  %v6743_v0 = vcombine.low %v830_v51, %v838_v52  ;;  %v7011_v52 = vsub.s32 0, %v6951_v44 }
 0x147   :  { %5093 = vmatprep.subr.bf16.mxu1 %v6074_v1  ;;  %v6233_v1 = vcombine.low %v319_v54, %v327_v55  ;;  %v6218_v3 = vcombine.high %v303_v61, %v311_v62  ;;  %v487_v43 = vld [vmem:[#allocation5 + $0xbd8] sm:$0xff] }
 0x148   :  { %v6394_v51 = vcombine.high %v479_v42, %v487_v43  ;;  %v463_v55 = vld [vmem:[#allocation5 + $0xb18] sm:$0xff] }
 0x149   :  { %5053 = vmatpush1.bf16.msra.mxu0 %v6583_v7  ;;  %v287_v7 = vld [vmem:[#allocation5 + $0x598] sm:$0xff] }
 0x14a   :  { %5094 = vmatpush1.bf16.msra.mxu1 %v6073_v8  ;;  %5054 = vmatprep.subr.bf16.mxu0 %v6568_v9  ;;  %v295_v8 = vld [vmem:[#allocation5 + $0x5d8] sm:$0xff]  ;;  %v6727_v9 = vcombine.low %v814_v22, %v822_v60  ;;  %v7015_v22 = vld [vmem:[#allocation8] sm:$0xff]  ;;  %v6393_v60 = vcombine.low %v479_v42, %v487_v43 }
 0x14b   :  { %5095 = vmatprep.subr.bf16.mxu1 %v6058_v10  ;;  %v6217_v10 = vcombine.low %v303_v61, %v311_v62  ;;  %v6202_v13 = vcombine.high %v287_v7, %v295_v8  ;;  %v7018_v61 = vsub.s32 1, %v6951_v44  ;;  %v671_v42 = vld [vmem:[#allocation5 + $0x1198] sm:$0xff] }
 0x14c   :  { %v679_v43 = vld [vmem:[#allocation5 + $0x11d8] sm:$0xff] }
 0x14d   :  { %5055 = vmatpush1.bf16.msra.mxu0 %v6567_v17  ;;  %v271_v17 = vld [vmem:[#allocation5 + $0x518] sm:$0xff] }
 0x14e   :  { %5096 = vmatpush1.bf16.msra.mxu1 %v6057_v18  ;;  %5056 = vmatprep.subr.bf16.mxu0 %v6552_v19  ;;  %v279_v18 = vld [vmem:[#allocation5 + $0x558] sm:$0xff]  ;;  %v6711_v19 = vcombine.low %v798_v4, %v806_v6 }
 0x14f   :  { %5097 = vmatprep.subr.bf16.mxu1 %v6042_v20  ;;  %v6201_v20 = vcombine.low %v287_v7, %v295_v8  ;;  %v6186_v23 = vcombine.high %v271_v17, %v279_v18  ;;  %v455_v4 = vld [vmem:[#allocation5 + $0xad8] sm:$0xff]  ;;  %v5807_v7 = vrot.slane %v7015_v22, %v7011_v52 }
 0x150   :  { %v703_v8 = vld [vmem:[#allocation5 + $0x1298] sm:$0xff] }
 0x151   :  { %5057 = vmatpush1.bf16.msra.mxu0 %v6551_v26  ;;  %v255_v26 = vld [vmem:[#allocation5 + $0x498] sm:$0xff] }
 0x152   :  { %5098 = vmatpush1.bf16.msra.mxu1 %v6041_v27  ;;  %5058 = vmatprep.subr.bf16.mxu0 %v6536_v28  ;;  %v263_v27 = vld [vmem:[#allocation5 + $0x4d8] sm:$0xff]  ;;  %v6695_v28 = vcombine.low %v782_v14, %v790_v15 }
 0x153   :  { %5099 = vmatprep.subr.bf16.mxu1 %v6026_v29  ;;  %v6185_v29 = vcombine.low %v271_v17, %v279_v18  ;;  %v6170_v32 = vcombine.high %v255_v26, %v263_v27  ;;  %v5811_v17 = vrot.slane %v7015_v22, %v7018_v61 }
 0x155   :  { %5059 = vmatpush1.bf16.msra.mxu0 %v6535_v36  ;;  %v239_v36 = vld [vmem:[#allocation5 + $0x418] sm:$0xff] }
 0x156   :  { %5100 = vmatpush1.bf16.msra.mxu1 %v6025_v38  ;;  %5060 = vmatprep.subr.bf16.mxu0 %v6776_v39  ;;  %v247_v38 = vld [vmem:[#allocation5 + $0x458] sm:$0xff]  ;;  %v6679_v39 = vcombine.low %v766_v24, %v774_v25 }
 0x157   :  { %5101 = vmatprep.subr.bf16.mxu1 %v6266_v63  ;;  %v6169_v63 = vcombine.low %v255_v26, %v263_v27  ;;  %v6154_v5 = vcombine.high %v239_v36, %v247_v38  ;;  %v431_v24 = vld [vmem:[#allocation5 + $0xa18] sm:$0xff] }
 0x158   :  { %v439_v25 = vld [vmem:[#allocation5 + $0xa58] sm:$0xff] }
 0x159   :  { %5061 = vmatpush2.bf16.msra.mxu0 %v6775_v46  ;;  %v735_v46 = vld [vmem:[#allocation5 + $0x1398] sm:$0xff] }
 0x15a   :  { %5102 = vmatpush2.bf16.msra.mxu1 %v6265_v47  ;;  %5062 = vmatprep.subr.bf16.mxu0 %v6760_v49  ;;  %v743_v47 = vld [vmem:[#allocation5 + $0x13d8] sm:$0xff]  ;;  %v6663_v49 = vcombine.low %v750_v34, %v758_v35  ;;  %v6346_v35 = vcombine.high %v431_v24, %v439_v25 }
 0x15b   :  { %5103 = vmatprep.subr.bf16.mxu1 %v6250_v50  ;;  %v6153_v50 = vcombine.low %v239_v36, %v247_v38  ;;  %v6650_v54 = vcombine.high %v735_v46, %v743_v47  ;;  %v6649_v62 = vcombine.low %v735_v46, %v743_v47  ;;  %v687_v27 = vld [vmem:[#allocation5 + $0x1218] sm:$0xff]  ;;  %v6345_v47 = vcombine.low %v431_v24, %v439_v25 }
 0x15c   :  { %v863_v24 = vld [vmem:[#allocation5 + $0x1798] sm:$0xff] }
 0x15d   :  { %5063 = vmatpush2.bf16.msra.mxu0 %v6759_v56  ;;  %v471_v56 = vld [vmem:[#allocation5 + $0xb58] sm:$0xff] }
 0x15e   :  { %5104 = vmatpush2.bf16.msra.mxu1 %v6249_v57  ;;  %5064 = vmatprep.subr.bf16.mxu0 %v6744_v58  ;;  %v7013_v57 = vld [vmem:[#allocation7] sm:$0xff]  ;;  %v719_v58 = vld [vmem:[#allocation5 + $0x1318] sm:$0xff]  ;;  %v6377_v14 = vcombine.low %v463_v55, %v471_v56 }
 0x15f   :  { %5105 = vmatprep.subr.bf16.mxu1 %v6234_v59  ;;  %v727_v59 = vld [vmem:[#allocation5 + $0x1358] sm:$0xff] }
 0x160   :  { %v6633_v18 = vcombine.low %v719_v58, %v727_v59  ;;  %v871_v25 = vld [vmem:[#allocation5 + $0x17d8] sm:$0xff] }
 0x161   :  { %5065 = vmatpush2.bf16.msra.mxu0 %v6743_v0  ;;  %v6378_v0 = vcombine.high %v463_v55, %v471_v56  ;;  %v407_v55 = vld [vmem:[#allocation5 + $0x958] sm:$0xff] }
 0x162   :  { %5106 = vmatpush2.bf16.msra.mxu1 %v6233_v1  ;;  %5066 = vmatprep.subr.bf16.mxu0 %v6728_v2  ;;  %v5707_v1 = vrot.slane %v7013_v57, %v7011_v52  ;;  %v6634_v2 = vcombine.high %v719_v58, %v727_v59  ;;  %v655_v56 = vld [vmem:[#allocation5 + $0x1118] sm:$0xff] }
 0x163   :  { %5107 = vmatprep.subr.bf16.mxu1 %v6218_v3  ;;  %v447_v3 = vld [vmem:[#allocation5 + $0xa98] sm:$0xff] }
 0x164   :  { %v663_v58 = vld [vmem:[#allocation5 + $0x1158] sm:$0xff] }
 0x165   :  { %5067 = vmatpush2.bf16.msra.mxu0 %v6727_v9  ;;  %v711_v9 = vld [vmem:[#allocation5 + $0x12d8] sm:$0xff] }
 0x166   :  { %5108 = vmatpush2.bf16.msra.mxu1 %v6217_v10  ;;  %5068 = vmatprep.subr.bf16.mxu0 %v6712_v12 }
 0x167   :  { %5109 = vmatprep.subr.bf16.mxu1 %v6202_v13  ;;  %v5711_v13 = vrot.slane %v7013_v57, %v7018_v61 }
 0x169   :  { %5069 = vmatpush2.bf16.msra.mxu0 %v6711_v19  ;;  %v6362_v19 = vcombine.high %v447_v3, %v455_v4 }
 0x16a   :  { %5110 = vmatpush2.bf16.msra.mxu1 %v6201_v20  ;;  %5070 = vmatprep.subr.bf16.mxu0 %v6696_v21 }
 0x16b   :  { %5111 = vmatprep.subr.bf16.mxu1 %v6186_v23  ;;  %v6618_v23 = vcombine.high %v703_v8, %v711_v9 }
 0x16d   :  { %5071 = vmatpush2.bf16.msra.mxu0 %v6695_v28  ;;  %v695_v28 = vld [vmem:[#allocation5 + $0x1258] sm:$0xff] }
 0x16e   :  { %5112 = vmatpush2.bf16.msra.mxu1 %v6185_v29  ;;  %5072 = vmatprep.subr.bf16.mxu0 %v6680_v31 }
 0x16f   :  { %5113 = vmatprep.subr.bf16.mxu1 %v6170_v32  ;;  %v6361_v32 = vcombine.low %v447_v3, %v455_v4  ;;  %v639_v3 = vld [vmem:[#allocation5 + $0x1098] sm:$0xff] }
 0x170   :  { %v647_v4 = vld [vmem:[#allocation5 + $0x10d8] sm:$0xff] }
 0x171   :  { %5073 = vmatpush2.bf16.msra.mxu0 %v6679_v39 }
 0x172   :  { %5114 = vmatpush2.bf16.msra.mxu1 %v6169_v63  ;;  %5074 = vmatprep.subr.bf16.mxu0 %v6664_v41  ;;  %v6602_v63 = vcombine.high %v687_v27, %v695_v28  ;;  %v415_v41 = vld [vmem:[#allocation5 + $0x998] sm:$0xff] }
 0x173   :  { %5115 = vmatprep.subr.bf16.mxu1 %v6154_v5  ;;  %v423_v5 = vld [vmem:[#allocation5 + $0x9d8] sm:$0xff] }
 0x174   :  { %v6329_v59 = vcombine.low %v415_v41, %v423_v5 }
 0x175   :  { %5075 = vmatpush2.bf16.msra.mxu0 %v6663_v49  ;;  %v6601_v49 = vcombine.low %v687_v27, %v695_v28 }
 0x176   :  { %5116 = vmatpush2.bf16.msra.mxu1 %v6153_v50  ;;  %5126 = vmatprep.subr.bf16.mxu0 %v6394_v51  ;;  %v6330_v50 = vcombine.high %v415_v41, %v423_v5  ;;  %v6586_v51 = vcombine.high %v671_v42, %v679_v43  ;;  %v575_v5 = vld [vmem:[#allocation5 + $0xe98] sm:$0xff] }
 0x177   :  { %5167 = vmatprep.subr.bf16.mxu1 %v6650_v54  ;;  %v399_v54 = vld [vmem:[#allocation5 + $0x918] sm:$0xff] }
 0x178   :  { %v4832_v6 = vpop.f32.mrf.mxu0  ;;  %5077 = vmatmul.mubr.bf16.vlgmr.msra.gmra.mxu0 %v6992_v48 }
 0x179   :  { %v4833_v10 = vadd.f32 %v4832_v6, %v7004_v37  ;;  %v7026_v12 = vpop.f32.mrf.mxu1  ;;  %5118 = vmatmul.mubr.bf16.vlgmr.msra.gmra.mxu1 %v6978_v30  ;;  %5127 = vmatpush1.bf16.msra.mxu0 %v6393_v60  ;;  %v6585_v60 = vcombine.low %v671_v42, %v679_v43  ;;  %v6313_v6 = vcombine.low %v399_v54, %v407_v55  ;;  %v583_v42 = vld [vmem:[#allocation5 + $0xed8] sm:$0xff] }
 0x17a   :  { %5168 = vmatpush1.bf16.msra.mxu1 %v6649_v62  ;;  %v4834_v15 = vpop.f32.mrf.mxu0  ;;  %5128 = vmatprep.subr.bf16.mxu0 %v6378_v0  ;;  %v6314_v62 = vcombine.high %v399_v54, %v407_v55  ;;  %v6570_v0 = vcombine.high %v655_v56, %v663_v58  ;;  %v831_v43 = vld [vmem:[#allocation5 + $0x1698] sm:$0xff] }
 0x17b   :  { %v5784_v20 = vmul.f32 %v5707_v1, %v4833_v10  ;;  %v4835_v37 = vadd.f32 %v4834_v15, %v7007_v45  ;;  %v7034_v21 = vpop.f32.mrf.mxu1  ;;  %5169 = vmatprep.subr.bf16.mxu1 %v6634_v2  ;;  %5158 = vmatprep.mubr.bf16.mxu0 %v6969_v16  ;;  %v6617_v45 = vcombine.low %v703_v8, %v711_v9  ;;  %v383_v1 = vld [vmem:[#allocation5 + $0x898] sm:$0xff] }
 0x17c   :  { %v4836_v26 = vpop.f32.mrf.mxu0  ;;  %5199 = vmatprep.mubr.bf16.mxu1 %v6984_v40  ;;  %v391_v2 = vld [vmem:[#allocation5 + $0x8d8] sm:$0xff]  ;;  %v6554_v9 = vcombine.high %v639_v3, %v647_v4 }
 0x17d   :  { %v5785_v29 = vmul.f32 %v5711_v13, %v4835_v37  ;;  %v4877_v31 = vpop.f32.mrf.mxu1  ;;  %5129 = vmatpush1.bf16.msra.mxu0 %v6377_v14  ;;  %v7038_v36 = vadd.f32 %v5807_v7, %v5784_v20  ;;  %v6569_v7 = vcombine.low %v655_v56, %v663_v58  ;;  %v6298_v8 = vcombine.high %v383_v1, %v391_v2  ;;  %v367_v10 = vld [vmem:[#allocation5 + $0x818] sm:$0xff] }
 0x17e   :  { %5170 = vmatpush1.bf16.msra.mxu1 %v6633_v18  ;;  %v4837_v34 = vpop.f32.mrf.mxu0  ;;  %5130 = vmatprep.subr.bf16.mxu0 %v6362_v19  ;;  %v375_v13 = vld [vmem:[#allocation5 + $0x858] sm:$0xff]  ;;  %v6553_v18 = vcombine.low %v639_v3, %v647_v4 }
 0x17f   :  { %v7040_v38 = vadd.f32 %v5811_v17, %v5785_v29  ;;  %v4878_v39 = vpop.f32.mrf.mxu1  ;;  %5171 = vmatprep.subr.bf16.mxu1 %v6618_v23  ;;  %v623_v14 = vld [vmem:[#allocation5 + $0x1018] sm:$0xff]  ;;  %v6297_v17 = vcombine.low %v383_v1, %v391_v2  ;;  %v6282_v19 = vcombine.high %v367_v10, %v375_v13  ;;  %v6281_v26 = vcombine.low %v367_v10, %v375_v13 }
 0x180   :  { %v631_v15 = vld [vmem:[#allocation5 + $0x1058] sm:$0xff]  ;;  %v6778_v29 = vcombine.high %v863_v24, %v871_v25  ;;  %v6777_v39 = vcombine.low %v863_v24, %v871_v25 }
 0x181   :  { %v5916_v46 = vcombine.low %v7038_v36, %v7040_v38  ;;  %5131 = vmatpush1.bf16.msra.mxu0 %v6361_v32  ;;  %v6538_v20 = vcombine.high %v623_v14, %v631_v15  ;;  %v607_v37 = vld [vmem:[#allocation5 + $0xf98] sm:$0xff]  ;;  %v6537_v27 = vcombine.low %v623_v14, %v631_v15 }
 0x182   :  { %5172 = vmatpush1.bf16.msra.mxu1 %v6617_v45  ;;  %5132 = vmatprep.subr.bf16.mxu0 %v6346_v35  ;;  %v615_v23 = vld [vmem:[#allocation5 + $0xfd8] sm:$0xff] }
 0x183   :  { %5173 = vmatprep.subr.bf16.mxu1 %v6602_v63  ;;  %v6522_v28 = vcombine.high %v607_v37, %v615_v23  ;;  %v591_v31 = vld [vmem:[#allocation5 + $0xf18] sm:$0xff]  ;;  %v6521_v35 = vcombine.low %v607_v37, %v615_v23 }
 0x184   :  { %v599_v32 = vld [vmem:[#allocation5 + $0xf58] sm:$0xff] }
 0x185   :  { %5133 = vmatpush1.bf16.msra.mxu0 %v6345_v47  ;;  %v847_v34 = vld [vmem:[#allocation5 + $0x1718] sm:$0xff]  ;;  %v6506_v63 = vcombine.high %v591_v31, %v599_v32 }
 0x186   :  { %5174 = vmatpush1.bf16.msra.mxu1 %v6601_v49  ;;  %5134 = vmatprep.subr.bf16.mxu0 %v6330_v50  ;;  %v855_v45 = vld [vmem:[#allocation5 + $0x1758] sm:$0xff]  ;;  %v6505_v49 = vcombine.low %v591_v31, %v599_v32 }
 0x187   :  { %5175 = vmatprep.subr.bf16.mxu1 %v6586_v51  ;;  %v6762_v41 = vcombine.high %v847_v34, %v855_v45  ;;  %v839_v47 = vld [vmem:[#allocation5 + $0x16d8] sm:$0xff]  ;;  %v6761_v50 = vcombine.low %v847_v34, %v855_v45  ;;  %v6490_v51 = vcombine.high %v575_v5, %v583_v42 }
 0x188   :  { %v6746_v54 = vcombine.high %v831_v43, %v839_v47  ;;  %v559_v55 = vld [vmem:[#allocation5 + $0xe18] sm:$0xff] }
 0x189   :  { %5135 = vmatpush1.bf16.msra.mxu0 %v6329_v59  ;;  %v567_v56 = vld [vmem:[#allocation5 + $0xe58] sm:$0xff] }
 0x18a   :  { %5176 = vmatpush1.bf16.msra.mxu1 %v6585_v60  ;;  %5136 = vmatprep.subr.bf16.mxu0 %v6314_v62  ;;  %v815_v58 = vld [vmem:[#allocation5 + $0x1618] sm:$0xff]  ;;  %v6489_v60 = vcombine.low %v575_v5, %v583_v42  ;;  %v6745_v62 = vcombine.low %v831_v43, %v839_v47  ;;  %v224_v42 = vld [vmem:[#allocation5 + $0x3a0] sm:$0xff] }
 0x18b   :  { %5177 = vmatprep.subr.bf16.mxu1 %v6570_v0  ;;  %v823_v59 = vld [vmem:[#allocation5 + $0x1658] sm:$0xff]  ;;  %v6474_v0 = vcombine.high %v559_v55, %v567_v56  ;;  %v232_v43 = vld [vmem:[#allocation5 + $0x3e0] sm:$0xff] }
 0x18c   :  { %v6730_v1 = vcombine.high %v815_v58, %v823_v59  ;;  %v543_v2 = vld [vmem:[#allocation5 + $0xd98] sm:$0xff]  ;;  %v480_v47 = vld [vmem:[#allocation5 + $0xba0] sm:$0xff] }
 0x18d   :  { %5137 = vmatpush1.bf16.msra.mxu0 %v6313_v6  ;;  %v551_v3 = vld [vmem:[#allocation5 + $0xdd8] sm:$0xff] }
 0x18e   :  { %5178 = vmatpush1.bf16.msra.mxu1 %v6569_v7  ;;  %5138 = vmatprep.subr.bf16.mxu0 %v6298_v8  ;;  %v799_v4 = vld [vmem:[#allocation5 + $0x1598] sm:$0xff]  ;;  %v6473_v7 = vcombine.low %v559_v55, %v567_v56  ;;  %v6729_v8 = vcombine.low %v815_v58, %v823_v59  ;;  %v208_v56 = vld [vmem:[#allocation5 + $0x320] sm:$0xff] }
 0x18f   :  { %5179 = vmatprep.subr.bf16.mxu1 %v6554_v9  ;;  %v807_v6 = vld [vmem:[#allocation5 + $0x15d8] sm:$0xff]  ;;  %v6458_v9 = vcombine.high %v543_v2, %v551_v3  ;;  %v216_v58 = vld [vmem:[#allocation5 + $0x360] sm:$0xff] }
 0x190   :  { %v6714_v10 = vcombine.high %v799_v4, %v807_v6  ;;  %v527_v13 = vld [vmem:[#allocation5 + $0xd18] sm:$0xff]  ;;  %v464_v59 = vld [vmem:[#allocation5 + $0xb20] sm:$0xff] }
 0x191   :  { %5139 = vmatpush1.bf16.msra.mxu0 %v6297_v17  ;;  %v535_v14 = vld [vmem:[#allocation5 + $0xd58] sm:$0xff] }
 0x192   :  { %5180 = vmatpush1.bf16.msra.mxu1 %v6553_v18  ;;  %5140 = vmatprep.subr.bf16.mxu0 %v6282_v19  ;;  %v783_v15 = vld [vmem:[#allocation5 + $0x1518] sm:$0xff]  ;;  %v6457_v18 = vcombine.low %v543_v2, %v551_v3  ;;  %v6713_v19 = vcombine.low %v799_v4, %v807_v6  ;;  %v7048_v2 = vsub.s32 3, %v6951_v44  ;;  %v6124_v3 = vcombine.high %v208_v56, %v216_v58  ;;  %v192_v6 = vld [vmem:[#allocation5 + $0x2a0] sm:$0xff] }
 0x193   :  { %5181 = vmatprep.subr.bf16.mxu1 %v6538_v20  ;;  %v791_v17 = vld [vmem:[#allocation5 + $0x1558] sm:$0xff]  ;;  %v6442_v20 = vcombine.high %v527_v13, %v535_v14 }
 0x194   :  { %v6698_v37 = vcombine.high %v783_v15, %v791_v17  ;;  %v511_v23 = vld [vmem:[#allocation5 + $0xc98] sm:$0xff] }
 0x195   :  { %5141 = vmatpush1.bf16.msra.mxu0 %v6281_v26  ;;  %v519_v24 = vld [vmem:[#allocation5 + $0xcd8] sm:$0xff] }
 0x196   :  { %5182 = vmatpush1.bf16.msra.mxu1 %v6537_v27  ;;  %5142 = vmatprep.subr.bf16.mxu0 %v6522_v28  ;;  %v767_v25 = vld [vmem:[#allocation5 + $0x1498] sm:$0xff]  ;;  %v6441_v27 = vcombine.low %v527_v13, %v535_v14  ;;  %v6697_v28 = vcombine.low %v783_v15, %v791_v17  ;;  %v6123_v17 = vcombine.low %v208_v56, %v216_v58 }
 0x197   :  { %5183 = vmatprep.subr.bf16.mxu1 %v6778_v29  ;;  %v775_v26 = vld [vmem:[#allocation5 + $0x14d8] sm:$0xff]  ;;  %v6426_v29 = vcombine.high %v511_v23, %v519_v24 }
 0x198   :  { %v6682_v31 = vcombine.high %v767_v25, %v775_v26  ;;  %v495_v32 = vld [vmem:[#allocation5 + $0xc18] sm:$0xff] }
 0x199   :  { %5143 = vmatpush2.bf16.msra.mxu0 %v6521_v35  ;;  %v503_v34 = vld [vmem:[#allocation5 + $0xc58] sm:$0xff] }
 0x19a   :  { %5184 = vmatpush2.bf16.msra.mxu1 %v6777_v39  ;;  %5144 = vmatprep.subr.bf16.mxu0 %v6506_v63  ;;  %v751_v45 = vld [vmem:[#allocation5 + $0x1418] sm:$0xff]  ;;  %v6425_v39 = vcombine.low %v511_v23, %v519_v24  ;;  %v6681_v63 = vcombine.low %v767_v25, %v775_v26  ;;  %v176_v26 = vld [vmem:[#allocation5 + $0x220] sm:$0xff] }
 0x19b   :  { %5185 = vmatprep.subr.bf16.mxu1 %v6762_v41  ;;  %v759_v35 = vld [vmem:[#allocation5 + $0x1458] sm:$0xff]  ;;  %v6410_v41 = vcombine.high %v495_v32, %v503_v34 }
 0x19c   :  { %v6666_v5 = vcombine.high %v751_v45, %v759_v35 }
 0x19d   :  { %5145 = vmatpush2.bf16.msra.mxu0 %v6505_v49  ;;  %v488_v49 = vld [vmem:[#allocation5 + $0xbe0] sm:$0xff] }
 0x19e   :  { %5186 = vmatpush2.bf16.msra.mxu1 %v6761_v50  ;;  %5146 = vmatprep.subr.bf16.mxu0 %v6490_v51  ;;  %v6409_v50 = vcombine.low %v495_v32, %v503_v34  ;;  %v6665_v51 = vcombine.low %v751_v45, %v759_v35  ;;  %v6396_v55 = vcombine.high %v480_v47, %v488_v49  ;;  %v440_v32 = vld [vmem:[#allocation5 + $0xa60] sm:$0xff] }
 0x19f   :  { %5187 = vmatprep.subr.bf16.mxu1 %v6746_v54  ;;  %v6140_v54 = vcombine.high %v224_v42, %v232_v43 }
 0x1a1   :  { %5147 = vmatpush2.bf16.msra.mxu0 %v6489_v60  ;;  %v472_v60 = vld [vmem:[#allocation5 + $0xb60] sm:$0xff] }
 0x1a2   :  { %5188 = vmatpush2.bf16.msra.mxu1 %v6745_v62  ;;  %5148 = vmatprep.subr.bf16.mxu0 %v6474_v0  ;;  %v7045_v62 = vsub.s32 2, %v6951_v44  ;;  %v6139_v0 = vcombine.low %v224_v42, %v232_v43  ;;  %v6380_v4 = vcombine.high %v464_v59, %v472_v60 }
 0x1a3   :  { %5189 = vmatprep.subr.bf16.mxu1 %v6730_v1  ;;  %v6395_v1 = vcombine.low %v480_v47, %v488_v49  ;;  %v160_v47 = vld [vmem:[#allocation5 + $0x1a0] sm:$0xff] }
 0x1a4   :  { %v5715_v15 = vrot.slane %v7013_v57, %v7045_v62  ;;  %v168_v49 = vld [vmem:[#allocation5 + $0x1e0] sm:$0xff] }
 0x1a5   :  { %5149 = vmatpush2.bf16.msra.mxu0 %v6473_v7  ;;  %v200_v7 = vld [vmem:[#allocation5 + $0x2e0] sm:$0xff]  ;;  %v6076_v58 = vcombine.high %v160_v47, %v168_v49 }
 0x1a6   :  { %5190 = vmatpush2.bf16.msra.mxu1 %v6729_v8  ;;  %5150 = vmatprep.subr.bf16.mxu0 %v6458_v9  ;;  %v448_v9 = vld [vmem:[#allocation5 + $0xaa0] sm:$0xff]  ;;  %v6107_v35 = vcombine.low %v192_v6, %v200_v7 }
 0x1a7   :  { %5191 = vmatprep.subr.bf16.mxu1 %v6714_v10  ;;  %v456_v10 = vld [vmem:[#allocation5 + $0xae0] sm:$0xff] }
 0x1a8   :  { %v6364_v25 = vcombine.high %v448_v9, %v456_v10 }
 0x1a9   :  { %5151 = vmatpush2.bf16.msra.mxu0 %v6457_v18 }
 0x1aa   :  { %5192 = vmatpush2.bf16.msra.mxu1 %v6713_v19  ;;  %5152 = vmatprep.subr.bf16.mxu0 %v6442_v20  ;;  %v5719_v19 = vrot.slane %v7013_v57, %v7048_v2  ;;  %v6379_v20 = vcombine.low %v464_v59, %v472_v60 }
 0x1ab   :  { %5193 = vmatprep.subr.bf16.mxu1 %v6698_v37  ;;  %v6108_v37 = vcombine.high %v192_v6, %v200_v7  ;;  %v5924_v6 = vrot.slane %v5916_v46, %v6954_v53 }
 0x1ad   :  { %5153 = vmatpush2.bf16.msra.mxu0 %v6441_v27  ;;  %v184_v27 = vld [vmem:[#allocation5 + $0x260] sm:$0xff] }
 0x1ae   :  { %5194 = vmatpush2.bf16.msra.mxu1 %v6697_v28  ;;  %5154 = vmatprep.subr.bf16.mxu0 %v6426_v29  ;;  %v5815_v28 = vrot.slane %v7015_v22, %v7045_v62 }
 0x1af   :  { %5195 = vmatprep.subr.bf16.mxu1 %v6682_v31  ;;  %v432_v31 = vld [vmem:[#allocation5 + $0xa20] sm:$0xff] }
 0x1b0   :  { %v6348_v43 = vcombine.high %v432_v31, %v440_v32  ;;  %v6347_v56 = vcombine.low %v432_v31, %v440_v32  ;;  %v360_v31 = vld [vmem:[#allocation5 + $0x7e0] sm:$0xff] }
 0x1b1   :  { %5155 = vmatpush2.bf16.msra.mxu0 %v6425_v39  ;;  %v608_v32 = vld [vmem:[#allocation5 + $0xfa0] sm:$0xff] }
 0x1b2   :  { %5196 = vmatpush2.bf16.msra.mxu1 %v6681_v63  ;;  %5156 = vmatprep.subr.bf16.mxu0 %v6410_v41  ;;  %v6363_v63 = vcombine.low %v448_v9, %v456_v10  ;;  %v6092_v41 = vcombine.high %v176_v26, %v184_v27 }
 0x1b3   :  { %5197 = vmatprep.subr.bf16.mxu1 %v6666_v5 }
 0x1b5   :  { %5157 = vmatpush2.bf16.msra.mxu0 %v6409_v50  ;;  %v416_v50 = vld [vmem:[#allocation5 + $0x9a0] sm:$0xff] }
 0x1b6   :  { %5198 = vmatpush2.bf16.msra.mxu1 %v6665_v51  ;;  %5208 = vmatprep.subr.bf16.mxu0 %v6140_v54  ;;  %v424_v51 = vld [vmem:[#allocation5 + $0x9e0] sm:$0xff] }
 0x1b7   :  { %5249 = vmatprep.subr.bf16.mxu1 %v6396_v55  ;;  %v6332_v60 = vcombine.high %v416_v50, %v424_v51  ;;  %v6331_v9 = vcombine.low %v416_v50, %v424_v51  ;;  %v320_v50 = vld [vmem:[#allocation5 + $0x6a0] sm:$0xff] }
 0x1b8   :  { %v4914_v8 = vpop.f32.mrf.mxu0  ;;  %5159 = vmatmul.mubr.bf16.vlgmr.msra.gmra.mxu0 %v6982_v33  ;;  %v328_v51 = vld [vmem:[#allocation5 + $0x6e0] sm:$0xff] }
 0x1b9   :  { %v4915_v13 = vadd.f32 %v4914_v8, %v7026_v12  ;;  %v4955_v14 = vpop.f32.mrf.mxu1  ;;  %5200 = vmatmul.mubr.bf16.vlgmr.msra.gmra.mxu1 %v6992_v48  ;;  %5209 = vmatpush1.bf16.msra.mxu0 %v6139_v0  ;;  %v144_v0 = vld [vmem:[#allocation5 + $0x120] sm:$0xff]  ;;  %v6075_v8 = vcombine.low %v160_v47, %v168_v49 }
 0x1ba   :  { %5250 = vmatpush1.bf16.msra.mxu1 %v6395_v1  ;;  %v4916_v18 = vpop.f32.mrf.mxu0  ;;  %5210 = vmatprep.subr.bf16.mxu0 %v6124_v3  ;;  %v152_v1 = vld [vmem:[#allocation5 + $0x160] sm:$0xff] }
 0x1bb   :  { %v4956_v23 = vadd.f32 %v4955_v14, %v4915_v13  ;;  %v4917_v24 = vadd.f32 %v4916_v18, %v7034_v21  ;;  %v4957_v12 = vpop.f32.mrf.mxu1  ;;  %5251 = vmatprep.subr.bf16.mxu1 %v6380_v4  ;;  %5240 = vmatprep.mubr.bf16.mxu0 %v6964_v11  ;;  %v5819_v21 = vrot.slane %v7015_v22, %v7048_v2  ;;  %v400_v3 = vld [vmem:[#allocation5 + $0x920] sm:$0xff] }
 0x1bc   :  { %v4918_v29 = vpop.f32.mrf.mxu0  ;;  %5281 = vmatprep.mubr.bf16.mxu1 %v6969_v16  ;;  %v6091_v22 = vcombine.low %v176_v26, %v184_v27  ;;  %v408_v4 = vld [vmem:[#allocation5 + $0x960] sm:$0xff]  ;;  %v6060_v10 = vcombine.high %v144_v0, %v152_v1 }
 0x1bd   :  { %v5786_v57 = vmul.f32 %v5715_v15, %v4956_v23  ;;  %v4958_v34 = vadd.f32 %v4957_v12, %v4917_v24  ;;  %v4959_v45 = vpop.f32.mrf.mxu1  ;;  %5211 = vmatpush1.bf16.msra.mxu0 %v6123_v17  ;;  %v6316_v14 = vcombine.high %v400_v3, %v408_v4  ;;  %v128_v15 = vld [vmem:[#allocation5 + $0xa0] sm:$0xff]  ;;  %v6315_v36 = vcombine.low %v400_v3, %v408_v4 }
 0x1be   :  { %5252 = vmatpush1.bf16.msra.mxu1 %v6379_v20  ;;  %v4919_v39 = vpop.f32.mrf.mxu0  ;;  %5212 = vmatprep.subr.bf16.mxu0 %v6108_v37  ;;  %v136_v17 = vld [vmem:[#allocation5 + $0xe0] sm:$0xff]  ;;  %v6059_v20 = vcombine.low %v144_v0, %v152_v1  ;;  %v6235_v4 = vcombine.low %v320_v50, %v328_v51 }
 0x1bf   :  { %v5787_v5 = vmul.f32 %v5719_v19, %v4958_v34  ;;  %v4960_v42 = vpop.f32.mrf.mxu1  ;;  %5253 = vmatprep.subr.bf16.mxu1 %v6364_v25  ;;  %v5886_v54 = vadd.f32 %v5815_v28, %v5786_v57  ;;  %v384_v18 = vld [vmem:[#allocation5 + $0x8a0] sm:$0xff]  ;;  %v6044_v38 = vcombine.high %v128_v15, %v136_v17  ;;  %v6043_v25 = vcombine.low %v128_v15, %v136_v17 }
 0x1c0   :  { %v392_v19 = vld [vmem:[#allocation5 + $0x8e0] sm:$0xff] }
 0x1c1   :  { %v5887_v55 = vadd.f32 %v5819_v21, %v5787_v5  ;;  %5213 = vmatpush1.bf16.msra.mxu0 %v6107_v35  ;;  %v6300_v46 = vcombine.high %v384_v18, %v392_v19  ;;  %v112_v37 = vld [vmem:[#allocation5 + $0x20] sm:$0xff]  ;;  %v6299_v26 = vcombine.low %v384_v18, %v392_v19 }
 0x1c2   :  { %5254 = vmatpush1.bf16.msra.mxu1 %v6363_v63  ;;  %5214 = vmatprep.subr.bf16.mxu0 %v6092_v41  ;;  %v120_v23 = vld [vmem:[#allocation5 + $0x60] sm:$0xff] }
 0x1c3   :  { %v5917_v59 = vcombine.low %v5886_v54, %v5887_v55  ;;  %5255 = vmatprep.subr.bf16.mxu1 %v6348_v43  ;;  %v368_v24 = vld [vmem:[#allocation5 + $0x820] sm:$0xff]  ;;  %v6028_v27 = vcombine.high %v112_v37, %v120_v23  ;;  %v6027_v34 = vcombine.low %v112_v37, %v120_v23 }
 0x1c4   :  { %v376_v12 = vld [vmem:[#allocation5 + $0x860] sm:$0xff] }
 0x1c5   :  { %v5931_v7 = vrot.slane %v5917_v59, %v6954_v53  ;;  %5215 = vmatpush1.bf16.msra.mxu0 %v6091_v22  ;;  %v6284_v28 = vcombine.high %v368_v24, %v376_v12  ;;  %v352_v29 = vld [vmem:[#allocation5 + $0x7a0] sm:$0xff]  ;;  %v6283_v21 = vcombine.low %v368_v24, %v376_v12 }
 0x1c6   :  { %5256 = vmatpush1.bf16.msra.mxu1 %v6347_v56  ;;  %5216 = vmatprep.subr.bf16.mxu0 %v6076_v58  ;;  %v616_v57 = vld [vmem:[#allocation5 + $0xfe0] sm:$0xff]  ;;  %v6268_v45 = vcombine.high %v352_v29, %v360_v31  ;;  %v6267_v42 = vcombine.low %v352_v29, %v360_v31  ;;  %v6236_v58 = vcombine.high %v320_v50, %v328_v51 }
 0x1c7   :  { %v5932_v13 = vcombine.low %v5924_v6, %v5931_v7  ;;  %5257 = vmatprep.subr.bf16.mxu1 %v6332_v60  ;;  %v6524_v35 = vcombine.high %v608_v32, %v616_v57  ;;  %v336_v39 = vld [vmem:[#allocation5 + $0x720] sm:$0xff]  ;;  %v6523_v43 = vcombine.low %v608_v32, %v616_v57 }
 0x1c8   :  { %v344_v63 = vld [vmem:[#allocation5 + $0x760] sm:$0xff] }
 0x1c9   :  { %5988 = vst [vmem:[#allocation10] sm:$0xff] %v5932_v13  ;;  %5217 = vmatpush1.bf16.msra.mxu0 %v6075_v8  ;;  %v592_v41 = vld [vmem:[#allocation5 + $0xf20] sm:$0xff]  ;;  %v6252_v47 = vcombine.high %v336_v39, %v344_v63  ;;  %v6251_v22 = vcombine.low %v336_v39, %v344_v63 }
 0x1ca   :  { %5258 = vmatpush1.bf16.msra.mxu1 %v6331_v9  ;;  %5218 = vmatprep.subr.bf16.mxu0 %v6060_v10  ;;  %v600_v5 = vld [vmem:[#allocation5 + $0xf60] sm:$0xff] }
 0x1cb   :  { %5259 = vmatprep.subr.bf16.mxu1 %v6316_v14  ;;  %v6508_v49 = vcombine.high %v592_v41, %v600_v5  ;;  %v576_v54 = vld [vmem:[#allocation5 + $0xea0] sm:$0xff]  ;;  %v6507_v56 = vcombine.low %v592_v41, %v600_v5 }
 0x1cc   :  { %v584_v55 = vld [vmem:[#allocation5 + $0xee0] sm:$0xff] }
 0x1cd   :  { %5219 = vmatpush1.bf16.msra.mxu0 %v6059_v20  ;;  %v6492_v59 = vcombine.high %v576_v54, %v584_v55  ;;  %v304_v60 = vld [vmem:[#allocation5 + $0x620] sm:$0xff]  ;;  %v6491_v6 = vcombine.low %v576_v54, %v584_v55 }
 0x1ce   :  { %5260 = vmatpush1.bf16.msra.mxu1 %v6315_v36  ;;  %5220 = vmatprep.subr.bf16.mxu0 %v6044_v38  ;;  %v312_v0 = vld [vmem:[#allocation5 + $0x660] sm:$0xff] }
 0x1cf   :  { %5261 = vmatprep.subr.bf16.mxu1 %v6300_v46  ;;  %v560_v1 = vld [vmem:[#allocation5 + $0xe20] sm:$0xff]  ;;  %v6220_v7 = vcombine.high %v304_v60, %v312_v0  ;;  %v6219_v15 = vcombine.low %v304_v60, %v312_v0 }
 0x1d0   :  { %v568_v3 = vld [vmem:[#allocation5 + $0xe60] sm:$0xff] }
 0x1d1   :  { %5221 = vmatpush1.bf16.msra.mxu0 %v6043_v25  ;;  %v6476_v8 = vcombine.high %v560_v1, %v568_v3  ;;  %v288_v9 = vld [vmem:[#allocation5 + $0x5a0] sm:$0xff]  ;;  %v6475_v17 = vcombine.low %v560_v1, %v568_v3 }
 0x1d2   :  { %5262 = vmatpush1.bf16.msra.mxu1 %v6299_v26  ;;  %5222 = vmatprep.subr.bf16.mxu0 %v6028_v27  ;;  %v296_v10 = vld [vmem:[#allocation5 + $0x5e0] sm:$0xff] }
 0x1d3   :  { %5263 = vmatprep.subr.bf16.mxu1 %v6284_v28  ;;  %v544_v13 = vld [vmem:[#allocation5 + $0xda0] sm:$0xff]  ;;  %v6204_v18 = vcombine.high %v288_v9, %v296_v10  ;;  %v6203_v37 = vcombine.low %v288_v9, %v296_v10  ;;  %v201_v9 = vld [vmem:[#allocation5 + $0x2e8] sm:$0xff] }
 0x1d4   :  { %v552_v14 = vld [vmem:[#allocation5 + $0xde0] sm:$0xff] }
 0x1d5   :  { %5223 = vmatpush1.bf16.msra.mxu0 %v6027_v34  ;;  %v6460_v19 = vcombine.high %v544_v13, %v552_v14  ;;  %v272_v20 = vld [vmem:[#allocation5 + $0x520] sm:$0xff]  ;;  %v6459_v23 = vcombine.low %v544_v13, %v552_v14 }
 0x1d6   :  { %5264 = vmatpush1.bf16.msra.mxu1 %v6283_v21  ;;  %5224 = vmatprep.subr.bf16.mxu0 %v6268_v45  ;;  %v280_v36 = vld [vmem:[#allocation5 + $0x560] sm:$0xff] }
 0x1d7   :  { %5265 = vmatprep.subr.bf16.mxu1 %v6524_v35  ;;  %v528_v38 = vld [vmem:[#allocation5 + $0xd20] sm:$0xff]  ;;  %v6188_v24 = vcombine.high %v272_v20, %v280_v36  ;;  %v6187_v29 = vcombine.low %v272_v20, %v280_v36 }
 0x1d8   :  { %v536_v46 = vld [vmem:[#allocation5 + $0xd60] sm:$0xff] }
 0x1d9   :  { %5225 = vmatpush2.bf16.msra.mxu0 %v6267_v42  ;;  %v6444_v12 = vcombine.high %v528_v38, %v536_v46  ;;  %v256_v25 = vld [vmem:[#allocation5 + $0x4a0] sm:$0xff]  ;;  %v6443_v31 = vcombine.low %v528_v38, %v536_v46 }
 0x1da   :  { %5266 = vmatpush2.bf16.msra.mxu1 %v6523_v43  ;;  %5226 = vmatprep.subr.bf16.mxu0 %v6252_v47  ;;  %v264_v26 = vld [vmem:[#allocation5 + $0x4e0] sm:$0xff]  ;;  %v225_v47 = vld [vmem:[#allocation5 + $0x3a8] sm:$0xff] }
 0x1db   :  { %5267 = vmatprep.subr.bf16.mxu1 %v6508_v49  ;;  %v512_v27 = vld [vmem:[#allocation5 + $0xca0] sm:$0xff]  ;;  %v6172_v32 = vcombine.high %v256_v25, %v264_v26  ;;  %v6171_v39 = vcombine.low %v256_v25, %v264_v26  ;;  %v233_v49 = vld [vmem:[#allocation5 + $0x3e8] sm:$0xff] }
 0x1dc   :  { %v520_v28 = vld [vmem:[#allocation5 + $0xce0] sm:$0xff]  ;;  %v6142_v55 = vcombine.high %v225_v47, %v233_v49  ;;  %v6141_v0 = vcombine.low %v225_v47, %v233_v49 }
 0x1dd   :  { %5227 = vmatpush2.bf16.msra.mxu0 %v6251_v22  ;;  %v6428_v57 = vcombine.high %v512_v27, %v520_v28  ;;  %v240_v34 = vld [vmem:[#allocation5 + $0x420] sm:$0xff]  ;;  %v6427_v63 = vcombine.low %v512_v27, %v520_v28 }
 0x1de   :  { %5268 = vmatpush2.bf16.msra.mxu1 %v6507_v56  ;;  %5228 = vmatprep.subr.bf16.mxu0 %v6236_v58  ;;  %v248_v21 = vld [vmem:[#allocation5 + $0x460] sm:$0xff]  ;;  %v209_v58 = vld [vmem:[#allocation5 + $0x328] sm:$0xff] }
 0x1df   :  { %5269 = vmatprep.subr.bf16.mxu1 %v6492_v59  ;;  %v496_v45 = vld [vmem:[#allocation5 + $0xc20] sm:$0xff]  ;;  %v6156_v41 = vcombine.high %v240_v34, %v248_v21  ;;  %v6155_v50 = vcombine.low %v240_v34, %v248_v21  ;;  %v217_v59 = vld [vmem:[#allocation5 + $0x368] sm:$0xff] }
 0x1e0   :  { %v504_v35 = vld [vmem:[#allocation5 + $0xc60] sm:$0xff]  ;;  %v6126_v3 = vcombine.high %v209_v58, %v217_v59  ;;  %v161_v34 = vld [vmem:[#allocation5 + $0x1a8] sm:$0xff] }
 0x1e1   :  { %5229 = vmatpush2.bf16.msra.mxu0 %v6235_v4  ;;  %v6412_v5 = vcombine.high %v496_v45, %v504_v35  ;;  %v736_v42 = vld [vmem:[#allocation5 + $0x13a0] sm:$0xff]  ;;  %v6411_v51 = vcombine.low %v496_v45, %v504_v35  ;;  %v169_v21 = vld [vmem:[#allocation5 + $0x1e8] sm:$0xff] }
 0x1e2   :  { %5270 = vmatpush2.bf16.msra.mxu1 %v6491_v6  ;;  %5230 = vmatprep.subr.bf16.mxu0 %v6220_v7  ;;  %v744_v43 = vld [vmem:[#allocation5 + $0x13e0] sm:$0xff]  ;;  %v6077_v49 = vcombine.low %v161_v34, %v169_v21 }
 0x1e3   :  { %5271 = vmatprep.subr.bf16.mxu1 %v6476_v8  ;;  %v6652_v54 = vcombine.high %v736_v42, %v744_v43  ;;  %v720_v22 = vld [vmem:[#allocation5 + $0x1320] sm:$0xff]  ;;  %v6651_v60 = vcombine.low %v736_v42, %v744_v43  ;;  %v193_v8 = vld [vmem:[#allocation5 + $0x2a8] sm:$0xff] }
 0x1e4   :  { %v728_v56 = vld [vmem:[#allocation5 + $0x1360] sm:$0xff]  ;;  %v6110_v20 = vcombine.high %v193_v8, %v201_v9  ;;  %v6109_v27 = vcombine.low %v193_v8, %v201_v9  ;;  %v145_v42 = vld [vmem:[#allocation5 + $0x128] sm:$0xff] }
 0x1e5   :  { %5231 = vmatpush2.bf16.msra.mxu0 %v6219_v15  ;;  %v6636_v1 = vcombine.high %v720_v22, %v728_v56  ;;  %v704_v4 = vld [vmem:[#allocation5 + $0x12a0] sm:$0xff]  ;;  %v6635_v13 = vcombine.low %v720_v22, %v728_v56  ;;  %v153_v43 = vld [vmem:[#allocation5 + $0x168] sm:$0xff] }
 0x1e6   :  { %5272 = vmatpush2.bf16.msra.mxu1 %v6475_v17  ;;  %5232 = vmatprep.subr.bf16.mxu0 %v6204_v18  ;;  %v712_v6 = vld [vmem:[#allocation5 + $0x12e0] sm:$0xff]  ;;  %v6125_v17 = vcombine.low %v209_v58, %v217_v59  ;;  %v129_v22 = vld [vmem:[#allocation5 + $0xa8] sm:$0xff]  ;;  %v6061_v59 = vcombine.low %v145_v42, %v153_v43 }
 0x1e7   :  { %5273 = vmatprep.subr.bf16.mxu1 %v6460_v19  ;;  %v6620_v18 = vcombine.high %v704_v4, %v712_v6  ;;  %v688_v36 = vld [vmem:[#allocation5 + $0x1220] sm:$0xff]  ;;  %v6619_v25 = vcombine.low %v704_v4, %v712_v6  ;;  %v137_v56 = vld [vmem:[#allocation5 + $0xe8] sm:$0xff] }
 0x1e8   :  { %v696_v38 = vld [vmem:[#allocation5 + $0x1260] sm:$0xff]  ;;  %v113_v4 = vld [vmem:[#allocation5 + $0x28] sm:$0xff]  ;;  %v6045_v8 = vcombine.low %v129_v22, %v137_v56 }
 0x1e9   :  { %5233 = vmatpush2.bf16.msra.mxu0 %v6203_v37  ;;  %v6604_v28 = vcombine.high %v688_v36, %v696_v38  ;;  %v6603_v45 = vcombine.low %v688_v36, %v696_v38  ;;  %v121_v6 = vld [vmem:[#allocation5 + $0x68] sm:$0xff] }
 0x1ea   :  { %5274 = vmatpush2.bf16.msra.mxu1 %v6459_v23  ;;  %5234 = vmatprep.subr.bf16.mxu0 %v6188_v24  ;;  %v177_v23 = vld [vmem:[#allocation5 + $0x228] sm:$0xff] }
 0x1eb   :  { %5275 = vmatprep.subr.bf16.mxu1 %v6444_v12  ;;  %v185_v24 = vld [vmem:[#allocation5 + $0x268] sm:$0xff] }
 0x1ec   :  { %v6093_v35 = vcombine.low %v177_v23, %v185_v24 }
 0x1ed   :  { %5235 = vmatpush2.bf16.msra.mxu0 %v6187_v29 }
 0x1ee   :  { %5276 = vmatpush2.bf16.msra.mxu1 %v6443_v31  ;;  %5236 = vmatprep.subr.bf16.mxu0 %v6172_v32  ;;  %v6094_v31 = vcombine.high %v177_v23, %v185_v24  ;;  %v672_v32 = vld [vmem:[#allocation5 + $0x11a0] sm:$0xff]  ;;  %v337_v24 = vld [vmem:[#allocation5 + $0x728] sm:$0xff] }
 0x1ef   :  { %5277 = vmatprep.subr.bf16.mxu1 %v6428_v57  ;;  %v680_v57 = vld [vmem:[#allocation5 + $0x11e0] sm:$0xff] }
 0x1f0   :  { %v6587_v47 = vcombine.low %v672_v32, %v680_v57  ;;  %v856_v23 = vld [vmem:[#allocation5 + $0x1760] sm:$0xff] }
 0x1f1   :  { %5237 = vmatpush2.bf16.msra.mxu0 %v6171_v39  ;;  %v6588_v39 = vcombine.high %v672_v32, %v680_v57  ;;  %v321_v32 = vld [vmem:[#allocation5 + $0x6a8] sm:$0xff] }
 0x1f2   :  { %5278 = vmatpush2.bf16.msra.mxu1 %v6427_v63  ;;  %5238 = vmatprep.subr.bf16.mxu0 %v6156_v41  ;;  %v6078_v63 = vcombine.high %v161_v34, %v169_v21  ;;  %v656_v41 = vld [vmem:[#allocation5 + $0x1120] sm:$0xff]  ;;  %v329_v57 = vld [vmem:[#allocation5 + $0x6e8] sm:$0xff] }
 0x1f3   :  { %5279 = vmatprep.subr.bf16.mxu1 %v6412_v5  ;;  %v664_v5 = vld [vmem:[#allocation5 + $0x1160] sm:$0xff] }
 0x1f4   :  { %v6571_v58 = vcombine.low %v656_v41, %v664_v5 }
 0x1f5   :  { %5239 = vmatpush2.bf16.msra.mxu0 %v6155_v50  ;;  %v6572_v50 = vcombine.high %v656_v41, %v664_v5  ;;  %v305_v41 = vld [vmem:[#allocation5 + $0x628] sm:$0xff] }
 0x1f6   :  { %5280 = vmatpush2.bf16.msra.mxu1 %v6411_v51  ;;  %5290 = vmatprep.subr.bf16.mxu0 %v6652_v54  ;;  %v6062_v51 = vcombine.high %v145_v42, %v153_v43  ;;  %v640_v54 = vld [vmem:[#allocation5 + $0x10a0] sm:$0xff]  ;;  %v313_v5 = vld [vmem:[#allocation5 + $0x668] sm:$0xff]  ;;  %v6237_v43 = vcombine.low %v321_v32, %v329_v57 }
 0x1f7   :  { %5331 = vmatprep.subr.bf16.mxu1 %v6142_v55  ;;  %v648_v55 = vld [vmem:[#allocation5 + $0x10e0] sm:$0xff] }
 0x1f8   :  { %v4996_v7 = vpop.f32.mrf.mxu0  ;;  %5241 = vmatmul.mubr.bf16.vlgmr.msra.gmra.mxu0 %v6978_v30 }
 0x1f9   :  { %v5037_v10 = vpop.f32.mrf.mxu1  ;;  %5282 = vmatmul.mubr.bf16.vlgmr.msra.gmra.mxu1 %v6982_v33  ;;  %5291 = vmatpush1.bf16.msra.mxu0 %v6651_v60  ;;  %v6556_v60 = vcombine.high %v640_v54, %v648_v55 }
 0x1fa   :  { %v7071_v14 = vadd.f32 %v5037_v10, %v4996_v7  ;;  %5332 = vmatpush1.bf16.msra.mxu1 %v6141_v0  ;;  %v4998_v15 = vpop.f32.mrf.mxu0  ;;  %5292 = vmatprep.subr.bf16.mxu0 %v6636_v1  ;;  %v6046_v0 = vcombine.high %v129_v22, %v137_v56  ;;  %v624_v1 = vld [vmem:[#allocation5 + $0x1020] sm:$0xff]  ;;  %v6555_v7 = vcombine.low %v640_v54, %v648_v55  ;;  %v289_v54 = vld [vmem:[#allocation5 + $0x5a8] sm:$0xff] }
 0x1fb   :  { %v5039_v19 = vpop.f32.mrf.mxu1  ;;  %5333 = vmatprep.subr.bf16.mxu1 %v6126_v3  ;;  %5322 = vmatprep.mubr.bf16.mxu0 %v6984_v40  ;;  %v632_v3 = vld [vmem:[#allocation5 + $0x1060] sm:$0xff]  ;;  %v6030_v10 = vcombine.high %v113_v4, %v121_v6  ;;  %v297_v55 = vld [vmem:[#allocation5 + $0x5e8] sm:$0xff]  ;;  %v6221_v56 = vcombine.low %v305_v41, %v313_v5 }
 0x1fc   :  { %v7074_v46 = vadd.f32 %v5039_v19, %v4998_v15  ;;  %v5000_v37 = vpop.f32.mrf.mxu0  ;;  %5363 = vmatprep.mubr.bf16.mxu1 %v6964_v11  ;;  %v6540_v9 = vcombine.high %v624_v1, %v632_v3  ;;  %v872_v15 = vld [vmem:[#allocation5 + $0x17e0] sm:$0xff]  ;;  %v6539_v19 = vcombine.low %v624_v1, %v632_v3  ;;  %v273_v1 = vld [vmem:[#allocation5 + $0x528] sm:$0xff] }
 0x1fd   :  { %v5041_v12 = vpop.f32.mrf.mxu1  ;;  %5293 = vmatpush1.bf16.msra.mxu0 %v6635_v13  ;;  %v864_v13 = vld [vmem:[#allocation5 + $0x17a0] sm:$0xff]  ;;  %v281_v3 = vld [vmem:[#allocation5 + $0x568] sm:$0xff] }
 0x1fe   :  { %5334 = vmatpush1.bf16.msra.mxu1 %v6125_v17  ;;  %v5001_v26 = vpop.f32.mrf.mxu0  ;;  %5294 = vmatprep.subr.bf16.mxu0 %v6620_v18  ;;  %v353_v17 = vld [vmem:[#allocation5 + $0x7a8] sm:$0xff]  ;;  %v6780_v36 = vcombine.high %v864_v13, %v872_v15  ;;  %v848_v37 = vld [vmem:[#allocation5 + $0x1720] sm:$0xff] }
 0x1ff   :  { %v5042_v29 = vpop.f32.mrf.mxu1  ;;  %5335 = vmatprep.subr.bf16.mxu1 %v6110_v20  ;;  %v361_v18 = vld [vmem:[#allocation5 + $0x7e8] sm:$0xff]  ;;  %v6029_v20 = vcombine.low %v113_v4, %v121_v6  ;;  %v6763_v34 = vcombine.low %v848_v37, %v856_v23  ;;  %v6205_v6 = vcombine.low %v289_v54, %v297_v55 }
 0x200   :  { %v6270_v38 = vcombine.high %v353_v17, %v361_v18  ;;  %v345_v12 = vld [vmem:[#allocation5 + $0x768] sm:$0xff]  ;;  %v6269_v26 = vcombine.low %v353_v17, %v361_v18  ;;  %v832_v29 = vld [vmem:[#allocation5 + $0x16a0] sm:$0xff]  ;;  %v6189_v18 = vcombine.low %v273_v1, %v281_v3 }
 0x201   :  { %5295 = vmatpush1.bf16.msra.mxu0 %v6619_v25  ;;  %v6779_v25 = vcombine.low %v864_v13, %v872_v15  ;;  %v6253_v21 = vcombine.low %v337_v24, %v345_v12  ;;  %v257_v13 = vld [vmem:[#allocation5 + $0x4a8] sm:$0xff] }
 0x202   :  { %5336 = vmatpush1.bf16.msra.mxu1 %v6109_v27  ;;  %5296 = vmatprep.subr.bf16.mxu0 %v6604_v28  ;;  %v6764_v27 = vcombine.high %v848_v37, %v856_v23  ;;  %v6254_v28 = vcombine.high %v337_v24, %v345_v12  ;;  %v265_v15 = vld [vmem:[#allocation5 + $0x4e8] sm:$0xff] }
 0x203   :  { %5337 = vmatprep.subr.bf16.mxu1 %v6094_v31  ;;  %v840_v31 = vld [vmem:[#allocation5 + $0x16e0] sm:$0xff]  ;;  %v241_v37 = vld [vmem:[#allocation5 + $0x428] sm:$0xff]  ;;  %v6173_v12 = vcombine.low %v257_v13, %v265_v15 }
 0x204   :  { %v6747_v42 = vcombine.low %v832_v29, %v840_v31  ;;  %v249_v23 = vld [vmem:[#allocation5 + $0x468] sm:$0xff] }
 0x205   :  { %5297 = vmatpush1.bf16.msra.mxu0 %v6603_v45  ;;  %v6748_v45 = vcombine.high %v832_v29, %v840_v31  ;;  %v737_v29 = vld [vmem:[#allocation5 + $0x13a8] sm:$0xff] }
 0x206   :  { %5338 = vmatpush1.bf16.msra.mxu1 %v6093_v35  ;;  %5298 = vmatprep.subr.bf16.mxu0 %v6588_v39  ;;  %v6238_v35 = vcombine.high %v321_v32, %v329_v57  ;;  %v816_v39 = vld [vmem:[#allocation5 + $0x1620] sm:$0xff]  ;;  %v745_v31 = vld [vmem:[#allocation5 + $0x13e8] sm:$0xff]  ;;  %v6157_v57 = vcombine.low %v241_v37, %v249_v23 }
 0x207   :  { %5339 = vmatprep.subr.bf16.mxu1 %v6078_v63  ;;  %v824_v63 = vld [vmem:[#allocation5 + $0x1660] sm:$0xff] }
 0x208   :  { %v6731_v22 = vcombine.low %v816_v39, %v824_v63 }
 0x209   :  { %5299 = vmatpush1.bf16.msra.mxu0 %v6587_v47  ;;  %v6732_v47 = vcombine.high %v816_v39, %v824_v63  ;;  %v473_v39 = vld [vmem:[#allocation5 + $0xb68] sm:$0xff] }
 0x20a   :  { %5340 = vmatpush1.bf16.msra.mxu1 %v6077_v49  ;;  %5300 = vmatprep.subr.bf16.mxu0 %v6572_v50  ;;  %v6222_v49 = vcombine.high %v305_v41, %v313_v5  ;;  %v800_v50 = vld [vmem:[#allocation5 + $0x15a0] sm:$0xff]  ;;  %v721_v63 = vld [vmem:[#allocation5 + $0x1328] sm:$0xff] }
 0x20b   :  { %5341 = vmatprep.subr.bf16.mxu1 %v6062_v51  ;;  %v808_v51 = vld [vmem:[#allocation5 + $0x15e0] sm:$0xff]  ;;  %v729_v41 = vld [vmem:[#allocation5 + $0x1368] sm:$0xff] }
 0x20c   :  { %v6715_v4 = vcombine.low %v800_v50, %v808_v51 }
 0x20d   :  { %5301 = vmatpush1.bf16.msra.mxu0 %v6571_v58  ;;  %v6716_v58 = vcombine.high %v800_v50, %v808_v51  ;;  %v6638_v51 = vcombine.high %v721_v63, %v729_v41 }
 0x20e   :  { %5342 = vmatpush1.bf16.msra.mxu1 %v6061_v59  ;;  %5302 = vmatprep.subr.bf16.mxu0 %v6556_v60  ;;  %v6206_v59 = vcombine.high %v289_v54, %v297_v55  ;;  %v784_v60 = vld [vmem:[#allocation5 + $0x1520] sm:$0xff]  ;;  %v449_v54 = vld [vmem:[#allocation5 + $0xaa8] sm:$0xff] }
 0x20f   :  { %5343 = vmatprep.subr.bf16.mxu1 %v6046_v0  ;;  %v792_v0 = vld [vmem:[#allocation5 + $0x1560] sm:$0xff]  ;;  %v457_v55 = vld [vmem:[#allocation5 + $0xae8] sm:$0xff] }
 0x210   :  { %v6699_v17 = vcombine.low %v784_v60, %v792_v0 }
 0x211   :  { %5303 = vmatpush1.bf16.msra.mxu0 %v6555_v7  ;;  %v6700_v7 = vcombine.high %v784_v60, %v792_v0  ;;  %v713_v60 = vld [vmem:[#allocation5 + $0x12e8] sm:$0xff] }
 0x212   :  { %5344 = vmatpush1.bf16.msra.mxu1 %v6045_v8  ;;  %5304 = vmatprep.subr.bf16.mxu0 %v6540_v9  ;;  %v6190_v8 = vcombine.high %v273_v1, %v281_v3  ;;  %v768_v9 = vld [vmem:[#allocation5 + $0x14a0] sm:$0xff] }
 0x213   :  { %5345 = vmatprep.subr.bf16.mxu1 %v6030_v10  ;;  %v776_v10 = vld [vmem:[#allocation5 + $0x14e0] sm:$0xff] }
 0x214   :  { %v6683_v24 = vcombine.low %v768_v9, %v776_v10 }
 0x215   :  { %5305 = vmatpush1.bf16.msra.mxu0 %v6539_v19  ;;  %v6684_v19 = vcombine.high %v768_v9, %v776_v10  ;;  %v6366_v9 = vcombine.high %v449_v54, %v457_v55 }
 0x216   :  { %5346 = vmatpush1.bf16.msra.mxu1 %v6029_v20  ;;  %5306 = vmatprep.subr.bf16.mxu0 %v6780_v36  ;;  %v6174_v20 = vcombine.high %v257_v13, %v265_v15  ;;  %v752_v36 = vld [vmem:[#allocation5 + $0x1420] sm:$0xff] }
 0x217   :  { %5347 = vmatprep.subr.bf16.mxu1 %v6270_v38  ;;  %v760_v38 = vld [vmem:[#allocation5 + $0x1460] sm:$0xff] }
 0x218   :  { %v6667_v32 = vcombine.low %v752_v36, %v760_v38 }
 0x219   :  { %5307 = vmatpush2.bf16.msra.mxu0 %v6779_v25  ;;  %v6668_v25 = vcombine.high %v752_v36, %v760_v38  ;;  %v697_v36 = vld [vmem:[#allocation5 + $0x1268] sm:$0xff] }
 0x21a   :  { %5348 = vmatpush2.bf16.msra.mxu1 %v6269_v26  ;;  %5308 = vmatprep.subr.bf16.mxu0 %v6764_v27  ;;  %v6158_v26 = vcombine.high %v241_v37, %v249_v23  ;;  %v481_v27 = vld [vmem:[#allocation5 + $0xba8] sm:$0xff]  ;;  %v6365_v23 = vcombine.low %v449_v54, %v457_v55 }
 0x21b   :  { %5349 = vmatprep.subr.bf16.mxu1 %v6254_v28  ;;  %v489_v28 = vld [vmem:[#allocation5 + $0xbe8] sm:$0xff] }
 0x21c   :  { %v6397_v5 = vcombine.low %v481_v27, %v489_v28 }
 0x21d   :  { %5309 = vmatpush2.bf16.msra.mxu0 %v6763_v34  ;;  %v6398_v34 = vcombine.high %v481_v27, %v489_v28 }
 0x21e   :  { %5350 = vmatpush2.bf16.msra.mxu1 %v6253_v21  ;;  %5310 = vmatprep.subr.bf16.mxu0 %v6748_v45  ;;  %v7078_v21 = vsub.s32 4, %v6951_v44  ;;  %v6654_v45 = vcombine.high %v737_v29, %v745_v31 }
 0x21f   :  { %5351 = vmatprep.subr.bf16.mxu1 %v6238_v35  ;;  %v465_v35 = vld [vmem:[#allocation5 + $0xb28] sm:$0xff] }
 0x221   :  { %5311 = vmatpush2.bf16.msra.mxu0 %v6747_v42  ;;  %v7081_v42 = vsub.s32 5, %v6951_v44 }
 0x222   :  { %5352 = vmatpush2.bf16.msra.mxu1 %v6237_v43  ;;  %5312 = vmatprep.subr.bf16.mxu0 %v6732_v47  ;;  %v6653_v43 = vcombine.low %v737_v29, %v745_v31  ;;  %v6382_v47 = vcombine.high %v465_v35, %v473_v39  ;;  %v417_v29 = vld [vmem:[#allocation5 + $0x9a8] sm:$0xff] }
 0x223   :  { %5353 = vmatprep.subr.bf16.mxu1 %v6222_v49  ;;  %v7083_v49 = vld [vmem:[#allocation7] sm:$0xff]  ;;  %v425_v31 = vld [vmem:[#allocation5 + $0x9e8] sm:$0xff] }
 0x224   :  { %v5723_v50 = vrot.slane %v7083_v49, %v7078_v21  ;;  %v5727_v3 = vrot.slane %v7083_v49, %v7081_v42 }
 0x225   :  { %5313 = vmatpush2.bf16.msra.mxu0 %v6731_v22 }
 0x226   :  { %5354 = vmatpush2.bf16.msra.mxu1 %v6221_v56  ;;  %5314 = vmatprep.subr.bf16.mxu0 %v6716_v58  ;;  %v7087_v56 = vld [vmem:[#allocation8] sm:$0xff] }
 0x227   :  { %5355 = vmatprep.subr.bf16.mxu1 %v6206_v59  ;;  %v5823_v58 = vrot.slane %v7087_v56, %v7078_v21  ;;  %v705_v59 = vld [vmem:[#allocation5 + $0x12a8] sm:$0xff] }
 0x228   :  { %v6622_v15 = vcombine.high %v705_v59, %v713_v60 }
 0x229   :  { %5315 = vmatpush2.bf16.msra.mxu0 %v6715_v4  ;;  %v6381_v4 = vcombine.low %v465_v35, %v473_v39  ;;  %v6334_v39 = vcombine.high %v417_v29, %v425_v31 }
 0x22a   :  { %5356 = vmatpush2.bf16.msra.mxu1 %v6205_v6  ;;  %5316 = vmatprep.subr.bf16.mxu0 %v6700_v7  ;;  %v5827_v7 = vrot.slane %v7087_v56, %v7081_v42 }
 0x22b   :  { %5357 = vmatprep.subr.bf16.mxu1 %v6190_v8  ;;  %v6637_v8 = vcombine.low %v721_v63, %v729_v41  ;;  %v401_v41 = vld [vmem:[#allocation5 + $0x928] sm:$0xff] }
 0x22d   :  { %5317 = vmatpush2.bf16.msra.mxu0 %v6699_v17  ;;  %v433_v17 = vld [vmem:[#allocation5 + $0xa28] sm:$0xff] }
 0x22e   :  { %5358 = vmatpush2.bf16.msra.mxu1 %v6189_v18  ;;  %5318 = vmatprep.subr.bf16.mxu0 %v6684_v19  ;;  %v441_v18 = vld [vmem:[#allocation5 + $0xa68] sm:$0xff] }
 0x22f   :  { %5359 = vmatprep.subr.bf16.mxu1 %v6174_v20  ;;  %v689_v20 = vld [vmem:[#allocation5 + $0x1228] sm:$0xff] }
 0x230   :  { %v6606_v28 = vcombine.high %v689_v20, %v697_v36  ;;  %v6605_v35 = vcombine.low %v689_v20, %v697_v36  ;;  %v617_v20 = vld [vmem:[#allocation5 + $0xfe8] sm:$0xff] }
 0x231   :  { %5319 = vmatpush2.bf16.msra.mxu0 %v6683_v24  ;;  %v865_v36 = vld [vmem:[#allocation5 + $0x17a8] sm:$0xff] }
 0x232   :  { %5360 = vmatpush2.bf16.msra.mxu1 %v6173_v12  ;;  %5320 = vmatprep.subr.bf16.mxu0 %v6668_v25  ;;  %v6350_v12 = vcombine.high %v433_v17, %v441_v18 }
 0x233   :  { %5361 = vmatprep.subr.bf16.mxu1 %v6158_v26 }
 0x235   :  { %5321 = vmatpush2.bf16.msra.mxu0 %v6667_v32  ;;  %v673_v32 = vld [vmem:[#allocation5 + $0x11a8] sm:$0xff] }
 0x236   :  { %5362 = vmatpush2.bf16.msra.mxu1 %v6157_v57  ;;  %5372 = vmatprep.subr.bf16.mxu0 %v6398_v34  ;;  %v681_v57 = vld [vmem:[#allocation5 + $0x11e8] sm:$0xff] }
 0x237   :  { %5413 = vmatprep.subr.bf16.mxu1 %v6654_v45  ;;  %v6349_v45 = vcombine.low %v433_v17, %v441_v18  ;;  %v6590_v63 = vcombine.high %v673_v32, %v681_v57 }
 0x238   :  { %v5078_v22 = vpop.f32.mrf.mxu0  ;;  %5323 = vmatmul.mubr.bf16.vlgmr.msra.gmra.mxu0 %v6992_v48 }
 0x239   :  { %v5079_v0 = vadd.f32 %v5078_v22, %v7071_v14  ;;  %v7093_v1 = vpop.f32.mrf.mxu1  ;;  %5364 = vmatmul.mubr.bf16.vlgmr.msra.gmra.mxu1 %v6978_v30  ;;  %5373 = vmatpush1.bf16.msra.mxu0 %v6397_v5  ;;  %v409_v5 = vld [vmem:[#allocation5 + $0x968] sm:$0xff] }
 0x23a   :  { %5414 = vmatpush1.bf16.msra.mxu1 %v6653_v43  ;;  %v5080_v6 = vpop.f32.mrf.mxu0  ;;  %5374 = vmatprep.subr.bf16.mxu0 %v6382_v47  ;;  %v657_v43 = vld [vmem:[#allocation5 + $0x1128] sm:$0xff]  ;;  %v6318_v54 = vcombine.high %v401_v41, %v409_v5 }
 0x23b   :  { %v5788_v10 = vmul.f32 %v5723_v50, %v5079_v0  ;;  %v5081_v14 = vadd.f32 %v5080_v6, %v7074_v46  ;;  %v7101_v13 = vpop.f32.mrf.mxu1  ;;  %5415 = vmatprep.subr.bf16.mxu1 %v6638_v51  ;;  %5404 = vmatprep.mubr.bf16.mxu0 %v6969_v16  ;;  %v6621_v46 = vcombine.low %v705_v59, %v713_v60  ;;  %v665_v47 = vld [vmem:[#allocation5 + $0x1168] sm:$0xff] }
 0x23c   :  { %v5082_v19 = vpop.f32.mrf.mxu0  ;;  %5445 = vmatprep.mubr.bf16.mxu1 %v6984_v40  ;;  %v6333_v50 = vcombine.low %v417_v29, %v425_v31  ;;  %v6589_v51 = vcombine.low %v673_v32, %v681_v57  ;;  %v6574_v55 = vcombine.high %v657_v43, %v665_v47  ;;  %v385_v22 = vld [vmem:[#allocation5 + $0x8a8] sm:$0xff]  ;;  %v6317_v0 = vcombine.low %v401_v41, %v409_v5 }
 0x23d   :  { %v5789_v38 = vmul.f32 %v5727_v3, %v5081_v14  ;;  %v5123_v37 = vpop.f32.mrf.mxu1  ;;  %5375 = vmatpush1.bf16.msra.mxu0 %v6381_v4  ;;  %v7105_v25 = vadd.f32 %v5823_v58, %v5788_v10  ;;  %v393_v58 = vld [vmem:[#allocation5 + $0x8e8] sm:$0xff]  ;;  %v6573_v3 = vcombine.low %v657_v43, %v665_v47 }
 0x23e   :  { %5416 = vmatpush1.bf16.msra.mxu1 %v6637_v8  ;;  %v5083_v24 = vpop.f32.mrf.mxu0  ;;  %5376 = vmatprep.subr.bf16.mxu0 %v6366_v9  ;;  %v641_v59 = vld [vmem:[#allocation5 + $0x10a8] sm:$0xff]  ;;  %v6302_v4 = vcombine.high %v385_v22, %v393_v58  ;;  %v6301_v14 = vcombine.low %v385_v22, %v393_v58 }
 0x23f   :  { %v7107_v26 = vadd.f32 %v5827_v7, %v5789_v38  ;;  %v5124_v27 = vpop.f32.mrf.mxu1  ;;  %5417 = vmatprep.subr.bf16.mxu1 %v6622_v15  ;;  %v649_v60 = vld [vmem:[#allocation5 + $0x10e8] sm:$0xff] }
 0x240   :  { %v6558_v6 = vcombine.high %v641_v59, %v649_v60  ;;  %v369_v7 = vld [vmem:[#allocation5 + $0x828] sm:$0xff]  ;;  %v6557_v15 = vcombine.low %v641_v59, %v649_v60 }
 0x241   :  { %v5933_v34 = vcombine.low %v7105_v25, %v7107_v26  ;;  %5377 = vmatpush1.bf16.msra.mxu0 %v6365_v23  ;;  %v377_v8 = vld [vmem:[#allocation5 + $0x868] sm:$0xff] }
 0x242   :  { %5418 = vmatpush1.bf16.msra.mxu1 %v6621_v46  ;;  %5378 = vmatprep.subr.bf16.mxu0 %v6350_v12  ;;  %v625_v9 = vld [vmem:[#allocation5 + $0x1028] sm:$0xff]  ;;  %v6286_v17 = vcombine.high %v369_v7, %v377_v8  ;;  %v6285_v37 = vcombine.low %v369_v7, %v377_v8 }
 0x243   :  { %5419 = vmatprep.subr.bf16.mxu1 %v6606_v28  ;;  %v633_v10 = vld [vmem:[#allocation5 + $0x1068] sm:$0xff] }
 0x244   :  { %v6542_v18 = vcombine.high %v625_v9, %v633_v10  ;;  %v609_v19 = vld [vmem:[#allocation5 + $0xfa8] sm:$0xff]  ;;  %v6541_v23 = vcombine.low %v625_v9, %v633_v10 }
 0x245   :  { %5379 = vmatpush1.bf16.msra.mxu0 %v6349_v45  ;;  %v873_v38 = vld [vmem:[#allocation5 + $0x17e8] sm:$0xff]  ;;  %v6526_v24 = vcombine.high %v609_v19, %v617_v20  ;;  %v6525_v31 = vcombine.low %v609_v19, %v617_v20 }
 0x246   :  { %5420 = vmatpush1.bf16.msra.mxu1 %v6605_v35  ;;  %5380 = vmatprep.subr.bf16.mxu0 %v6334_v39  ;;  %v6782_v46 = vcombine.high %v865_v36, %v873_v38  ;;  %v593_v12 = vld [vmem:[#allocation5 + $0xf28] sm:$0xff]  ;;  %v6781_v32 = vcombine.low %v865_v36, %v873_v38 }
 0x247   :  { %5421 = vmatprep.subr.bf16.mxu1 %v6590_v63  ;;  %v601_v27 = vld [vmem:[#allocation5 + $0xf68] sm:$0xff] }
 0x248   :  { %v849_v28 = vld [vmem:[#allocation5 + $0x1728] sm:$0xff]  ;;  %v6510_v57 = vcombine.high %v593_v12, %v601_v27  ;;  %v6509_v5 = vcombine.low %v593_v12, %v601_v27 }
 0x249   :  { %5381 = vmatpush1.bf16.msra.mxu0 %v6333_v50  ;;  %v857_v29 = vld [vmem:[#allocation5 + $0x1768] sm:$0xff] }
 0x24a   :  { %5422 = vmatpush1.bf16.msra.mxu1 %v6589_v51  ;;  %5382 = vmatprep.subr.bf16.mxu0 %v6318_v54  ;;  %v6766_v45 = vcombine.high %v849_v28, %v857_v29  ;;  %v577_v35 = vld [vmem:[#allocation5 + $0xea8] sm:$0xff]  ;;  %v6765_v43 = vcombine.low %v849_v28, %v857_v29 }
 0x24b   :  { %5423 = vmatprep.subr.bf16.mxu1 %v6574_v55  ;;  %v585_v39 = vld [vmem:[#allocation5 + $0xee8] sm:$0xff] }
 0x24c   :  { %v833_v63 = vld [vmem:[#allocation5 + $0x16a8] sm:$0xff]  ;;  %v6494_v47 = vcombine.high %v577_v35, %v585_v39  ;;  %v6493_v58 = vcombine.low %v577_v35, %v585_v39 }
 0x24d   :  { %5383 = vmatpush1.bf16.msra.mxu0 %v6317_v0  ;;  %v841_v41 = vld [vmem:[#allocation5 + $0x16e8] sm:$0xff] }
 0x24e   :  { %5424 = vmatpush1.bf16.msra.mxu1 %v6573_v3  ;;  %5384 = vmatprep.subr.bf16.mxu0 %v6302_v4  ;;  %v6750_v50 = vcombine.high %v833_v63, %v841_v41  ;;  %v561_v51 = vld [vmem:[#allocation5 + $0xe28] sm:$0xff]  ;;  %v6749_v59 = vcombine.low %v833_v63, %v841_v41 }
 0x24f   :  { %5425 = vmatprep.subr.bf16.mxu1 %v6558_v6  ;;  %v569_v54 = vld [vmem:[#allocation5 + $0xe68] sm:$0xff] }
 0x250   :  { %v817_v55 = vld [vmem:[#allocation5 + $0x1628] sm:$0xff]  ;;  %v6478_v60 = vcombine.high %v561_v51, %v569_v54  ;;  %v6477_v8 = vcombine.low %v561_v51, %v569_v54  ;;  %v490_v51 = vld [vmem:[#allocation5 + $0xbf0] sm:$0xff] }
 0x251   :  { %5385 = vmatpush1.bf16.msra.mxu0 %v6301_v14  ;;  %v825_v22 = vld [vmem:[#allocation5 + $0x1668] sm:$0xff] }
 0x252   :  { %5426 = vmatpush1.bf16.msra.mxu1 %v6557_v15  ;;  %5386 = vmatprep.subr.bf16.mxu0 %v6286_v17  ;;  %v6734_v0 = vcombine.high %v817_v55, %v825_v22  ;;  %v545_v3 = vld [vmem:[#allocation5 + $0xda8] sm:$0xff]  ;;  %v6733_v9 = vcombine.low %v817_v55, %v825_v22 }
 0x253   :  { %5427 = vmatprep.subr.bf16.mxu1 %v6542_v18  ;;  %v553_v4 = vld [vmem:[#allocation5 + $0xde8] sm:$0xff] }
 0x254   :  { %v801_v6 = vld [vmem:[#allocation5 + $0x15a8] sm:$0xff]  ;;  %v6462_v10 = vcombine.high %v545_v3, %v553_v4  ;;  %v6461_v20 = vcombine.low %v545_v3, %v553_v4  ;;  %v474_v3 = vld [vmem:[#allocation5 + $0xb70] sm:$0xff]  ;;  %v7112_v4 = vsub.s32 6, %v6951_v44 }
 0x255   :  { %5387 = vmatpush1.bf16.msra.mxu0 %v6285_v37  ;;  %v809_v7 = vld [vmem:[#allocation5 + $0x15e8] sm:$0xff] }
 0x256   :  { %5428 = vmatpush1.bf16.msra.mxu1 %v6541_v23  ;;  %5388 = vmatprep.subr.bf16.mxu0 %v6526_v24  ;;  %v6718_v14 = vcombine.high %v801_v6, %v809_v7  ;;  %v529_v15 = vld [vmem:[#allocation5 + $0xd28] sm:$0xff]  ;;  %v6717_v36 = vcombine.low %v801_v6, %v809_v7 }
 0x257   :  { %5429 = vmatprep.subr.bf16.mxu1 %v6782_v46  ;;  %v537_v17 = vld [vmem:[#allocation5 + $0xd68] sm:$0xff] }
 0x258   :  { %v785_v18 = vld [vmem:[#allocation5 + $0x1528] sm:$0xff]  ;;  %v6446_v38 = vcombine.high %v529_v15, %v537_v17  ;;  %v6445_v27 = vcombine.low %v529_v15, %v537_v17  ;;  %v202_v15 = vld [vmem:[#allocation5 + $0x2f0] sm:$0xff] }
 0x259   :  { %5389 = vmatpush2.bf16.msra.mxu0 %v6525_v31  ;;  %v793_v19 = vld [vmem:[#allocation5 + $0x1568] sm:$0xff] }
 0x25a   :  { %5430 = vmatpush2.bf16.msra.mxu1 %v6781_v32  ;;  %5390 = vmatprep.subr.bf16.mxu0 %v6510_v57  ;;  %v6702_v37 = vcombine.high %v785_v18, %v793_v19  ;;  %v513_v23 = vld [vmem:[#allocation5 + $0xca8] sm:$0xff]  ;;  %v6701_v28 = vcombine.low %v785_v18, %v793_v19  ;;  %v450_v18 = vld [vmem:[#allocation5 + $0xab0] sm:$0xff] }
 0x25b   :  { %5431 = vmatprep.subr.bf16.mxu1 %v6766_v45  ;;  %v521_v24 = vld [vmem:[#allocation5 + $0xce8] sm:$0xff]  ;;  %v458_v19 = vld [vmem:[#allocation5 + $0xaf0] sm:$0xff] }
 0x25c   :  { %v769_v46 = vld [vmem:[#allocation5 + $0x14a8] sm:$0xff]  ;;  %v6430_v29 = vcombine.high %v513_v23, %v521_v24  ;;  %v6429_v39 = vcombine.low %v513_v23, %v521_v24 }
 0x25d   :  { %5391 = vmatpush2.bf16.msra.mxu0 %v6509_v5  ;;  %v777_v12 = vld [vmem:[#allocation5 + $0x14e8] sm:$0xff] }
 0x25e   :  { %5432 = vmatpush2.bf16.msra.mxu1 %v6765_v43  ;;  %5392 = vmatprep.subr.bf16.mxu0 %v6494_v47  ;;  %v6686_v31 = vcombine.high %v769_v46, %v777_v12  ;;  %v497_v32 = vld [vmem:[#allocation5 + $0xc28] sm:$0xff]  ;;  %v6685_v63 = vcombine.low %v769_v46, %v777_v12  ;;  %v226_v43 = vld [vmem:[#allocation5 + $0x3b0] sm:$0xff] }
 0x25f   :  { %5433 = vmatprep.subr.bf16.mxu1 %v6750_v50  ;;  %v505_v57 = vld [vmem:[#allocation5 + $0xc68] sm:$0xff]  ;;  %v234_v47 = vld [vmem:[#allocation5 + $0x3f0] sm:$0xff] }
 0x260   :  { %v753_v45 = vld [vmem:[#allocation5 + $0x1428] sm:$0xff]  ;;  %v6414_v41 = vcombine.high %v497_v32, %v505_v57  ;;  %v482_v50 = vld [vmem:[#allocation5 + $0xbb0] sm:$0xff]  ;;  %v6413_v54 = vcombine.low %v497_v32, %v505_v57  ;;  %v6144_v22 = vcombine.high %v226_v43, %v234_v47  ;;  %v6143_v6 = vcombine.low %v226_v43, %v234_v47 }
 0x261   :  { %5393 = vmatpush2.bf16.msra.mxu0 %v6493_v58  ;;  %v761_v35 = vld [vmem:[#allocation5 + $0x1468] sm:$0xff]  ;;  %v6400_v58 = vcombine.high %v482_v50, %v490_v51  ;;  %v6399_v7 = vcombine.low %v482_v50, %v490_v51  ;;  %v5831_v32 = vrot.slane %v7087_v56, %v7112_v4  ;;  %v6367_v43 = vcombine.low %v450_v18, %v458_v19 }
 0x262   :  { %5434 = vmatpush2.bf16.msra.mxu1 %v6749_v59  ;;  %5394 = vmatprep.subr.bf16.mxu0 %v6478_v60  ;;  %v6670_v5 = vcombine.high %v753_v45, %v761_v35  ;;  %v6669_v55 = vcombine.low %v753_v45, %v761_v35  ;;  %v210_v59 = vld [vmem:[#allocation5 + $0x330] sm:$0xff] }
 0x263   :  { %5435 = vmatprep.subr.bf16.mxu1 %v6734_v0  ;;  %v218_v60 = vld [vmem:[#allocation5 + $0x370] sm:$0xff] }
 0x264   :  { %v466_v0 = vld [vmem:[#allocation5 + $0xb30] sm:$0xff] }
 0x265   :  { %5395 = vmatpush2.bf16.msra.mxu0 %v6477_v8  ;;  %v7115_v8 = vsub.s32 7, %v6951_v44  ;;  %v6127_v44 = vcombine.low %v210_v59, %v218_v60  ;;  %v6383_v24 = vcombine.low %v466_v0, %v474_v3  ;;  %v434_v45 = vld [vmem:[#allocation5 + $0xa30] sm:$0xff] }
 0x266   :  { %5436 = vmatpush2.bf16.msra.mxu1 %v6733_v9  ;;  %5396 = vmatprep.subr.bf16.mxu0 %v6462_v10  ;;  %v6128_v9 = vcombine.high %v210_v59, %v218_v60  ;;  %v6384_v10 = vcombine.high %v466_v0, %v474_v3  ;;  %v442_v35 = vld [vmem:[#allocation5 + $0xa70] sm:$0xff] }
 0x267   :  { %5437 = vmatprep.subr.bf16.mxu1 %v6718_v14  ;;  %v194_v14 = vld [vmem:[#allocation5 + $0x2b0] sm:$0xff]  ;;  %v5735_v23 = vrot.slane %v7083_v49, %v7115_v8  ;;  %v6351_v3 = vcombine.low %v434_v45, %v442_v35 }
 0x268   :  { %v6112_v46 = vcombine.high %v194_v14, %v202_v15  ;;  %v426_v59 = vld [vmem:[#allocation5 + $0x9f0] sm:$0xff] }
 0x269   :  { %5397 = vmatpush2.bf16.msra.mxu0 %v6461_v20 }
 0x26a   :  { %5438 = vmatpush2.bf16.msra.mxu1 %v6717_v36  ;;  %5398 = vmatprep.subr.bf16.mxu0 %v6446_v38  ;;  %v5731_v38 = vrot.slane %v7083_v49, %v7112_v4 }
 0x26b   :  { %5439 = vmatprep.subr.bf16.mxu1 %v6702_v37 }
 0x26d   :  { %5399 = vmatpush2.bf16.msra.mxu0 %v6445_v27 }
 0x26e   :  { %5440 = vmatpush2.bf16.msra.mxu1 %v6701_v28  ;;  %5400 = vmatprep.subr.bf16.mxu0 %v6430_v29  ;;  %v6368_v28 = vcombine.high %v450_v18, %v458_v19  ;;  %v178_v29 = vld [vmem:[#allocation5 + $0x230] sm:$0xff]  ;;  %v5941_v18 = vrot.slane %v5933_v34, %v6954_v53 }
 0x26f   :  { %5441 = vmatprep.subr.bf16.mxu1 %v6686_v31  ;;  %v186_v31 = vld [vmem:[#allocation5 + $0x270] sm:$0xff] }
 0x270   :  { %v6096_v47 = vcombine.high %v178_v29, %v186_v31 }
 0x271   :  { %5401 = vmatpush2.bf16.msra.mxu0 %v6429_v39 }
 0x272   :  { %5442 = vmatpush2.bf16.msra.mxu1 %v6685_v63  ;;  %5402 = vmatprep.subr.bf16.mxu0 %v6414_v41  ;;  %v6111_v41 = vcombine.low %v194_v14, %v202_v15  ;;  %v154_v14 = vld [vmem:[#allocation5 + $0x170] sm:$0xff] }
 0x273   :  { %5443 = vmatprep.subr.bf16.mxu1 %v6670_v5  ;;  %v402_v15 = vld [vmem:[#allocation5 + $0x930] sm:$0xff] }
 0x275   :  { %5403 = vmatpush2.bf16.msra.mxu0 %v6413_v54  ;;  %v6352_v54 = vcombine.high %v434_v45, %v442_v35 }
 0x276   :  { %5444 = vmatpush2.bf16.msra.mxu1 %v6669_v55  ;;  %5454 = vmatprep.subr.bf16.mxu0 %v6144_v22  ;;  %v162_v55 = vld [vmem:[#allocation5 + $0x1b0] sm:$0xff] }
 0x277   :  { %5495 = vmatprep.subr.bf16.mxu1 %v6400_v58  ;;  %v170_v22 = vld [vmem:[#allocation5 + $0x1f0] sm:$0xff] }
 0x278   :  { %v5160_v17 = vpop.f32.mrf.mxu0  ;;  %5405 = vmatmul.mubr.bf16.vlgmr.msra.gmra.mxu0 %v6982_v33  ;;  %v418_v58 = vld [vmem:[#allocation5 + $0x9b0] sm:$0xff] }
 0x279   :  { %v5161_v20 = vadd.f32 %v5160_v17, %v7093_v1  ;;  %v5201_v36 = vpop.f32.mrf.mxu1  ;;  %5446 = vmatmul.mubr.bf16.vlgmr.msra.gmra.mxu1 %v6992_v48  ;;  %5455 = vmatpush1.bf16.msra.mxu0 %v6143_v6  ;;  %v6080_v6 = vcombine.high %v162_v55, %v170_v22  ;;  %v410_v17 = vld [vmem:[#allocation5 + $0x970] sm:$0xff] }
 0x27a   :  { %5496 = vmatpush1.bf16.msra.mxu1 %v6399_v7  ;;  %v5162_v37 = vpop.f32.mrf.mxu0  ;;  %5456 = vmatprep.subr.bf16.mxu0 %v6128_v9  ;;  %v6336_v9 = vcombine.high %v418_v58, %v426_v59  ;;  %v6319_v25 = vcombine.low %v402_v15, %v410_v17 }
 0x27b   :  { %v5202_v12 = vadd.f32 %v5201_v36, %v5161_v20  ;;  %v5163_v27 = vadd.f32 %v5162_v37, %v7101_v13  ;;  %v5203_v1 = vpop.f32.mrf.mxu1  ;;  %5497 = vmatprep.subr.bf16.mxu1 %v6384_v10  ;;  %5486 = vmatprep.mubr.bf16.mxu0 %v6964_v11  ;;  %v5835_v13 = vrot.slane %v7087_v56, %v7115_v8  ;;  %v146_v10 = vld [vmem:[#allocation5 + $0x130] sm:$0xff] }
 0x27c   :  { %v5164_v57 = vpop.f32.mrf.mxu0  ;;  %5527 = vmatprep.mubr.bf16.mxu1 %v6969_v16  ;;  %v6095_v56 = vcombine.low %v178_v29, %v186_v31  ;;  %v6079_v20 = vcombine.low %v162_v55, %v170_v22  ;;  %v6335_v36 = vcombine.low %v418_v58, %v426_v59  ;;  %v6320_v37 = vcombine.high %v402_v15, %v410_v17  ;;  %v370_v29 = vld [vmem:[#allocation5 + $0x830] sm:$0xff] }
 0x27d   :  { %v5790_v49 = vmul.f32 %v5731_v38, %v5202_v12  ;;  %v5204_v39 = vadd.f32 %v5203_v1, %v5163_v27  ;;  %v5205_v63 = vpop.f32.mrf.mxu1  ;;  %5457 = vmatpush1.bf16.msra.mxu0 %v6127_v44  ;;  %v6064_v38 = vcombine.high %v146_v10, %v154_v14  ;;  %v394_v12 = vld [vmem:[#allocation5 + $0x8f0] sm:$0xff]  ;;  %v6063_v27 = vcombine.low %v146_v10, %v154_v14 }
 0x27e   :  { %5498 = vmatpush1.bf16.msra.mxu1 %v6383_v24  ;;  %v5165_v5 = vpop.f32.mrf.mxu0  ;;  %5458 = vmatprep.subr.bf16.mxu0 %v6112_v46  ;;  %v138_v24 = vld [vmem:[#allocation5 + $0xf0] sm:$0xff] }
 0x27f   :  { %v5791_v50 = vmul.f32 %v5735_v23, %v5204_v39  ;;  %v5206_v51 = vpop.f32.mrf.mxu1  ;;  %5499 = vmatprep.subr.bf16.mxu1 %v6368_v28  ;;  %v5890_v60 = vadd.f32 %v5831_v32, %v5790_v49  ;;  %v130_v23 = vld [vmem:[#allocation5 + $0xb0] sm:$0xff] }
 0x280   :  { %v386_v46 = vld [vmem:[#allocation5 + $0x8b0] sm:$0xff]  ;;  %v6048_v26 = vcombine.high %v130_v23, %v138_v24  ;;  %v6047_v32 = vcombine.low %v130_v23, %v138_v24 }
 0x281   :  { %v5891_v0 = vadd.f32 %v5835_v13, %v5791_v50  ;;  %5459 = vmatpush1.bf16.msra.mxu0 %v6111_v41  ;;  %v6304_v34 = vcombine.high %v386_v46, %v394_v12  ;;  %v114_v1 = vld [vmem:[#allocation5 + $0x30] sm:$0xff]  ;;  %v6303_v57 = vcombine.low %v386_v46, %v394_v12 }
 0x282   :  { %5500 = vmatpush1.bf16.msra.mxu1 %v6367_v43  ;;  %5460 = vmatprep.subr.bf16.mxu0 %v6096_v47  ;;  %v122_v28 = vld [vmem:[#allocation5 + $0x70] sm:$0xff] }
 0x283   :  { %v5934_v7 = vcombine.low %v5890_v60, %v5891_v0  ;;  %5501 = vmatprep.subr.bf16.mxu1 %v6352_v54  ;;  %v378_v31 = vld [vmem:[#allocation5 + $0x870] sm:$0xff]  ;;  %v6032_v45 = vcombine.high %v114_v1, %v122_v28  ;;  %v6031_v41 = vcombine.low %v114_v1, %v122_v28 }
 0x284   :  { %v6288_v35 = vcombine.high %v370_v29, %v378_v31  ;;  %v354_v49 = vld [vmem:[#allocation5 + $0x7b0] sm:$0xff]  ;;  %v6287_v5 = vcombine.low %v370_v29, %v378_v31 }
 0x285   :  { %v5948_v19 = vrot.slane %v5934_v7, %v6954_v53  ;;  %5461 = vmatpush1.bf16.msra.mxu0 %v6095_v56  ;;  %v362_v39 = vld [vmem:[#allocation5 + $0x7f0] sm:$0xff] }
 0x286   :  { %5502 = vmatpush1.bf16.msra.mxu1 %v6351_v3  ;;  %5462 = vmatprep.subr.bf16.mxu0 %v6080_v6  ;;  %v610_v13 = vld [vmem:[#allocation5 + $0xfb0] sm:$0xff]  ;;  %v6272_v43 = vcombine.high %v354_v49, %v362_v39  ;;  %v6271_v22 = vcombine.low %v354_v49, %v362_v39 }
 0x287   :  { %v5949_v44 = vcombine.low %v5941_v18, %v5948_v19  ;;  %5503 = vmatprep.subr.bf16.mxu1 %v6336_v9  ;;  %v618_v63 = vld [vmem:[#allocation5 + $0xff0] sm:$0xff] }
 0x288   :  { %v6528_v47 = vcombine.high %v610_v13, %v618_v63  ;;  %v338_v50 = vld [vmem:[#allocation5 + $0x730] sm:$0xff]  ;;  %v6527_v58 = vcombine.low %v610_v13, %v618_v63 }
 0x289   :  { %5989 = vst [vmem:[#allocation10 + $0x8] sm:$0xff] %v5949_v44  ;;  %5463 = vmatpush1.bf16.msra.mxu0 %v6079_v20  ;;  %v346_v51 = vld [vmem:[#allocation5 + $0x770] sm:$0xff] }
 0x28a   :  { %5504 = vmatpush1.bf16.msra.mxu1 %v6335_v36  ;;  %5464 = vmatprep.subr.bf16.mxu0 %v6064_v38  ;;  %v594_v54 = vld [vmem:[#allocation5 + $0xf30] sm:$0xff]  ;;  %v6256_v59 = vcombine.high %v338_v50, %v346_v51  ;;  %v6255_v7 = vcombine.low %v338_v50, %v346_v51 }
 0x28b   :  { %5505 = vmatprep.subr.bf16.mxu1 %v6320_v37  ;;  %v602_v55 = vld [vmem:[#allocation5 + $0xf70] sm:$0xff] }
 0x28c   :  { %v6512_v60 = vcombine.high %v594_v54, %v602_v55  ;;  %v322_v0 = vld [vmem:[#allocation5 + $0x6b0] sm:$0xff]  ;;  %v6511_v9 = vcombine.low %v594_v54, %v602_v55 }
 0x28d   :  { %5465 = vmatpush1.bf16.msra.mxu0 %v6063_v27  ;;  %v330_v56 = vld [vmem:[#allocation5 + $0x6f0] sm:$0xff] }
 0x28e   :  { %5506 = vmatpush1.bf16.msra.mxu1 %v6319_v25  ;;  %5466 = vmatprep.subr.bf16.mxu0 %v6048_v26  ;;  %v578_v3 = vld [vmem:[#allocation5 + $0xeb0] sm:$0xff]  ;;  %v6240_v10 = vcombine.high %v322_v0, %v330_v56  ;;  %v6239_v20 = vcombine.low %v322_v0, %v330_v56  ;;  %v227_v56 = vld [vmem:[#allocation5 + $0x3b8] sm:$0xff] }
 0x28f   :  { %5507 = vmatprep.subr.bf16.mxu1 %v6304_v34  ;;  %v586_v6 = vld [vmem:[#allocation5 + $0xef0] sm:$0xff] }
 0x290   :  { %v6496_v14 = vcombine.high %v578_v3, %v586_v6  ;;  %v306_v15 = vld [vmem:[#allocation5 + $0x630] sm:$0xff]  ;;  %v6495_v36 = vcombine.low %v578_v3, %v586_v6  ;;  %v235_v3 = vld [vmem:[#allocation5 + $0x3f8] sm:$0xff] }
 0x291   :  { %5467 = vmatpush1.bf16.msra.mxu0 %v6047_v32  ;;  %v314_v17 = vld [vmem:[#allocation5 + $0x670] sm:$0xff] }
 0x292   :  { %5508 = vmatpush1.bf16.msra.mxu1 %v6303_v57  ;;  %5468 = vmatprep.subr.bf16.mxu0 %v6032_v45  ;;  %v562_v18 = vld [vmem:[#allocation5 + $0xe30] sm:$0xff]  ;;  %v6224_v38 = vcombine.high %v306_v15, %v314_v17  ;;  %v6223_v12 = vcombine.low %v306_v15, %v314_v17  ;;  %v211_v17 = vld [vmem:[#allocation5 + $0x338] sm:$0xff] }
 0x293   :  { %5509 = vmatprep.subr.bf16.mxu1 %v6288_v35  ;;  %v570_v19 = vld [vmem:[#allocation5 + $0xe70] sm:$0xff] }
 0x294   :  { %v6480_v44 = vcombine.high %v562_v18, %v570_v19  ;;  %v290_v37 = vld [vmem:[#allocation5 + $0x5b0] sm:$0xff]  ;;  %v6479_v27 = vcombine.low %v562_v18, %v570_v19  ;;  %v219_v18 = vld [vmem:[#allocation5 + $0x378] sm:$0xff] }
 0x295   :  { %5469 = vmatpush1.bf16.msra.mxu0 %v6031_v41  ;;  %v298_v23 = vld [vmem:[#allocation5 + $0x5f0] sm:$0xff] }
 0x296   :  { %5510 = vmatpush1.bf16.msra.mxu1 %v6287_v5  ;;  %5470 = vmatprep.subr.bf16.mxu0 %v6272_v43  ;;  %v546_v24 = vld [vmem:[#allocation5 + $0xdb0] sm:$0xff]  ;;  %v6208_v25 = vcombine.high %v290_v37, %v298_v23  ;;  %v6207_v31 = vcombine.low %v290_v37, %v298_v23 }
 0x297   :  { %5511 = vmatprep.subr.bf16.mxu1 %v6528_v47  ;;  %v554_v46 = vld [vmem:[#allocation5 + $0xdf0] sm:$0xff] }
 0x298   :  { %v6464_v26 = vcombine.high %v546_v24, %v554_v46  ;;  %v274_v34 = vld [vmem:[#allocation5 + $0x530] sm:$0xff]  ;;  %v6463_v32 = vcombine.low %v546_v24, %v554_v46  ;;  %v195_v24 = vld [vmem:[#allocation5 + $0x2b8] sm:$0xff] }
 0x299   :  { %5471 = vmatpush2.bf16.msra.mxu0 %v6271_v22  ;;  %v282_v1 = vld [vmem:[#allocation5 + $0x570] sm:$0xff]  ;;  %v203_v46 = vld [vmem:[#allocation5 + $0x2f8] sm:$0xff] }
 0x29a   :  { %5512 = vmatpush2.bf16.msra.mxu1 %v6527_v58  ;;  %5472 = vmatprep.subr.bf16.mxu0 %v6256_v59  ;;  %v530_v28 = vld [vmem:[#allocation5 + $0xd30] sm:$0xff]  ;;  %v6192_v57 = vcombine.high %v274_v34, %v282_v1  ;;  %v6191_v63 = vcombine.low %v274_v34, %v282_v1  ;;  %v6129_v34 = vcombine.low %v211_v17, %v219_v18 }
 0x29b   :  { %5513 = vmatprep.subr.bf16.mxu1 %v6512_v60  ;;  %v538_v29 = vld [vmem:[#allocation5 + $0xd70] sm:$0xff] }
 0x29c   :  { %v6448_v45 = vcombine.high %v530_v28, %v538_v29  ;;  %v258_v35 = vld [vmem:[#allocation5 + $0x4b0] sm:$0xff]  ;;  %v6447_v41 = vcombine.low %v530_v28, %v538_v29  ;;  %v6114_v29 = vcombine.high %v195_v24, %v203_v46 }
 0x29d   :  { %5473 = vmatpush2.bf16.msra.mxu0 %v6255_v7  ;;  %v266_v49 = vld [vmem:[#allocation5 + $0x4f0] sm:$0xff] }
 0x29e   :  { %5514 = vmatpush2.bf16.msra.mxu1 %v6511_v9  ;;  %5474 = vmatprep.subr.bf16.mxu0 %v6240_v10  ;;  %v514_v39 = vld [vmem:[#allocation5 + $0xcb0] sm:$0xff]  ;;  %v6176_v5 = vcombine.high %v258_v35, %v266_v49  ;;  %v6175_v55 = vcombine.low %v258_v35, %v266_v49  ;;  %v6146_v10 = vcombine.high %v227_v56, %v235_v3  ;;  %v179_v35 = vld [vmem:[#allocation5 + $0x238] sm:$0xff] }
 0x29f   :  { %5515 = vmatprep.subr.bf16.mxu1 %v6496_v14  ;;  %v522_v13 = vld [vmem:[#allocation5 + $0xcf0] sm:$0xff]  ;;  %v187_v49 = vld [vmem:[#allocation5 + $0x278] sm:$0xff] }
 0x2a0   :  { %v6432_v43 = vcombine.high %v514_v39, %v522_v13  ;;  %v242_v47 = vld [vmem:[#allocation5 + $0x430] sm:$0xff]  ;;  %v6431_v22 = vcombine.low %v514_v39, %v522_v13 }
 0x2a1   :  { %5475 = vmatpush2.bf16.msra.mxu0 %v6239_v20  ;;  %v250_v50 = vld [vmem:[#allocation5 + $0x470] sm:$0xff]  ;;  %v6145_v20 = vcombine.low %v227_v56, %v235_v3  ;;  %v147_v56 = vld [vmem:[#allocation5 + $0x138] sm:$0xff] }
 0x2a2   :  { %5516 = vmatpush2.bf16.msra.mxu1 %v6495_v36  ;;  %5476 = vmatprep.subr.bf16.mxu0 %v6224_v38  ;;  %v498_v51 = vld [vmem:[#allocation5 + $0xc30] sm:$0xff]  ;;  %v6160_v58 = vcombine.high %v242_v47, %v250_v50  ;;  %v6159_v6 = vcombine.low %v242_v47, %v250_v50  ;;  %v6130_v38 = vcombine.high %v211_v17, %v219_v18  ;;  %v155_v3 = vld [vmem:[#allocation5 + $0x178] sm:$0xff] }
 0x2a3   :  { %5517 = vmatprep.subr.bf16.mxu1 %v6480_v44  ;;  %v506_v54 = vld [vmem:[#allocation5 + $0xc70] sm:$0xff]  ;;  %v6098_v47 = vcombine.high %v179_v35, %v187_v49  ;;  %v131_v17 = vld [vmem:[#allocation5 + $0xb8] sm:$0xff] }
 0x2a4   :  { %v6416_v59 = vcombine.high %v498_v51, %v506_v54  ;;  %v738_v60 = vld [vmem:[#allocation5 + $0x13b0] sm:$0xff]  ;;  %v6415_v7 = vcombine.low %v498_v51, %v506_v54  ;;  %v163_v54 = vld [vmem:[#allocation5 + $0x1b8] sm:$0xff] }
 0x2a5   :  { %5477 = vmatpush2.bf16.msra.mxu0 %v6223_v12  ;;  %v746_v0 = vld [vmem:[#allocation5 + $0x13f0] sm:$0xff]  ;;  %v139_v18 = vld [vmem:[#allocation5 + $0xf8] sm:$0xff] }
 0x2a6   :  { %5518 = vmatpush2.bf16.msra.mxu1 %v6479_v27  ;;  %5478 = vmatprep.subr.bf16.mxu0 %v6208_v25  ;;  %v6656_v9 = vcombine.high %v738_v60, %v746_v0  ;;  %v722_v14 = vld [vmem:[#allocation5 + $0x1330] sm:$0xff]  ;;  %v6655_v19 = vcombine.low %v738_v60, %v746_v0 }
 0x2a7   :  { %5519 = vmatprep.subr.bf16.mxu1 %v6464_v26  ;;  %v730_v15 = vld [vmem:[#allocation5 + $0x1370] sm:$0xff] }
 0x2a8   :  { %v6640_v36 = vcombine.high %v722_v14, %v730_v15  ;;  %v706_v44 = vld [vmem:[#allocation5 + $0x12b0] sm:$0xff]  ;;  %v6639_v27 = vcombine.low %v722_v14, %v730_v15 }
 0x2a9   :  { %5479 = vmatpush2.bf16.msra.mxu0 %v6207_v31  ;;  %v714_v37 = vld [vmem:[#allocation5 + $0x12f0] sm:$0xff] }
 0x2aa   :  { %5520 = vmatpush2.bf16.msra.mxu1 %v6463_v32  ;;  %5480 = vmatprep.subr.bf16.mxu0 %v6192_v57  ;;  %v6624_v1 = vcombine.high %v706_v44, %v714_v37  ;;  %v690_v31 = vld [vmem:[#allocation5 + $0x1230] sm:$0xff]  ;;  %v6623_v13 = vcombine.low %v706_v44, %v714_v37 }
 0x2ab   :  { %5521 = vmatprep.subr.bf16.mxu1 %v6448_v45  ;;  %v698_v32 = vld [vmem:[#allocation5 + $0x1270] sm:$0xff] }
 0x2ac   :  { %v674_v50 = vld [vmem:[#allocation5 + $0x11b0] sm:$0xff] }
 0x2ad   :  { %5481 = vmatpush2.bf16.msra.mxu0 %v6191_v63  ;;  %v682_v51 = vld [vmem:[#allocation5 + $0x11f0] sm:$0xff] }
 0x2ae   :  { %5522 = vmatpush2.bf16.msra.mxu1 %v6447_v41  ;;  %5482 = vmatprep.subr.bf16.mxu0 %v6176_v5  ;;  %v6113_v41 = vcombine.low %v195_v24, %v203_v46  ;;  %v6608_v5 = vcombine.high %v690_v31, %v698_v32  ;;  %v658_v60 = vld [vmem:[#allocation5 + $0x1130] sm:$0xff]  ;;  %v123_v24 = vld [vmem:[#allocation5 + $0x78] sm:$0xff] }
 0x2af   :  { %5523 = vmatprep.subr.bf16.mxu1 %v6432_v43  ;;  %v666_v0 = vld [vmem:[#allocation5 + $0x1170] sm:$0xff] }
 0x2b0   :  { %v642_v14 = vld [vmem:[#allocation5 + $0x10b0] sm:$0xff] }
 0x2b1   :  { %5483 = vmatpush2.bf16.msra.mxu0 %v6175_v55  ;;  %v171_v55 = vld [vmem:[#allocation5 + $0x1f8] sm:$0xff]  ;;  %v650_v15 = vld [vmem:[#allocation5 + $0x10f0] sm:$0xff] }
 0x2b2   :  { %5524 = vmatpush2.bf16.msra.mxu1 %v6431_v22  ;;  %5484 = vmatprep.subr.bf16.mxu0 %v6160_v58  ;;  %v6607_v22 = vcombine.low %v690_v31, %v698_v32  ;;  %v6592_v58 = vcombine.high %v674_v50, %v682_v51  ;;  %v626_v44 = vld [vmem:[#allocation5 + $0x1030] sm:$0xff]  ;;  %v6559_v46 = vcombine.low %v642_v14, %v650_v15 }
 0x2b3   :  { %5525 = vmatprep.subr.bf16.mxu1 %v6416_v59  ;;  %v6082_v59 = vcombine.high %v163_v54, %v171_v55  ;;  %v634_v37 = vld [vmem:[#allocation5 + $0x1070] sm:$0xff] }
 0x2b4   :  { %v6543_v31 = vcombine.low %v626_v44, %v634_v37 }
 0x2b5   :  { %5485 = vmatpush2.bf16.msra.mxu0 %v6159_v6  ;;  %v6591_v6 = vcombine.low %v674_v50, %v682_v51  ;;  %v834_v50 = vld [vmem:[#allocation5 + $0x16b0] sm:$0xff] }
 0x2b6   :  { %5526 = vmatpush2.bf16.msra.mxu1 %v6415_v7  ;;  %5536 = vmatprep.subr.bf16.mxu0 %v6656_v9  ;;  %v6081_v7 = vcombine.low %v163_v54, %v171_v55  ;;  %v6576_v9 = vcombine.high %v658_v60, %v666_v0  ;;  %v842_v51 = vld [vmem:[#allocation5 + $0x16f0] sm:$0xff]  ;;  %v323_v54 = vld [vmem:[#allocation5 + $0x6b8] sm:$0xff] }
 0x2b7   :  { %5577 = vmatprep.subr.bf16.mxu1 %v6146_v10  ;;  %v6066_v10 = vcombine.high %v147_v56, %v155_v3  ;;  %v331_v55 = vld [vmem:[#allocation5 + $0x6f8] sm:$0xff] }
 0x2b8   :  { %v5242_v23 = vpop.f32.mrf.mxu0  ;;  %5487 = vmatmul.mubr.bf16.vlgmr.msra.gmra.mxu0 %v6978_v30 }
 0x2b9   :  { %v5283_v12 = vpop.f32.mrf.mxu1  ;;  %5528 = vmatmul.mubr.bf16.vlgmr.msra.gmra.mxu1 %v6982_v33  ;;  %5537 = vmatpush1.bf16.msra.mxu0 %v6655_v19  ;;  %v6575_v19 = vcombine.low %v658_v60, %v666_v0  ;;  %v818_v60 = vld [vmem:[#allocation5 + $0x1630] sm:$0xff] }
 0x2ba   :  { %v7138_v25 = vadd.f32 %v5283_v12, %v5242_v23  ;;  %5578 = vmatpush1.bf16.msra.mxu1 %v6145_v20  ;;  %v5244_v26 = vpop.f32.mrf.mxu0  ;;  %5538 = vmatprep.subr.bf16.mxu0 %v6640_v36  ;;  %v6065_v20 = vcombine.low %v147_v56, %v155_v3  ;;  %v6560_v36 = vcombine.high %v642_v14, %v650_v15  ;;  %v115_v23 = vld [vmem:[#allocation5 + $0x38] sm:$0xff]  ;;  %v826_v0 = vld [vmem:[#allocation5 + $0x1670] sm:$0xff] }
 0x2bb   :  { %v5285_v28 = vpop.f32.mrf.mxu1  ;;  %5579 = vmatprep.subr.bf16.mxu1 %v6130_v38  ;;  %5568 = vmatprep.mubr.bf16.mxu0 %v6984_v40  ;;  %v6050_v38 = vcombine.high %v131_v17, %v139_v18  ;;  %v6049_v12 = vcombine.low %v131_v17, %v139_v18  ;;  %v6033_v32 = vcombine.low %v115_v23, %v123_v24  ;;  %v307_v56 = vld [vmem:[#allocation5 + $0x638] sm:$0xff]  ;;  %v802_v14 = vld [vmem:[#allocation5 + $0x15b0] sm:$0xff] }
 0x2bc   :  { %v7141_v57 = vadd.f32 %v5285_v28, %v5244_v26  ;;  %v5246_v45 = vpop.f32.mrf.mxu0  ;;  %5609 = vmatprep.mubr.bf16.mxu1 %v6964_v11  ;;  %v6097_v11 = vcombine.low %v179_v35, %v187_v49  ;;  %v6034_v26 = vcombine.high %v115_v23, %v123_v24  ;;  %v355_v28 = vld [vmem:[#allocation5 + $0x7b8] sm:$0xff]  ;;  %v850_v49 = vld [vmem:[#allocation5 + $0x1730] sm:$0xff] }
 0x2bd   :  { %v5287_v39 = vpop.f32.mrf.mxu1  ;;  %5539 = vmatpush1.bf16.msra.mxu0 %v6639_v27  ;;  %v6544_v27 = vcombine.high %v626_v44, %v634_v37  ;;  %v315_v3 = vld [vmem:[#allocation5 + $0x678] sm:$0xff]  ;;  %v810_v15 = vld [vmem:[#allocation5 + $0x15f0] sm:$0xff] }
 0x2be   :  { %5580 = vmatpush1.bf16.msra.mxu1 %v6129_v34  ;;  %v5247_v63 = vpop.f32.mrf.mxu0  ;;  %5540 = vmatprep.subr.bf16.mxu0 %v6624_v1  ;;  %v866_v34 = vld [vmem:[#allocation5 + $0x17b0] sm:$0xff]  ;;  %v291_v17 = vld [vmem:[#allocation5 + $0x5b8] sm:$0xff] }
 0x2bf   :  { %v5288_v43 = vpop.f32.mrf.mxu1  ;;  %5581 = vmatprep.subr.bf16.mxu1 %v6114_v29  ;;  %v874_v1 = vld [vmem:[#allocation5 + $0x17f0] sm:$0xff]  ;;  %v363_v29 = vld [vmem:[#allocation5 + $0x7f8] sm:$0xff] }
 0x2c0   :  { %v6784_v45 = vcombine.high %v866_v34, %v874_v1  ;;  %v6274_v35 = vcombine.high %v355_v28, %v363_v29  ;;  %v858_v39 = vld [vmem:[#allocation5 + $0x1770] sm:$0xff]  ;;  %v347_v63 = vld [vmem:[#allocation5 + $0x778] sm:$0xff] }
 0x2c1   :  { %5541 = vmatpush1.bf16.msra.mxu0 %v6623_v13  ;;  %v339_v13 = vld [vmem:[#allocation5 + $0x738] sm:$0xff]  ;;  %v6768_v43 = vcombine.high %v850_v49, %v858_v39  ;;  %v786_v44 = vld [vmem:[#allocation5 + $0x1530] sm:$0xff] }
 0x2c2   :  { %5582 = vmatpush1.bf16.msra.mxu1 %v6113_v41  ;;  %5542 = vmatprep.subr.bf16.mxu0 %v6608_v5  ;;  %v6783_v41 = vcombine.low %v866_v34, %v874_v1  ;;  %v6273_v5 = vcombine.low %v355_v28, %v363_v29  ;;  %v299_v18 = vld [vmem:[#allocation5 + $0x5f8] sm:$0xff]  ;;  %v794_v37 = vld [vmem:[#allocation5 + $0x1570] sm:$0xff] }
 0x2c3   :  { %5583 = vmatprep.subr.bf16.mxu1 %v6098_v47  ;;  %v6258_v47 = vcombine.high %v339_v13, %v347_v63  ;;  %v275_v23 = vld [vmem:[#allocation5 + $0x538] sm:$0xff]  ;;  %v770_v34 = vld [vmem:[#allocation5 + $0x14b0] sm:$0xff] }
 0x2c4   :  { %v283_v24 = vld [vmem:[#allocation5 + $0x578] sm:$0xff]  ;;  %v778_v1 = vld [vmem:[#allocation5 + $0x14f0] sm:$0xff] }
 0x2c5   :  { %5543 = vmatpush1.bf16.msra.mxu0 %v6607_v22  ;;  %v6767_v22 = vcombine.low %v850_v49, %v858_v39  ;;  %v259_v28 = vld [vmem:[#allocation5 + $0x4b8] sm:$0xff]  ;;  %v754_v49 = vld [vmem:[#allocation5 + $0x1430] sm:$0xff] }
 0x2c6   :  { %5584 = vmatpush1.bf16.msra.mxu1 %v6097_v11  ;;  %5544 = vmatprep.subr.bf16.mxu0 %v6592_v58  ;;  %v6257_v11 = vcombine.low %v339_v13, %v347_v63  ;;  %v6752_v58 = vcombine.high %v834_v50, %v842_v51  ;;  %v267_v29 = vld [vmem:[#allocation5 + $0x4f8] sm:$0xff]  ;;  %v762_v39 = vld [vmem:[#allocation5 + $0x1470] sm:$0xff] }
 0x2c7   :  { %5585 = vmatprep.subr.bf16.mxu1 %v6082_v59  ;;  %v6242_v59 = vcombine.high %v323_v54, %v331_v55  ;;  %v243_v13 = vld [vmem:[#allocation5 + $0x438] sm:$0xff] }
 0x2c8   :  { %v251_v63 = vld [vmem:[#allocation5 + $0x478] sm:$0xff] }
 0x2c9   :  { %5545 = vmatpush1.bf16.msra.mxu0 %v6591_v6  ;;  %v6751_v6 = vcombine.low %v834_v50, %v842_v51  ;;  %v483_v50 = vld [vmem:[#allocation5 + $0xbb8] sm:$0xff] }
 0x2ca   :  { %5586 = vmatpush1.bf16.msra.mxu1 %v6081_v7  ;;  %5546 = vmatprep.subr.bf16.mxu0 %v6576_v9  ;;  %v6241_v7 = vcombine.low %v323_v54, %v331_v55  ;;  %v6736_v9 = vcombine.high %v818_v60, %v826_v0  ;;  %v491_v51 = vld [vmem:[#allocation5 + $0xbf8] sm:$0xff] }
 0x2cb   :  { %5587 = vmatprep.subr.bf16.mxu1 %v6066_v10  ;;  %v6226_v10 = vcombine.high %v307_v56, %v315_v3  ;;  %v739_v54 = vld [vmem:[#allocation5 + $0x13b8] sm:$0xff] }
 0x2cc   :  { %v747_v55 = vld [vmem:[#allocation5 + $0x13f8] sm:$0xff] }
 0x2cd   :  { %5547 = vmatpush1.bf16.msra.mxu0 %v6575_v19  ;;  %v6735_v19 = vcombine.low %v818_v60, %v826_v0  ;;  %v467_v60 = vld [vmem:[#allocation5 + $0xb38] sm:$0xff] }
 0x2ce   :  { %5588 = vmatpush1.bf16.msra.mxu1 %v6065_v20  ;;  %5548 = vmatprep.subr.bf16.mxu0 %v6560_v36  ;;  %v6225_v20 = vcombine.low %v307_v56, %v315_v3  ;;  %v6720_v36 = vcombine.high %v802_v14, %v810_v15  ;;  %v475_v0 = vld [vmem:[#allocation5 + $0xb78] sm:$0xff]  ;;  %v7144_v56 = vld [vmem:[#allocation7 + $0x8] sm:$0xff] }
 0x2cf   :  { %5589 = vmatprep.subr.bf16.mxu1 %v6050_v38  ;;  %v6210_v38 = vcombine.high %v291_v17, %v299_v18  ;;  %v723_v3 = vld [vmem:[#allocation5 + $0x1338] sm:$0xff] }
 0x2d1   :  { %5549 = vmatpush1.bf16.msra.mxu0 %v6559_v46  ;;  %v6719_v46 = vcombine.low %v802_v14, %v810_v15  ;;  %v6386_v14 = vcombine.high %v467_v60, %v475_v0  ;;  %v5739_v15 = vrot.slane %v7144_v56, %v7011_v52 }
 0x2d2   :  { %5590 = vmatpush1.bf16.msra.mxu1 %v6049_v12  ;;  %5550 = vmatprep.subr.bf16.mxu0 %v6544_v27  ;;  %v6209_v12 = vcombine.low %v291_v17, %v299_v18  ;;  %v6704_v27 = vcombine.high %v786_v44, %v794_v37  ;;  %v451_v18 = vld [vmem:[#allocation5 + $0xab8] sm:$0xff] }
 0x2d3   :  { %5591 = vmatprep.subr.bf16.mxu1 %v6034_v26  ;;  %v6194_v26 = vcombine.high %v275_v23, %v283_v24 }
 0x2d5   :  { %5551 = vmatpush1.bf16.msra.mxu0 %v6543_v31  ;;  %v6703_v31 = vcombine.low %v786_v44, %v794_v37  ;;  %v715_v44 = vld [vmem:[#allocation5 + $0x12f8] sm:$0xff] }
 0x2d6   :  { %5592 = vmatpush1.bf16.msra.mxu1 %v6033_v32  ;;  %5552 = vmatprep.subr.bf16.mxu0 %v6784_v45  ;;  %v6193_v32 = vcombine.low %v275_v23, %v283_v24  ;;  %v6688_v45 = vcombine.high %v770_v34, %v778_v1  ;;  %v5743_v24 = vrot.slane %v7144_v56, %v7018_v61 }
 0x2d7   :  { %5593 = vmatprep.subr.bf16.mxu1 %v6274_v35  ;;  %v6178_v35 = vcombine.high %v259_v28, %v267_v29 }
 0x2d9   :  { %5553 = vmatpush2.bf16.msra.mxu0 %v6783_v41  ;;  %v6687_v41 = vcombine.low %v770_v34, %v778_v1 }
 0x2da   :  { %5594 = vmatpush2.bf16.msra.mxu1 %v6273_v5  ;;  %5554 = vmatprep.subr.bf16.mxu0 %v6768_v43  ;;  %v6177_v5 = vcombine.low %v259_v28, %v267_v29  ;;  %v6672_v43 = vcombine.high %v754_v49, %v762_v39  ;;  %v435_v28 = vld [vmem:[#allocation5 + $0xa38] sm:$0xff] }
 0x2db   :  { %5595 = vmatprep.subr.bf16.mxu1 %v6258_v47  ;;  %v6162_v47 = vcombine.high %v243_v13, %v251_v63  ;;  %v443_v29 = vld [vmem:[#allocation5 + $0xa78] sm:$0xff] }
 0x2dd   :  { %5555 = vmatpush2.bf16.msra.mxu0 %v6767_v22  ;;  %v6671_v22 = vcombine.low %v754_v49, %v762_v39 }
 0x2de   :  { %5596 = vmatpush2.bf16.msra.mxu1 %v6257_v11  ;;  %5556 = vmatprep.subr.bf16.mxu0 %v6752_v58  ;;  %v6161_v11 = vcombine.low %v243_v13, %v251_v63  ;;  %v6402_v58 = vcombine.high %v483_v50, %v491_v51  ;;  %v6354_v13 = vcombine.high %v435_v28, %v443_v29 }
 0x2df   :  { %5597 = vmatprep.subr.bf16.mxu1 %v6242_v59  ;;  %v6658_v59 = vcombine.high %v739_v54, %v747_v55 }
 0x2e1   :  { %5557 = vmatpush2.bf16.msra.mxu0 %v6751_v6  ;;  %v731_v6 = vld [vmem:[#allocation5 + $0x1378] sm:$0xff] }
 0x2e2   :  { %5598 = vmatpush2.bf16.msra.mxu1 %v6241_v7  ;;  %5558 = vmatprep.subr.bf16.mxu0 %v6736_v9  ;;  %v7146_v7 = vld [vmem:[#allocation8 + $0x8] sm:$0xff]  ;;  %v6401_v9 = vcombine.low %v483_v50, %v491_v51  ;;  %v6642_v17 = vcombine.high %v723_v3, %v731_v6 }
 0x2e3   :  { %5599 = vmatprep.subr.bf16.mxu1 %v6226_v10  ;;  %v6657_v10 = vcombine.low %v739_v54, %v747_v55  ;;  %v675_v50 = vld [vmem:[#allocation5 + $0x11b8] sm:$0xff]  ;;  %v6353_v54 = vcombine.low %v435_v28, %v443_v29 }
 0x2e4   :  { %v875_v28 = vld [vmem:[#allocation5 + $0x17f8] sm:$0xff] }
 0x2e5   :  { %5559 = vmatpush2.bf16.msra.mxu0 %v6735_v19  ;;  %v459_v19 = vld [vmem:[#allocation5 + $0xaf8] sm:$0xff] }
 0x2e6   :  { %5600 = vmatpush2.bf16.msra.mxu1 %v6225_v20  ;;  %5560 = vmatprep.subr.bf16.mxu0 %v6720_v36  ;;  %v5839_v36 = vrot.slane %v7146_v7, %v7011_v52  ;;  %v5843_v52 = vrot.slane %v7146_v7, %v7018_v61  ;;  %v6369_v49 = vcombine.low %v451_v18, %v459_v19 }
 0x2e7   :  { %5601 = vmatprep.subr.bf16.mxu1 %v6210_v38  ;;  %v707_v38 = vld [vmem:[#allocation5 + $0x12b8] sm:$0xff] }
 0x2e9   :  { %5561 = vmatpush2.bf16.msra.mxu0 %v6719_v46  ;;  %v6385_v46 = vcombine.low %v467_v60, %v475_v0  ;;  %v659_v60 = vld [vmem:[#allocation5 + $0x1138] sm:$0xff] }
 0x2ea   :  { %5602 = vmatpush2.bf16.msra.mxu1 %v6209_v12  ;;  %5562 = vmatprep.subr.bf16.mxu0 %v6704_v27  ;;  %v6641_v27 = vcombine.low %v723_v3, %v731_v6  ;;  %v667_v0 = vld [vmem:[#allocation5 + $0x1178] sm:$0xff] }
 0x2eb   :  { %5603 = vmatprep.subr.bf16.mxu1 %v6194_v26  ;;  %v6370_v26 = vcombine.high %v451_v18, %v459_v19  ;;  %v651_v18 = vld [vmem:[#allocation5 + $0x10f8] sm:$0xff] }
 0x2ed   :  { %5563 = vmatpush2.bf16.msra.mxu0 %v6703_v31 }
 0x2ee   :  { %5604 = vmatpush2.bf16.msra.mxu1 %v6193_v32  ;;  %5564 = vmatprep.subr.bf16.mxu0 %v6688_v45  ;;  %v691_v32 = vld [vmem:[#allocation5 + $0x1238] sm:$0xff] }
 0x2ef   :  { %5605 = vmatprep.subr.bf16.mxu1 %v6178_v35  ;;  %v699_v45 = vld [vmem:[#allocation5 + $0x1278] sm:$0xff] }
 0x2f0   :  { %v6609_v55 = vcombine.low %v691_v32, %v699_v45 }
 0x2f1   :  { %5565 = vmatpush2.bf16.msra.mxu0 %v6687_v41 }
 0x2f2   :  { %5606 = vmatpush2.bf16.msra.mxu1 %v6177_v5  ;;  %5566 = vmatprep.subr.bf16.mxu0 %v6672_v43  ;;  %v419_v43 = vld [vmem:[#allocation5 + $0x9b8] sm:$0xff] }
 0x2f3   :  { %5607 = vmatprep.subr.bf16.mxu1 %v6162_v47  ;;  %v427_v47 = vld [vmem:[#allocation5 + $0x9f8] sm:$0xff] }
 0x2f4   :  { %v6337_v3 = vcombine.low %v419_v43, %v427_v47 }
 0x2f5   :  { %5567 = vmatpush2.bf16.msra.mxu0 %v6671_v22  ;;  %v6338_v22 = vcombine.high %v419_v43, %v427_v47  ;;  %v579_v43 = vld [vmem:[#allocation5 + $0xeb8] sm:$0xff] }
 0x2f6   :  { %5608 = vmatpush2.bf16.msra.mxu1 %v6161_v11  ;;  %5618 = vmatprep.subr.bf16.mxu0 %v6402_v58  ;;  %v403_v58 = vld [vmem:[#allocation5 + $0x938] sm:$0xff] }
 0x2f7   :  { %5659 = vmatprep.subr.bf16.mxu1 %v6658_v59  ;;  %v411_v59 = vld [vmem:[#allocation5 + $0x978] sm:$0xff] }
 0x2f8   :  { %v5324_v20 = vpop.f32.mrf.mxu0  ;;  %5569 = vmatmul.mubr.bf16.vlgmr.msra.gmra.mxu0 %v6992_v48  ;;  %v6321_v19 = vcombine.low %v403_v58, %v411_v59  ;;  %v587_v47 = vld [vmem:[#allocation5 + $0xef8] sm:$0xff] }
 0x2f9   :  { %v5325_v37 = vadd.f32 %v5324_v20, %v7138_v25  ;;  %v7154_v23 = vpop.f32.mrf.mxu1  ;;  %5610 = vmatmul.mubr.bf16.vlgmr.msra.gmra.mxu1 %v6978_v30  ;;  %5619 = vmatpush1.bf16.msra.mxu0 %v6401_v9  ;;  %v6626_v30 = vcombine.high %v707_v38, %v715_v44  ;;  %v6322_v9 = vcombine.high %v403_v58, %v411_v59  ;;  %v563_v58 = vld [vmem:[#allocation5 + $0xe38] sm:$0xff] }
 0x2fa   :  { %5660 = vmatpush1.bf16.msra.mxu1 %v6657_v10  ;;  %v5326_v12 = vpop.f32.mrf.mxu0  ;;  %5620 = vmatprep.subr.bf16.mxu0 %v6386_v14  ;;  %v6578_v10 = vcombine.high %v659_v60, %v667_v0  ;;  %v387_v14 = vld [vmem:[#allocation5 + $0x8b8] sm:$0xff]  ;;  %v6577_v20 = vcombine.low %v659_v60, %v667_v0 }
 0x2fb   :  { %v5792_v34 = vmul.f32 %v5739_v15, %v5325_v37  ;;  %v5327_v25 = vadd.f32 %v5326_v12, %v7141_v57  ;;  %v7162_v1 = vpop.f32.mrf.mxu1  ;;  %5661 = vmatprep.subr.bf16.mxu1 %v6642_v17  ;;  %5650 = vmatprep.mubr.bf16.mxu0 %v6969_v16  ;;  %v6625_v57 = vcombine.low %v707_v38, %v715_v44  ;;  %v395_v15 = vld [vmem:[#allocation5 + $0x8f8] sm:$0xff] }
 0x2fc   :  { %v5328_v31 = vpop.f32.mrf.mxu0  ;;  %5691 = vmatprep.mubr.bf16.mxu1 %v6984_v40  ;;  %v6610_v16 = vcombine.high %v691_v32, %v699_v45  ;;  %v683_v40 = vld [vmem:[#allocation5 + $0x11f8] sm:$0xff]  ;;  %v6305_v12 = vcombine.low %v387_v14, %v395_v15 }
 0x2fd   :  { %v5793_v61 = vmul.f32 %v5743_v24, %v5327_v25  ;;  %v5369_v35 = vpop.f32.mrf.mxu1  ;;  %5621 = vmatpush1.bf16.msra.mxu0 %v6385_v46  ;;  %v7166_v63 = vadd.f32 %v5839_v36, %v5792_v34  ;;  %v6594_v11 = vcombine.high %v675_v50, %v683_v40  ;;  %v6593_v6 = vcombine.low %v675_v50, %v683_v40  ;;  %v643_v17 = vld [vmem:[#allocation5 + $0x10b8] sm:$0xff] }
 0x2fe   :  { %5662 = vmatpush1.bf16.msra.mxu1 %v6641_v27  ;;  %v5329_v39 = vpop.f32.mrf.mxu0  ;;  %5622 = vmatprep.subr.bf16.mxu0 %v6370_v26  ;;  %v6306_v36 = vcombine.high %v387_v14, %v395_v15  ;;  %v6562_v38 = vcombine.high %v643_v17, %v651_v18  ;;  %v371_v44 = vld [vmem:[#allocation5 + $0x838] sm:$0xff] }
 0x2ff   :  { %v7168_v41 = vadd.f32 %v5843_v52, %v5793_v61  ;;  %v5370_v5 = vpop.f32.mrf.mxu1  ;;  %5663 = vmatprep.subr.bf16.mxu1 %v6626_v30  ;;  %v379_v37 = vld [vmem:[#allocation5 + $0x878] sm:$0xff]  ;;  %v6561_v52 = vcombine.low %v643_v17, %v651_v18 }
 0x300   :  { %v627_v24 = vld [vmem:[#allocation5 + $0x1038] sm:$0xff]  ;;  %v6290_v27 = vcombine.high %v371_v44, %v379_v37  ;;  %v6289_v29 = vcombine.low %v371_v44, %v379_v37 }
 0x301   :  { %v5950_v51 = vcombine.low %v7166_v63, %v7168_v41  ;;  %5623 = vmatpush1.bf16.msra.mxu0 %v6369_v49  ;;  %v635_v46 = vld [vmem:[#allocation5 + $0x1078] sm:$0xff] }
 0x302   :  { %5664 = vmatpush1.bf16.msra.mxu1 %v6625_v57  ;;  %5624 = vmatprep.subr.bf16.mxu0 %v6354_v13  ;;  %v6546_v26 = vcombine.high %v627_v24, %v635_v46  ;;  %v611_v34 = vld [vmem:[#allocation5 + $0xfb8] sm:$0xff]  ;;  %v6545_v31 = vcombine.low %v627_v24, %v635_v46 }
 0x303   :  { %5665 = vmatprep.subr.bf16.mxu1 %v6610_v16  ;;  %v619_v25 = vld [vmem:[#allocation5 + $0xff8] sm:$0xff] }
 0x304   :  { %v867_v30 = vld [vmem:[#allocation5 + $0x17b8] sm:$0xff]  ;;  %v6530_v32 = vcombine.high %v611_v34, %v619_v25  ;;  %v6529_v57 = vcombine.low %v611_v34, %v619_v25 }
 0x305   :  { %5625 = vmatpush1.bf16.msra.mxu0 %v6353_v54  ;;  %v6786_v45 = vcombine.high %v867_v30, %v875_v28  ;;  %v595_v61 = vld [vmem:[#allocation5 + $0xf38] sm:$0xff]  ;;  %v6785_v13 = vcombine.low %v867_v30, %v875_v28 }
 0x306   :  { %5666 = vmatpush1.bf16.msra.mxu1 %v6609_v55  ;;  %5626 = vmatprep.subr.bf16.mxu0 %v6338_v22  ;;  %v603_v35 = vld [vmem:[#allocation5 + $0xf78] sm:$0xff]  ;;  %v6498_v22 = vcombine.high %v579_v43, %v587_v47 }
 0x307   :  { %5667 = vmatprep.subr.bf16.mxu1 %v6594_v11  ;;  %v851_v49 = vld [vmem:[#allocation5 + $0x1738] sm:$0xff]  ;;  %v6514_v5 = vcombine.high %v595_v61, %v603_v35  ;;  %v6513_v54 = vcombine.low %v595_v61, %v603_v35 }
 0x308   :  { %v859_v39 = vld [vmem:[#allocation5 + $0x1778] sm:$0xff] }
 0x309   :  { %5627 = vmatpush1.bf16.msra.mxu0 %v6337_v3  ;;  %v6770_v16 = vcombine.high %v851_v49, %v859_v39  ;;  %v835_v50 = vld [vmem:[#allocation5 + $0x16b8] sm:$0xff]  ;;  %v6769_v55 = vcombine.low %v851_v49, %v859_v39  ;;  %v6497_v3 = vcombine.low %v579_v43, %v587_v47 }
 0x30a   :  { %5668 = vmatpush1.bf16.msra.mxu1 %v6593_v6  ;;  %5628 = vmatprep.subr.bf16.mxu0 %v6322_v9  ;;  %v843_v40 = vld [vmem:[#allocation5 + $0x16f8] sm:$0xff] }
 0x30b   :  { %5669 = vmatprep.subr.bf16.mxu1 %v6578_v10  ;;  %v6754_v11 = vcombine.high %v835_v50, %v843_v40  ;;  %v571_v59 = vld [vmem:[#allocation5 + $0xe78] sm:$0xff]  ;;  %v6753_v6 = vcombine.low %v835_v50, %v843_v40 }
 0x30c   :  { %v819_v60 = vld [vmem:[#allocation5 + $0x1638] sm:$0xff]  ;;  %v6482_v9 = vcombine.high %v563_v58, %v571_v59 }
 0x30d   :  { %5629 = vmatpush1.bf16.msra.mxu0 %v6321_v19  ;;  %v827_v0 = vld [vmem:[#allocation5 + $0x1678] sm:$0xff]  ;;  %v6481_v19 = vcombine.low %v563_v58, %v571_v59 }
 0x30e   :  { %5670 = vmatpush1.bf16.msra.mxu1 %v6577_v20  ;;  %5630 = vmatprep.subr.bf16.mxu0 %v6306_v36  ;;  %v6738_v10 = vcombine.high %v819_v60, %v827_v0  ;;  %v547_v14 = vld [vmem:[#allocation5 + $0xdb8] sm:$0xff]  ;;  %v6737_v20 = vcombine.low %v819_v60, %v827_v0  ;;  %v5751_v60 = vrot.slane %v7144_v56, %v7048_v2 }
 0x30f   :  { %5671 = vmatprep.subr.bf16.mxu1 %v6562_v38  ;;  %v555_v15 = vld [vmem:[#allocation5 + $0xdf8] sm:$0xff] }
 0x310   :  { %v803_v17 = vld [vmem:[#allocation5 + $0x15b8] sm:$0xff]  ;;  %v6466_v36 = vcombine.high %v547_v14, %v555_v15 }
 0x311   :  { %5631 = vmatpush1.bf16.msra.mxu0 %v6305_v12  ;;  %v811_v18 = vld [vmem:[#allocation5 + $0x15f8] sm:$0xff]  ;;  %v6465_v12 = vcombine.low %v547_v14, %v555_v15 }
 0x312   :  { %5672 = vmatpush1.bf16.msra.mxu1 %v6561_v52  ;;  %5632 = vmatprep.subr.bf16.mxu0 %v6290_v27  ;;  %v6722_v38 = vcombine.high %v803_v17, %v811_v18  ;;  %v531_v44 = vld [vmem:[#allocation5 + $0xd38] sm:$0xff]  ;;  %v6721_v52 = vcombine.low %v803_v17, %v811_v18  ;;  %v5958_v18 = vrot.slane %v5950_v51, %v6954_v53 }
 0x313   :  { %5673 = vmatprep.subr.bf16.mxu1 %v6546_v26  ;;  %v539_v37 = vld [vmem:[#allocation5 + $0xd78] sm:$0xff]  ;;  %v5755_v51 = vrot.slane %v7144_v56, %v7078_v21 }
 0x314   :  { %v787_v24 = vld [vmem:[#allocation5 + $0x1538] sm:$0xff]  ;;  %v6450_v27 = vcombine.high %v531_v44, %v539_v37 }
 0x315   :  { %5633 = vmatpush1.bf16.msra.mxu0 %v6289_v29  ;;  %v795_v46 = vld [vmem:[#allocation5 + $0x1578] sm:$0xff]  ;;  %v6449_v29 = vcombine.low %v531_v44, %v539_v37 }
 0x316   :  { %5674 = vmatpush1.bf16.msra.mxu1 %v6545_v31  ;;  %5634 = vmatprep.subr.bf16.mxu0 %v6530_v32  ;;  %v6706_v26 = vcombine.high %v787_v24, %v795_v46  ;;  %v515_v34 = vld [vmem:[#allocation5 + $0xcb8] sm:$0xff]  ;;  %v6705_v31 = vcombine.low %v787_v24, %v795_v46 }
 0x317   :  { %5675 = vmatprep.subr.bf16.mxu1 %v6786_v45  ;;  %v523_v25 = vld [vmem:[#allocation5 + $0xcf8] sm:$0xff] }
 0x318   :  { %v771_v30 = vld [vmem:[#allocation5 + $0x14b8] sm:$0xff]  ;;  %v6434_v32 = vcombine.high %v515_v34, %v523_v25 }
 0x319   :  { %5635 = vmatpush2.bf16.msra.mxu0 %v6529_v57  ;;  %v779_v28 = vld [vmem:[#allocation5 + $0x14f8] sm:$0xff]  ;;  %v6433_v57 = vcombine.low %v515_v34, %v523_v25  ;;  %v5759_v25 = vrot.slane %v7144_v56, %v7081_v42 }
 0x31a   :  { %5676 = vmatpush2.bf16.msra.mxu1 %v6785_v13  ;;  %5636 = vmatprep.subr.bf16.mxu0 %v6514_v5  ;;  %v6690_v45 = vcombine.high %v771_v30, %v779_v28  ;;  %v499_v61 = vld [vmem:[#allocation5 + $0xc38] sm:$0xff]  ;;  %v6689_v13 = vcombine.low %v771_v30, %v779_v28 }
 0x31b   :  { %5677 = vmatprep.subr.bf16.mxu1 %v6770_v16  ;;  %v507_v35 = vld [vmem:[#allocation5 + $0xc78] sm:$0xff] }
 0x31c   :  { %v755_v49 = vld [vmem:[#allocation5 + $0x1438] sm:$0xff]  ;;  %v6418_v5 = vcombine.high %v499_v61, %v507_v35  ;;  %v6417_v43 = vcombine.low %v499_v61, %v507_v35 }
 0x31d   :  { %5637 = vmatpush2.bf16.msra.mxu0 %v6513_v54  ;;  %v763_v39 = vld [vmem:[#allocation5 + $0x1478] sm:$0xff] }
 0x31e   :  { %5678 = vmatpush2.bf16.msra.mxu1 %v6769_v55  ;;  %5638 = vmatprep.subr.bf16.mxu0 %v6498_v22  ;;  %v6674_v16 = vcombine.high %v755_v49, %v763_v39  ;;  %v6673_v47 = vcombine.low %v755_v49, %v763_v39  ;;  %v5747_v55 = vrot.slane %v7144_v56, %v7045_v62  ;;  %v5992_v63 = vld [vmem:[#allocation2 + $0x20] sm:$0xff]  ;;  %v5993_v41 = vld [vmem:[#allocation2 + $0x28] sm:$0x3f] }
 0x31f   :  { %5679 = vmatprep.subr.bf16.mxu1 %v6754_v11  ;;  %5994 = vst [vmem:[#allocation10 + $0x20] sm:$0xff] %v5992_v63  ;;  %6000 = vst.msk [vmem:[#allocation10 + $0x28] sm:$0x3f] %vm5999_vm4, %v5993_v41 }
 0x321   :  { %5639 = vmatpush2.bf16.msra.mxu0 %v6497_v3 }
 0x322   :  { %5680 = vmatpush2.bf16.msra.mxu1 %v6753_v6  ;;  %5640 = vmatprep.subr.bf16.mxu0 %v6482_v9  ;;  %v5851_v6 = vrot.slane %v7146_v7, %v7048_v2 }
 0x323   :  { %5681 = vmatprep.subr.bf16.mxu1 %v6738_v10 }
 0x325   :  { %5641 = vmatpush2.bf16.msra.mxu0 %v6481_v19 }
 0x326   :  { %5682 = vmatpush2.bf16.msra.mxu1 %v6737_v20  ;;  %5642 = vmatprep.subr.bf16.mxu0 %v6466_v36 }
 0x327   :  { %5683 = vmatprep.subr.bf16.mxu1 %v6722_v38 }
 0x329   :  { %5643 = vmatpush2.bf16.msra.mxu0 %v6465_v12 }
 0x32a   :  { %5684 = vmatpush2.bf16.msra.mxu1 %v6721_v52  ;;  %5644 = vmatprep.subr.bf16.mxu0 %v6450_v27 }
 0x32b   :  { %5685 = vmatprep.subr.bf16.mxu1 %v6706_v26 }
 0x32d   :  { %5645 = vmatpush2.bf16.msra.mxu0 %v6449_v29  ;;  %v5855_v29 = vrot.slane %v7146_v7, %v7078_v21 }
 0x32e   :  { %5686 = vmatpush2.bf16.msra.mxu1 %v6705_v31  ;;  %5646 = vmatprep.subr.bf16.mxu0 %v6434_v32  ;;  %v5859_v32 = vrot.slane %v7146_v7, %v7081_v42  ;;  %v5767_v42 = vrot.slane %v7144_v56, %v7115_v8 }
 0x32f   :  { %5687 = vmatprep.subr.bf16.mxu1 %v6690_v45 }
 0x331   :  { %5647 = vmatpush2.bf16.msra.mxu0 %v6433_v57 }
 0x332   :  { %5688 = vmatpush2.bf16.msra.mxu1 %v6689_v13  ;;  %5648 = vmatprep.subr.bf16.mxu0 %v6418_v5 }
 0x333   :  { %5689 = vmatprep.subr.bf16.mxu1 %v6674_v16 }
 0x335   :  { %5649 = vmatpush2.bf16.msra.mxu0 %v6417_v43 }
 0x336   :  { %5690 = vmatpush2.bf16.msra.mxu1 %v6673_v47 }
 0x338   :  { %v5406_v50 = vpop.f32.mrf.mxu0  ;;  %5651 = vmatmul.mubr.bf16.vlgmr.msra.gmra.mxu0 %v6982_v33  ;;  %v5847_v33 = vrot.slane %v7146_v7, %v7045_v62 }
 0x339   :  { %v5407_v40 = vadd.f32 %v5406_v50, %v7154_v23  ;;  %v5447_v54 = vpop.f32.mrf.mxu1  ;;  %5692 = vmatmul.mubr.bf16.vlgmr.msra.gmra.mxu1 %v6992_v48 }
 0x33a   :  { %v5408_v22 = vpop.f32.mrf.mxu0 }
 0x33b   :  { %v5448_v11 = vadd.f32 %v5447_v54, %v5407_v40  ;;  %v5409_v58 = vadd.f32 %v5408_v22, %v7162_v1  ;;  %v5449_v59 = vpop.f32.mrf.mxu1  ;;  %v5763_v40 = vrot.slane %v7144_v56, %v7112_v4 }
 0x33c   :  { %v5410_v0 = vpop.f32.mrf.mxu0 }
 0x33d   :  { %v5794_v3 = vmul.f32 %v5747_v55, %v5448_v11  ;;  %v5450_v23 = vadd.f32 %v5449_v59, %v5409_v58  ;;  %v5451_v9 = vpop.f32.mrf.mxu1  ;;  %v5863_v59 = vrot.slane %v7146_v7, %v7112_v4  ;;  %v5867_v0 = vrot.slane %v7146_v7, %v7115_v8 }
 0x33e   :  { %v5411_v10 = vpop.f32.mrf.mxu0 }
 0x33f   :  { %v5795_v48 = vmul.f32 %v5751_v60, %v5450_v23  ;;  %v5452_v14 = vpop.f32.mrf.mxu1  ;;  %v5894_v15 = vadd.f32 %v5847_v33, %v5794_v3 }
 0x341   :  { %v5895_v17 = vadd.f32 %v5851_v6, %v5795_v48 }
 0x343   :  { %v5951_v1 = vcombine.low %v5894_v15, %v5895_v17 }
 0x345   :  { %v5965_v19 = vrot.slane %v5951_v1, %v6954_v53 }
 0x347   :  { %v5966_v20 = vcombine.low %v5958_v18, %v5965_v19 }
 0x349   :  { %5990 = vst [vmem:[#allocation10 + $0x10] sm:$0xff] %v5966_v20 }
 0x378   :  { %v5488_v62 = vpop.f32.mrf.mxu0 }
 0x379   :  { %v5529_v36 = vpop.f32.mrf.mxu1 }
 0x37a   :  { %v5530_v38 = vadd.f32 %v5529_v36, %v5488_v62  ;;  %v5490_v2 = vpop.f32.mrf.mxu0 }
 0x37b   :  { %v5531_v44 = vpop.f32.mrf.mxu1 }
 0x37c   :  { %v5532_v37 = vadd.f32 %v5531_v44, %v5490_v2  ;;  %v5492_v24 = vpop.f32.mrf.mxu0 }
 0x37d   :  { %v5533_v46 = vpop.f32.mrf.mxu1 }
 0x37e   :  { %v5493_v12 = vpop.f32.mrf.mxu0 }
 0x37f   :  { %v5534_v52 = vpop.f32.mrf.mxu1 }
 0x3b8   :  { %v5570_v27 = vpop.f32.mrf.mxu0 }
 0x3b9   :  { %v5571_v26 = vadd.f32 %v5570_v27, %v5530_v38  ;;  %v5611_v34 = vpop.f32.mrf.mxu1 }
 0x3ba   :  { %v5572_v30 = vpop.f32.mrf.mxu0 }
 0x3bb   :  { %v5796_v28 = vmul.f32 %v5755_v51, %v5571_v26  ;;  %v5573_v31 = vadd.f32 %v5572_v30, %v5532_v37  ;;  %v5613_v45 = vpop.f32.mrf.mxu1 }
 0x3bc   :  { %v5574_v61 = vpop.f32.mrf.mxu0 }
 0x3bd   :  { %v5797_v35 = vmul.f32 %v5759_v25, %v5573_v31  ;;  %v5615_v49 = vpop.f32.mrf.mxu1  ;;  %v5896_v57 = vadd.f32 %v5855_v29, %v5796_v28 }
 0x3be   :  { %v5575_v39 = vpop.f32.mrf.mxu0 }
 0x3bf   :  { %v5897_v13 = vadd.f32 %v5859_v32, %v5797_v35  ;;  %v5616_v5 = vpop.f32.mrf.mxu1 }
 0x3c1   :  { %v5967_v16 = vcombine.low %v5896_v57, %v5897_v13 }
 0x3c3   :  { %v5975_v56 = vrot.slane %v5967_v16, %v6954_v53 }
 0x3f8   :  { %v5652_v43 = vpop.f32.mrf.mxu0 }
 0x3f9   :  { %v5653_v47 = vadd.f32 %v5652_v43, %v5611_v34  ;;  %v5693_v50 = vpop.f32.mrf.mxu1 }
 0x3fa   :  { %v5654_v21 = vpop.f32.mrf.mxu0 }
 0x3fb   :  { %v5694_v54 = vadd.f32 %v5693_v50, %v5653_v47  ;;  %v5655_v55 = vadd.f32 %v5654_v21, %v5613_v45  ;;  %v5695_v22 = vpop.f32.mrf.mxu1 }
 0x3fc   :  { %v5656_v11 = vpop.f32.mrf.mxu0 }
 0x3fd   :  { %v5798_v58 = vmul.f32 %v5763_v40, %v5694_v54  ;;  %v5696_v60 = vadd.f32 %v5695_v22, %v5655_v55  ;;  %v5697_v3 = vpop.f32.mrf.mxu1 }
 0x3fe   :  { %v5657_v33 = vpop.f32.mrf.mxu0 }
 0x3ff   :  { %v5799_v23 = vmul.f32 %v5767_v42, %v5696_v60  ;;  %v5698_v6 = vpop.f32.mrf.mxu1  ;;  %v5898_v9 = vadd.f32 %v5863_v59, %v5798_v58 }
 0x401   :  { %v5899_v10 = vadd.f32 %v5867_v0, %v5799_v23 }
 0x403   :  { %v5968_v48 = vcombine.low %v5898_v9, %v5899_v10 }
 0x405   :  { %v5982_v14 = vrot.slane %v5968_v48, %v6954_v53 }
 0x407   :  { %v5983_v15 = vcombine.low %v5975_v56, %v5982_v14 }
 0x409   :  { %5991 = vst [vmem:[#allocation10 + $0x18] sm:$0xff] %v5983_v15 }
 0x40a   :  { %6889 = shalt.err (!%p6886_p10)
}
 0x40b   :  { %6010 = dma.vmem_to_hbm [thread:$0]  %s6008_s3, 736, %s7214_s4, [#allocation4]  }
 0x40c   :  { %6904 = dma.done.wait [#allocation4], 736  }
 0x40d   :  { %6905 = vsyncadd [#allocation4], 4294966560 }
 0x40e   :  { %6014 = vsyncpa [#allocation3], 1 }
 0x40f   :  { %6015 = vsyncpa [#allocation6], 1 }
 0x410   :  { %6016 = vsyncpa [#allocation9], 1 }
 0x411   :  { %6017 = vsyncpa [#allocation4], 1 }

</bundles_post_ra>
